<compile_context>
chip_gen: v7x
topology: tpu7x:2x2x1
jax: 0.10.0
libtpu: 0.0.40
codegen_flags: <defaults>
</compile_context>

<pallas_src>
import jax
import jax.numpy as jnp
from jax import lax
from jax.experimental import pallas as pl
from jax.experimental.pallas import tpu as pltpu


def _graph_attention_kernel(xp_ref, xr_ref, adj_ref, wst_ref, wout_ref, wres_ref,
                            out_ref, kqv_scr):
    # One grid step handles Bb batch elements; all T attention channels per element.
    threeT, F = wst_ref.shape
    T = threeT // 3
    Tp, Cout = wout_ref.shape
    Bb = xp_ref.shape[0]
    NTp = xp_ref.shape[2]
    N = NTp // Tp
    TN = T * N

    w_stack = wst_ref[...]          # (3T, F)     stacked k|q|v conv weights (+bias col)
    w_out = wout_ref[...]           # (Tp, Cout)  fc_out weight, BN scale folded
    w_res = wres_ref[...]           # (C+1, Cout) fc_res weight + folded biases/BN shift

    for bb in range(Bb):            # small static unroll (Bb ~ 2..8)
        # --- k/q/v for every attention time-channel: ONE dense MXU matmul ---
        # rows 0..T-1 = k, T..2T-1 = q, 2T..3T-1 = v ; columns ordered (n, p)
        kqv_tf = jnp.dot(w_stack, xp_ref[bb],
                         preferred_element_type=jnp.float32)              # (3T, N*Tp)

        # relayout (3T, N*Tp) -> (3T, N, Tp) via VMEM scratch (static lane slices)
        for n in range(N):
            kqv_scr[:, n, :] = kqv_tf[:, n * Tp:(n + 1) * Tp]

        k = kqv_scr[0:T]                                                   # (T, N, Tp)
        q = kqv_scr[T:2 * T]
        v = kqv_scr[2 * T:3 * T]

        # score[t,n,m] = sum_p k[t,n,p] q[t,m,p]  + (adj + adj_hat)
        score = lax.dot_general(
            k, q, dimension_numbers=(((2,), (2,)), ((0,), (0,))),
            preferred_element_type=jnp.float32)                            # (T, N, N)
        score = score + adj_ref[bb]                                        # (N,N) bcast over T

        # stable softmax over the last dim (f32 throughout)
        score = score - jnp.max(score, axis=-1, keepdims=True)
        e = jnp.exp(score)
        probs = e * pl.reciprocal(jnp.sum(e, axis=-1, keepdims=True), approx=False)

        # attn[t,n,p] = sum_m probs[t,n,m] v[t,m,p]
        attn = lax.dot_general(
            probs, v, dimension_numbers=(((2,), (1,)), ((0,), (0,))),
            preferred_element_type=jnp.float32)                            # (T, N, Tp)

        # fc_out (BN-scaled) + residual 1x1 conv (BN-scaled, biases folded): 2-D matmuls
        attn_flat = attn.reshape(TN, Tp)          # merge leading dims (N==8: tile-aligned)
        y = jnp.dot(attn_flat, w_out, preferred_element_type=jnp.float32)           # (T*N, Cout)
        y = y + jnp.dot(xr_ref[bb], w_res, preferred_element_type=jnp.float32)      # + res + bias

        out_ref[bb] = y.T.astype(out_ref.dtype)                            # (Cout, T*N)


def graph_attention_forward(x, adj, adj_hat, params, *, time_filter, batch_block=None):
    B, C, N, T = x.shape
    tf = time_filter
    Tp = T - tf + 1
    Cout = params["w_out"].shape[0]
    F = C * tf + 1                      # im2col features + bias column
    TN = T * N

    # --- choose how many batch elements each grid step handles (prefer an even grid) ---
    if batch_block is None:
        divisors = [d for d in range(1, min(B, 8) + 1) if B % d == 0]
        even = [d for d in divisors if (B // d) % 2 == 0]
        batch_block = max(even) if even else max(divisors)
    assert B % batch_block == 0
    G = B // batch_block

    # --- im2col patches for the (1, tf) conv, feature-major, with a ones row (conv bias) ---
    patches = jnp.stack([x[:, :, :, j:j + Tp] for j in range(tf)], axis=-1)        # (B,C,N,Tp,tf)
    feat = patches.transpose(0, 1, 4, 2, 3).reshape(B, C * tf, N * Tp)             # (B, C*tf, N*Tp)
    xp = jnp.concatenate([feat, jnp.ones((B, 1, N * Tp), x.dtype)], axis=1)        # (B, F, N*Tp)

    # --- dense stacked projection weights (3T, F): rows = [k | q | v] ---
    def aug(w, b):                                     # (T,C,1,tf), (T,) -> (T, F)
        return jnp.concatenate([w.reshape(T, C * tf), b[:, None]], axis=-1)

    w_stack = jnp.concatenate([aug(params["w_k"], params["b_k"]),
                               aug(params["w_q"], params["b_q"]),
                               aug(params["w_v"], params["b_v"])], axis=0)         # (3T, F)

    # --- fold eval-mode BatchNorm + conv biases into fc_out / fc_res weights ---
    eps = 1e-5
    scale = params["bn_gamma"] / jnp.sqrt(params["bn_var"] + eps)                  # (Cout,)
    shift = params["bn_beta"] - params["bn_mean"] * scale                          # (Cout,)
    wout_s = params["w_out"].reshape(Cout, Tp).T * scale[None, :]                  # (Tp, Cout)
    wres_s = params["w_res"].reshape(Cout, C).T * scale[None, :]                   # (C, Cout)
    bias_vec = (params["b_out"] + params["b_res"]) * scale + shift                 # (Cout,)
    wres_aug = jnp.concatenate([wres_s, bias_vec[None, :]], axis=0)                # (C+1, Cout)

    # --- residual input rows ordered (t, n), ones column carries the folded bias ---
    x_tnc = x.transpose(0, 3, 2, 1).reshape(B, TN, C)
    xr_aug = jnp.concatenate([x_tnc, jnp.ones((B, TN, 1), x.dtype)], axis=-1)      # (B, T*N, C+1)

    adj_sum = adj + adj_hat                                                        # (B, N, N)

    out_flat = pl.pallas_call(
        _graph_attention_kernel,
        out_shape=jax.ShapeDtypeStruct((B, Cout, TN), x.dtype),
        grid=(G,),
        in_specs=[
            pl.BlockSpec((batch_block, F, N * Tp), lambda g: (g, 0, 0)),    # im2col patches
            pl.BlockSpec((batch_block, TN, C + 1), lambda g: (g, 0, 0)),    # residual rows
            pl.BlockSpec((batch_block, N, N), lambda g: (g, 0, 0)),         # adj + adj_hat
            pl.BlockSpec((3 * T, F), lambda g: (0, 0)),                     # kqv weights (resident)
            pl.BlockSpec((Tp, Cout), lambda g: (0, 0)),                     # fc_out (BN folded)
            pl.BlockSpec((C + 1, Cout), lambda g: (0, 0)),                  # fc_res + bias (BN folded)
        ],
        out_specs=pl.BlockSpec((batch_block, Cout, TN), lambda g: (g, 0, 0)),
        scratch_shapes=[pltpu.VMEM((3 * T, N, Tp), jnp.float32)],
        compiler_params=pltpu.CompilerParams(dimension_semantics=("parallel",)),
    )(xp, xr_aug, adj_sum, w_stack, wout_s, wres_aug)

    # (B, Cout, T*N) with columns ordered (t, n)  ->  (B, Cout, N, T)
    return out_flat.reshape(B, Cout, T, N).transpose(0, 1, 3, 2)


def reference_forward(x, adj, adj_hat, params, *, time_filter):
    """Pure-JAX reference mirroring the PyTorch forward (eval mode)."""
    B, C, N, T = x.shape
    tf = time_filter
    Tp = T - tf + 1

    def conv1xt(xx, w, b):
        out = jax.lax.conv_general_dilated(
            xx, w, window_strides=(1, 1), padding='VALID',
            dimension_numbers=('NCHW', 'OIHW', 'NCHW'))
        return out + b[None, :, None, None]

    k = conv1xt(x, params["w_k"], params["b_k"])
    q = conv1xt(x, params["w_q"], params["b_q"])
    v = conv1xt(x, params["w_v"], params["b_v"])
    score = jnp.einsum('BTNC,BTnC->BTNn', k, q)
    score = score + adj[:, None] + adj_hat[:, None]
    score = jax.nn.softmax(score, axis=-1)
    out = jnp.einsum('BTnN,BTNC->BCnT', score, v)
    Cout = params["w_out"].shape[0]
    out = (jnp.einsum('oc,BcnT->BonT', params["w_out"].reshape(Cout, Tp), out)
           + params["b_out"][None, :, None, None])
    res = (jnp.einsum('oc,BcnT->BonT', params["w_res"].reshape(Cout, C), x)
           + params["b_res"][None, :, None, None])
    z = out + res
    eps = 1e-5
    z = (z - params["bn_mean"][None, :, None, None]) / jnp.sqrt(
        params["bn_var"][None, :, None, None] + eps)
    return z * params["bn_gamma"][None, :, None, None] + params["bn_beta"][None, :, None, None]


if __name__ == "__main__":
    B, C, N, T = 4, 4, 8, 8        # batch, in_channels, nodes, timestep_max
    tf = 3                         # time_filter
    Cout = 8                       # out_channels
    Tp = T - tf + 1
    f32 = jnp.float32

    keys = jax.random.split(jax.random.PRNGKey(0), 17)
    x = jax.random.normal(keys[0], (B, C, N, T), f32)
    adj = jax.random.normal(keys[1], (B, N, N), f32) * 0.1
    adj_hat = jax.random.normal(keys[2], (B, N, N), f32) * 0.1

    params = {
        "w_k": jax.random.normal(keys[3], (T, C, 1, tf), f32) * 0.2,
        "b_k": jax.random.normal(keys[4], (T,), f32) * 0.1,
        "w_q": jax.random.normal(keys[5], (T, C, 1, tf), f32) * 0.2,
        "b_q": jax.random.normal(keys[6], (T,), f32) * 0.1,
        "w_v": jax.random.normal(keys[7], (T, C, 1, tf), f32) * 0.2,
        "b_v": jax.random.normal(keys[8], (T,), f32) * 0.1,
        "w_out": jax.random.normal(keys[9], (Cout, Tp, 1, 1), f32) * 0.2,
        "b_out": jax.random.normal(keys[10], (Cout,), f32) * 0.1,
        "w_res": jax.random.normal(keys[11], (Cout, C, 1, 1), f32) * 0.2,
        "b_res": jax.random.normal(keys[12], (Cout,), f32) * 0.1,
        "bn_gamma": jax.random.uniform(keys[13], (Cout,), f32, 0.5, 1.5),
        "bn_beta": jax.random.normal(keys[14], (Cout,), f32) * 0.1,
        "bn_mean": jax.random.normal(keys[15], (Cout,), f32) * 0.1,
        "bn_var": jax.random.uniform(keys[16], (Cout,), f32, 0.5, 1.5),
    }

    fwd = jax.jit(lambda xx, a, ah: graph_attention_forward(xx, a, ah, params, time_filter=tf))
    out = fwd(x, adj, adj_hat)
    out = jax.block_until_ready(out)

    ref = reference_forward(x, adj, adj_hat, params, time_filter=tf)
    assert out.shape == (B, Cout, N, T), out.shape
    assert jnp.allclose(out, ref, atol=1e-4, rtol=1e-4), float(jnp.max(jnp.abs(out - ref)))
    print("KERNEL_OK")
</pallas_src>

<mosaic_0001>
module attributes {stable_mosaic.version = 11 : i64} {
  func.func @_graph_attention_kernel(%arg0: i32, %arg1: memref<2x13x48xf32, #tpu.memory_space<vmem>>, %arg2: memref<2x64x5xf32, #tpu.memory_space<vmem>>, %arg3: memref<2x8x8xf32, #tpu.memory_space<vmem>>, %arg4: memref<24x13xf32, #tpu.memory_space<vmem>>, %arg5: memref<6x8xf32, #tpu.memory_space<vmem>>, %arg6: memref<5x8xf32, #tpu.memory_space<vmem>>, %arg7: memref<2x8x64xf32, #tpu.memory_space<vmem>>, %arg8: memref<24x8x6xf32, #tpu.memory_space<vmem>>) attributes {dimension_semantics = [#tpu.dimension_semantics<parallel>], iteration_bounds = array<i64: 2>, scalar_prefetch = 0 : i64, scratch_operands = 1 : i64, tpu.core_type = #tpu.core_type<tc>, window_params = [{transform_indices = @transform_0, window_bounds = array<i64: 2, 13, 48>}, {transform_indices = @transform_1, window_bounds = array<i64: 2, 64, 5>}, {transform_indices = @transform_2, window_bounds = array<i64: 2, 8, 8>}, {pipeline_mode = #tpu.pipeline_mode<synchronous>, transform_indices = @transform_3, window_bounds = array<i64: 24, 13>}, {pipeline_mode = #tpu.pipeline_mode<synchronous>, transform_indices = @transform_4, window_bounds = array<i64: 6, 8>}, {pipeline_mode = #tpu.pipeline_mode<synchronous>, transform_indices = @transform_5, window_bounds = array<i64: 5, 8>}, {transform_indices = @transform_6, window_bounds = array<i64: 2, 8, 64>}]} {
    %c0 = arith.constant 0 : index
    %c0_0 = arith.constant 0 : index
    %0 = vector.load %arg4[%c0, %c0_0] : memref<24x13xf32, #tpu.memory_space<vmem>>, vector<24x13xf32>
    %c0_1 = arith.constant 0 : index
    %c0_2 = arith.constant 0 : index
    %1 = vector.load %arg5[%c0_1, %c0_2] : memref<6x8xf32, #tpu.memory_space<vmem>>, vector<6x8xf32>
    %c0_3 = arith.constant 0 : index
    %c0_4 = arith.constant 0 : index
    %2 = vector.load %arg6[%c0_3, %c0_4] : memref<5x8xf32, #tpu.memory_space<vmem>>, vector<5x8xf32>
    %c0_5 = arith.constant 0 : index
    %c0_6 = arith.constant 0 : index
    %c0_7 = arith.constant 0 : index
    %3 = vector.load %arg1[%c0_5, %c0_6, %c0_7] : memref<2x13x48xf32, #tpu.memory_space<vmem>>, vector<1x13x48xf32>
    %4 = vector.shape_cast %3 : vector<1x13x48xf32> to vector<13x48xf32>
    %cst = arith.constant dense<0.000000e+00> : vector<24x48xf32>
    %5 = tpu.matmul %0, %4, %cst {dimension_numbers = #tpu.dot_dimension_numbers<[1], [0], [0], [1], [0, 0, 1, 1], [], []>} : vector<24x13xf32>, vector<13x48xf32>, vector<24x48xf32> -> vector<24x48xf32>
    %6 = vector.extract_strided_slice %5 {offsets = [0, 0], sizes = [24, 6], strides = [1, 1]} : vector<24x48xf32> to vector<24x6xf32>
    %c0_8 = arith.constant 0 : index
    %c0_9 = arith.constant 0 : index
    %c0_10 = arith.constant 0 : index
    %7 = vector.load %arg8[%c0_8, %c0_9, %c0_10] : memref<24x8x6xf32, #tpu.memory_space<vmem>>, vector<24x1x6xf32>
    %8 = vector.shape_cast %7 : vector<24x1x6xf32> to vector<24x6xf32>
    %9 = vector.shape_cast %6 : vector<24x6xf32> to vector<24x1x6xf32>
    tpu.vector_store %arg8[%c0_8, %c0_9, %c0_10], %9 {strides = array<i32>} : memref<24x8x6xf32, #tpu.memory_space<vmem>>, vector<24x1x6xf32>,
    %10 = vector.extract_strided_slice %5 {offsets = [0, 6], sizes = [24, 6], strides = [1, 1]} : vector<24x48xf32> to vector<24x6xf32>
    %c0_11 = arith.constant 0 : index
    %c1 = arith.constant 1 : index
    %c0_12 = arith.constant 0 : index
    %11 = vector.load %arg8[%c0_11, %c1, %c0_12] : memref<24x8x6xf32, #tpu.memory_space<vmem>>, vector<24x1x6xf32>
    %12 = vector.shape_cast %11 : vector<24x1x6xf32> to vector<24x6xf32>
    %13 = vector.shape_cast %10 : vector<24x6xf32> to vector<24x1x6xf32>
    tpu.vector_store %arg8[%c0_11, %c1, %c0_12], %13 {strides = array<i32>} : memref<24x8x6xf32, #tpu.memory_space<vmem>>, vector<24x1x6xf32>,
    %14 = vector.extract_strided_slice %5 {offsets = [0, 12], sizes = [24, 6], strides = [1, 1]} : vector<24x48xf32> to vector<24x6xf32>
    %c0_13 = arith.constant 0 : index
    %c2 = arith.constant 2 : index
    %c0_14 = arith.constant 0 : index
    %15 = vector.load %arg8[%c0_13, %c2, %c0_14] : memref<24x8x6xf32, #tpu.memory_space<vmem>>, vector<24x1x6xf32>
    %16 = vector.shape_cast %15 : vector<24x1x6xf32> to vector<24x6xf32>
    %17 = vector.shape_cast %14 : vector<24x6xf32> to vector<24x1x6xf32>
    tpu.vector_store %arg8[%c0_13, %c2, %c0_14], %17 {strides = array<i32>} : memref<24x8x6xf32, #tpu.memory_space<vmem>>, vector<24x1x6xf32>,
    %18 = vector.extract_strided_slice %5 {offsets = [0, 18], sizes = [24, 6], strides = [1, 1]} : vector<24x48xf32> to vector<24x6xf32>
    %c0_15 = arith.constant 0 : index
    %c3 = arith.constant 3 : index
    %c0_16 = arith.constant 0 : index
    %19 = vector.load %arg8[%c0_15, %c3, %c0_16] : memref<24x8x6xf32, #tpu.memory_space<vmem>>, vector<24x1x6xf32>
    %20 = vector.shape_cast %19 : vector<24x1x6xf32> to vector<24x6xf32>
    %21 = vector.shape_cast %18 : vector<24x6xf32> to vector<24x1x6xf32>
    tpu.vector_store %arg8[%c0_15, %c3, %c0_16], %21 {strides = array<i32>} : memref<24x8x6xf32, #tpu.memory_space<vmem>>, vector<24x1x6xf32>,
    %22 = vector.extract_strided_slice %5 {offsets = [0, 24], sizes = [24, 6], strides = [1, 1]} : vector<24x48xf32> to vector<24x6xf32>
    %c0_17 = arith.constant 0 : index
    %c4 = arith.constant 4 : index
    %c0_18 = arith.constant 0 : index
    %23 = vector.load %arg8[%c0_17, %c4, %c0_18] : memref<24x8x6xf32, #tpu.memory_space<vmem>>, vector<24x1x6xf32>
    %24 = vector.shape_cast %23 : vector<24x1x6xf32> to vector<24x6xf32>
    %25 = vector.shape_cast %22 : vector<24x6xf32> to vector<24x1x6xf32>
    tpu.vector_store %arg8[%c0_17, %c4, %c0_18], %25 {strides = array<i32>} : memref<24x8x6xf32, #tpu.memory_space<vmem>>, vector<24x1x6xf32>,
    %26 = vector.extract_strided_slice %5 {offsets = [0, 30], sizes = [24, 6], strides = [1, 1]} : vector<24x48xf32> to vector<24x6xf32>
    %c0_19 = arith.constant 0 : index
    %c5 = arith.constant 5 : index
    %c0_20 = arith.constant 0 : index
    %27 = vector.load %arg8[%c0_19, %c5, %c0_20] : memref<24x8x6xf32, #tpu.memory_space<vmem>>, vector<24x1x6xf32>
    %28 = vector.shape_cast %27 : vector<24x1x6xf32> to vector<24x6xf32>
    %29 = vector.shape_cast %26 : vector<24x6xf32> to vector<24x1x6xf32>
    tpu.vector_store %arg8[%c0_19, %c5, %c0_20], %29 {strides = array<i32>} : memref<24x8x6xf32, #tpu.memory_space<vmem>>, vector<24x1x6xf32>,
    %30 = vector.extract_strided_slice %5 {offsets = [0, 36], sizes = [24, 6], strides = [1, 1]} : vector<24x48xf32> to vector<24x6xf32>
    %c0_21 = arith.constant 0 : index
    %c6 = arith.constant 6 : index
    %c0_22 = arith.constant 0 : index
    %31 = vector.load %arg8[%c0_21, %c6, %c0_22] : memref<24x8x6xf32, #tpu.memory_space<vmem>>, vector<24x1x6xf32>
    %32 = vector.shape_cast %31 : vector<24x1x6xf32> to vector<24x6xf32>
    %33 = vector.shape_cast %30 : vector<24x6xf32> to vector<24x1x6xf32>
    tpu.vector_store %arg8[%c0_21, %c6, %c0_22], %33 {strides = array<i32>} : memref<24x8x6xf32, #tpu.memory_space<vmem>>, vector<24x1x6xf32>,
    %34 = vector.extract_strided_slice %5 {offsets = [0, 42], sizes = [24, 6], strides = [1, 1]} : vector<24x48xf32> to vector<24x6xf32>
    %c0_23 = arith.constant 0 : index
    %c7 = arith.constant 7 : index
    %c0_24 = arith.constant 0 : index
    %35 = vector.load %arg8[%c0_23, %c7, %c0_24] : memref<24x8x6xf32, #tpu.memory_space<vmem>>, vector<24x1x6xf32>
    %36 = vector.shape_cast %35 : vector<24x1x6xf32> to vector<24x6xf32>
    %37 = vector.shape_cast %34 : vector<24x6xf32> to vector<24x1x6xf32>
    tpu.vector_store %arg8[%c0_23, %c7, %c0_24], %37 {strides = array<i32>} : memref<24x8x6xf32, #tpu.memory_space<vmem>>, vector<24x1x6xf32>,
    %c0_25 = arith.constant 0 : index
    %c0_26 = arith.constant 0 : index
    %c0_27 = arith.constant 0 : index
    %38 = vector.load %arg8[%c0_25, %c0_26, %c0_27] : memref<24x8x6xf32, #tpu.memory_space<vmem>>, vector<8x8x6xf32>
    %c8 = arith.constant 8 : index
    %c0_28 = arith.constant 0 : index
    %c0_29 = arith.constant 0 : index
    %39 = vector.load %arg8[%c8, %c0_28, %c0_29] : memref<24x8x6xf32, #tpu.memory_space<vmem>>, vector<8x8x6xf32>
    %c16 = arith.constant 16 : index
    %c0_30 = arith.constant 0 : index
    %c0_31 = arith.constant 0 : index
    %40 = vector.load %arg8[%c16, %c0_30, %c0_31] : memref<24x8x6xf32, #tpu.memory_space<vmem>>, vector<8x8x6xf32>
    %cst_32 = arith.constant dense<0.000000e+00> : vector<8x8x8xf32>
    %41 = tpu.matmul %38, %39, %cst_32 {dimension_numbers = #tpu.dot_dimension_numbers<[2], [2], [1], [1], [0, 0, 0, 1, 1, 1], [0], [0]>} : vector<8x8x6xf32>, vector<8x8x6xf32>, vector<8x8x8xf32> -> vector<8x8x8xf32>
    %c0_33 = arith.constant 0 : index
    %c0_34 = arith.constant 0 : index
    %c0_35 = arith.constant 0 : index
    %42 = vector.load %arg3[%c0_33, %c0_34, %c0_35] : memref<2x8x8xf32, #tpu.memory_space<vmem>>, vector<1x8x8xf32>
    %43 = vector.shape_cast %42 : vector<1x8x8xf32> to vector<8x8xf32>
    %44 = vector.shape_cast %43 : vector<8x8xf32> to vector<1x8x8xf32>
    %45 = vector.broadcast %44 : vector<1x8x8xf32> to vector<8x8x8xf32>
    %46 = arith.addf %41, %45 : vector<8x8x8xf32>
    %cst_36 = arith.constant dense<0xFF800000> : vector<8x8xf32>
    %47 = vector.multi_reduction <maximumf>, %46, %cst_36 [2] : vector<8x8x8xf32> to vector<8x8xf32>
    %48 = vector.shape_cast %47 : vector<8x8xf32> to vector<8x8x1xf32>
    %49 = vector.broadcast %48 : vector<8x8x1xf32> to vector<8x8x8xf32>
    %50 = arith.subf %46, %49 : vector<8x8x8xf32>
    %51 = math.exp %50 : vector<8x8x8xf32>
    %cst_37 = arith.constant dense<0.000000e+00> : vector<8x8xf32>
    %52 = vector.multi_reduction <add>, %51, %cst_37 [2] : vector<8x8x8xf32> to vector<8x8xf32>
    %53 = vector.shape_cast %52 : vector<8x8xf32> to vector<8x8x1xf32>
    %54 = tpu.reciprocal %53 : vector<8x8x1xf32> -> vector<8x8x1xf32>
    %55 = vector.broadcast %54 : vector<8x8x1xf32> to vector<8x8x8xf32>
    %56 = arith.mulf %51, %55 : vector<8x8x8xf32>
    %cst_38 = arith.constant dense<0.000000e+00> : vector<8x8x6xf32>
    %57 = tpu.matmul %56, %40, %cst_38 {dimension_numbers = #tpu.dot_dimension_numbers<[2], [1], [1], [2], [0, 0, 0, 1, 1, 2], [0], [0]>} : vector<8x8x8xf32>, vector<8x8x6xf32>, vector<8x8x6xf32> -> vector<8x8x6xf32>
    %58 = vector.shape_cast %57 : vector<8x8x6xf32> to vector<64x6xf32>
    %cst_39 = arith.constant dense<0.000000e+00> : vector<64x8xf32>
    %59 = tpu.matmul %58, %1, %cst_39 {dimension_numbers = #tpu.dot_dimension_numbers<[1], [0], [0], [1], [0, 0, 1, 1], [], []>} : vector<64x6xf32>, vector<6x8xf32>, vector<64x8xf32> -> vector<64x8xf32>
    %c0_40 = arith.constant 0 : index
    %c0_41 = arith.constant 0 : index
    %c0_42 = arith.constant 0 : index
    %60 = vector.load %arg2[%c0_40, %c0_41, %c0_42] : memref<2x64x5xf32, #tpu.memory_space<vmem>>, vector<1x64x5xf32>
    %61 = vector.shape_cast %60 : vector<1x64x5xf32> to vector<64x5xf32>
    %cst_43 = arith.constant dense<0.000000e+00> : vector<64x8xf32>
    %62 = tpu.matmul %61, %2, %cst_43 {dimension_numbers = #tpu.dot_dimension_numbers<[1], [0], [0], [1], [0, 0, 1, 1], [], []>} : vector<64x5xf32>, vector<5x8xf32>, vector<64x8xf32> -> vector<64x8xf32>
    %63 = arith.addf %59, %62 : vector<64x8xf32>
    %64 = tpu.transpose %63, [1, 0] : vector<64x8xf32> -> vector<8x64xf32>
    %c0_44 = arith.constant 0 : index
    %c0_45 = arith.constant 0 : index
    %c0_46 = arith.constant 0 : index
    %65 = vector.load %arg7[%c0_44, %c0_45, %c0_46] : memref<2x8x64xf32, #tpu.memory_space<vmem>>, vector<1x8x64xf32>
    %66 = vector.shape_cast %65 : vector<1x8x64xf32> to vector<8x64xf32>
    %67 = vector.shape_cast %64 : vector<8x64xf32> to vector<1x8x64xf32>
    tpu.vector_store %arg7[%c0_44, %c0_45, %c0_46], %67 {strides = array<i32>} : memref<2x8x64xf32, #tpu.memory_space<vmem>>, vector<1x8x64xf32>,
    %c1_47 = arith.constant 1 : index
    %c0_48 = arith.constant 0 : index
    %c0_49 = arith.constant 0 : index
    %68 = vector.load %arg1[%c1_47, %c0_48, %c0_49] : memref<2x13x48xf32, #tpu.memory_space<vmem>>, vector<1x13x48xf32>
    %69 = vector.shape_cast %68 : vector<1x13x48xf32> to vector<13x48xf32>
    %cst_50 = arith.constant dense<0.000000e+00> : vector<24x48xf32>
    %70 = tpu.matmul %0, %69, %cst_50 {dimension_numbers = #tpu.dot_dimension_numbers<[1], [0], [0], [1], [0, 0, 1, 1], [], []>} : vector<24x13xf32>, vector<13x48xf32>, vector<24x48xf32> -> vector<24x48xf32>
    %71 = vector.extract_strided_slice %70 {offsets = [0, 0], sizes = [24, 6], strides = [1, 1]} : vector<24x48xf32> to vector<24x6xf32>
    %c0_51 = arith.constant 0 : index
    %c0_52 = arith.constant 0 : index
    %c0_53 = arith.constant 0 : index
    %72 = vector.load %arg8[%c0_51, %c0_52, %c0_53] : memref<24x8x6xf32, #tpu.memory_space<vmem>>, vector<24x1x6xf32>
    %73 = vector.shape_cast %72 : vector<24x1x6xf32> to vector<24x6xf32>
    %74 = vector.shape_cast %71 : vector<24x6xf32> to vector<24x1x6xf32>
    tpu.vector_store %arg8[%c0_51, %c0_52, %c0_53], %74 {strides = array<i32>} : memref<24x8x6xf32, #tpu.memory_space<vmem>>, vector<24x1x6xf32>,
    %75 = vector.extract_strided_slice %70 {offsets = [0, 6], sizes = [24, 6], strides = [1, 1]} : vector<24x48xf32> to vector<24x6xf32>
    %c0_54 = arith.constant 0 : index
    %c1_55 = arith.constant 1 : index
    %c0_56 = arith.constant 0 : index
    %76 = vector.load %arg8[%c0_54, %c1_55, %c0_56] : memref<24x8x6xf32, #tpu.memory_space<vmem>>, vector<24x1x6xf32>
    %77 = vector.shape_cast %76 : vector<24x1x6xf32> to vector<24x6xf32>
    %78 = vector.shape_cast %75 : vector<24x6xf32> to vector<24x1x6xf32>
    tpu.vector_store %arg8[%c0_54, %c1_55, %c0_56], %78 {strides = array<i32>} : memref<24x8x6xf32, #tpu.memory_space<vmem>>, vector<24x1x6xf32>,
    %79 = vector.extract_strided_slice %70 {offsets = [0, 12], sizes = [24, 6], strides = [1, 1]} : vector<24x48xf32> to vector<24x6xf32>
    %c0_57 = arith.constant 0 : index
    %c2_58 = arith.constant 2 : index
    %c0_59 = arith.constant 0 : index
    %80 = vector.load %arg8[%c0_57, %c2_58, %c0_59] : memref<24x8x6xf32, #tpu.memory_space<vmem>>, vector<24x1x6xf32>
    %81 = vector.shape_cast %80 : vector<24x1x6xf32> to vector<24x6xf32>
    %82 = vector.shape_cast %79 : vector<24x6xf32> to vector<24x1x6xf32>
    tpu.vector_store %arg8[%c0_57, %c2_58, %c0_59], %82 {strides = array<i32>} : memref<24x8x6xf32, #tpu.memory_space<vmem>>, vector<24x1x6xf32>,
    %83 = vector.extract_strided_slice %70 {offsets = [0, 18], sizes = [24, 6], strides = [1, 1]} : vector<24x48xf32> to vector<24x6xf32>
    %c0_60 = arith.constant 0 : index
    %c3_61 = arith.constant 3 : index
    %c0_62 = arith.constant 0 : index
    %84 = vector.load %arg8[%c0_60, %c3_61, %c0_62] : memref<24x8x6xf32, #tpu.memory_space<vmem>>, vector<24x1x6xf32>
    %85 = vector.shape_cast %84 : vector<24x1x6xf32> to vector<24x6xf32>
    %86 = vector.shape_cast %83 : vector<24x6xf32> to vector<24x1x6xf32>
    tpu.vector_store %arg8[%c0_60, %c3_61, %c0_62], %86 {strides = array<i32>} : memref<24x8x6xf32, #tpu.memory_space<vmem>>, vector<24x1x6xf32>,
    %87 = vector.extract_strided_slice %70 {offsets = [0, 24], sizes = [24, 6], strides = [1, 1]} : vector<24x48xf32> to vector<24x6xf32>
    %c0_63 = arith.constant 0 : index
    %c4_64 = arith.constant 4 : index
    %c0_65 = arith.constant 0 : index
    %88 = vector.load %arg8[%c0_63, %c4_64, %c0_65] : memref<24x8x6xf32, #tpu.memory_space<vmem>>, vector<24x1x6xf32>
    %89 = vector.shape_cast %88 : vector<24x1x6xf32> to vector<24x6xf32>
    %90 = vector.shape_cast %87 : vector<24x6xf32> to vector<24x1x6xf32>
    tpu.vector_store %arg8[%c0_63, %c4_64, %c0_65], %90 {strides = array<i32>} : memref<24x8x6xf32, #tpu.memory_space<vmem>>, vector<24x1x6xf32>,
    %91 = vector.extract_strided_slice %70 {offsets = [0, 30], sizes = [24, 6], strides = [1, 1]} : vector<24x48xf32> to vector<24x6xf32>
    %c0_66 = arith.constant 0 : index
    %c5_67 = arith.constant 5 : index
    %c0_68 = arith.constant 0 : index
    %92 = vector.load %arg8[%c0_66, %c5_67, %c0_68] : memref<24x8x6xf32, #tpu.memory_space<vmem>>, vector<24x1x6xf32>
    %93 = vector.shape_cast %92 : vector<24x1x6xf32> to vector<24x6xf32>
    %94 = vector.shape_cast %91 : vector<24x6xf32> to vector<24x1x6xf32>
    tpu.vector_store %arg8[%c0_66, %c5_67, %c0_68], %94 {strides = array<i32>} : memref<24x8x6xf32, #tpu.memory_space<vmem>>, vector<24x1x6xf32>,
    %95 = vector.extract_strided_slice %70 {offsets = [0, 36], sizes = [24, 6], strides = [1, 1]} : vector<24x48xf32> to vector<24x6xf32>
    %c0_69 = arith.constant 0 : index
    %c6_70 = arith.constant 6 : index
    %c0_71 = arith.constant 0 : index
    %96 = vector.load %arg8[%c0_69, %c6_70, %c0_71] : memref<24x8x6xf32, #tpu.memory_space<vmem>>, vector<24x1x6xf32>
    %97 = vector.shape_cast %96 : vector<24x1x6xf32> to vector<24x6xf32>
    %98 = vector.shape_cast %95 : vector<24x6xf32> to vector<24x1x6xf32>
    tpu.vector_store %arg8[%c0_69, %c6_70, %c0_71], %98 {strides = array<i32>} : memref<24x8x6xf32, #tpu.memory_space<vmem>>, vector<24x1x6xf32>,
    %99 = vector.extract_strided_slice %70 {offsets = [0, 42], sizes = [24, 6], strides = [1, 1]} : vector<24x48xf32> to vector<24x6xf32>
    %c0_72 = arith.constant 0 : index
    %c7_73 = arith.constant 7 : index
    %c0_74 = arith.constant 0 : index
    %100 = vector.load %arg8[%c0_72, %c7_73, %c0_74] : memref<24x8x6xf32, #tpu.memory_space<vmem>>, vector<24x1x6xf32>
    %101 = vector.shape_cast %100 : vector<24x1x6xf32> to vector<24x6xf32>
    %102 = vector.shape_cast %99 : vector<24x6xf32> to vector<24x1x6xf32>
    tpu.vector_store %arg8[%c0_72, %c7_73, %c0_74], %102 {strides = array<i32>} : memref<24x8x6xf32, #tpu.memory_space<vmem>>, vector<24x1x6xf32>,
    %c0_75 = arith.constant 0 : index
    %c0_76 = arith.constant 0 : index
    %c0_77 = arith.constant 0 : index
    %103 = vector.load %arg8[%c0_75, %c0_76, %c0_77] : memref<24x8x6xf32, #tpu.memory_space<vmem>>, vector<8x8x6xf32>
    %c8_78 = arith.constant 8 : index
    %c0_79 = arith.constant 0 : index
    %c0_80 = arith.constant 0 : index
    %104 = vector.load %arg8[%c8_78, %c0_79, %c0_80] : memref<24x8x6xf32, #tpu.memory_space<vmem>>, vector<8x8x6xf32>
    %c16_81 = arith.constant 16 : index
    %c0_82 = arith.constant 0 : index
    %c0_83 = arith.constant 0 : index
    %105 = vector.load %arg8[%c16_81, %c0_82, %c0_83] : memref<24x8x6xf32, #tpu.memory_space<vmem>>, vector<8x8x6xf32>
    %cst_84 = arith.constant dense<0.000000e+00> : vector<8x8x8xf32>
    %106 = tpu.matmul %103, %104, %cst_84 {dimension_numbers = #tpu.dot_dimension_numbers<[2], [2], [1], [1], [0, 0, 0, 1, 1, 1], [0], [0]>} : vector<8x8x6xf32>, vector<8x8x6xf32>, vector<8x8x8xf32> -> vector<8x8x8xf32>
    %c1_85 = arith.constant 1 : index
    %c0_86 = arith.constant 0 : index
    %c0_87 = arith.constant 0 : index
    %107 = vector.load %arg3[%c1_85, %c0_86, %c0_87] : memref<2x8x8xf32, #tpu.memory_space<vmem>>, vector<1x8x8xf32>
    %108 = vector.shape_cast %107 : vector<1x8x8xf32> to vector<8x8xf32>
    %109 = vector.shape_cast %108 : vector<8x8xf32> to vector<1x8x8xf32>
    %110 = vector.broadcast %109 : vector<1x8x8xf32> to vector<8x8x8xf32>
    %111 = arith.addf %106, %110 : vector<8x8x8xf32>
    %cst_88 = arith.constant dense<0xFF800000> : vector<8x8xf32>
    %112 = vector.multi_reduction <maximumf>, %111, %cst_88 [2] : vector<8x8x8xf32> to vector<8x8xf32>
    %113 = vector.shape_cast %112 : vector<8x8xf32> to vector<8x8x1xf32>
    %114 = vector.broadcast %113 : vector<8x8x1xf32> to vector<8x8x8xf32>
    %115 = arith.subf %111, %114 : vector<8x8x8xf32>
    %116 = math.exp %115 : vector<8x8x8xf32>
    %cst_89 = arith.constant dense<0.000000e+00> : vector<8x8xf32>
    %117 = vector.multi_reduction <add>, %116, %cst_89 [2] : vector<8x8x8xf32> to vector<8x8xf32>
    %118 = vector.shape_cast %117 : vector<8x8xf32> to vector<8x8x1xf32>
    %119 = tpu.reciprocal %118 : vector<8x8x1xf32> -> vector<8x8x1xf32>
    %120 = vector.broadcast %119 : vector<8x8x1xf32> to vector<8x8x8xf32>
    %121 = arith.mulf %116, %120 : vector<8x8x8xf32>
    %cst_90 = arith.constant dense<0.000000e+00> : vector<8x8x6xf32>
    %122 = tpu.matmul %121, %105, %cst_90 {dimension_numbers = #tpu.dot_dimension_numbers<[2], [1], [1], [2], [0, 0, 0, 1, 1, 2], [0], [0]>} : vector<8x8x8xf32>, vector<8x8x6xf32>, vector<8x8x6xf32> -> vector<8x8x6xf32>
    %123 = vector.shape_cast %122 : vector<8x8x6xf32> to vector<64x6xf32>
    %cst_91 = arith.constant dense<0.000000e+00> : vector<64x8xf32>
    %124 = tpu.matmul %123, %1, %cst_91 {dimension_numbers = #tpu.dot_dimension_numbers<[1], [0], [0], [1], [0, 0, 1, 1], [], []>} : vector<64x6xf32>, vector<6x8xf32>, vector<64x8xf32> -> vector<64x8xf32>
    %c1_92 = arith.constant 1 : index
    %c0_93 = arith.constant 0 : index
    %c0_94 = arith.constant 0 : index
    %125 = vector.load %arg2[%c1_92, %c0_93, %c0_94] : memref<2x64x5xf32, #tpu.memory_space<vmem>>, vector<1x64x5xf32>
    %126 = vector.shape_cast %125 : vector<1x64x5xf32> to vector<64x5xf32>
    %cst_95 = arith.constant dense<0.000000e+00> : vector<64x8xf32>
    %127 = tpu.matmul %126, %2, %cst_95 {dimension_numbers = #tpu.dot_dimension_numbers<[1], [0], [0], [1], [0, 0, 1, 1], [], []>} : vector<64x5xf32>, vector<5x8xf32>, vector<64x8xf32> -> vector<64x8xf32>
    %128 = arith.addf %124, %127 : vector<64x8xf32>
    %129 = tpu.transpose %128, [1, 0] : vector<64x8xf32> -> vector<8x64xf32>
    %c1_96 = arith.constant 1 : index
    %c0_97 = arith.constant 0 : index
    %c0_98 = arith.constant 0 : index
    %130 = vector.load %arg7[%c1_96, %c0_97, %c0_98] : memref<2x8x64xf32, #tpu.memory_space<vmem>>, vector<1x8x64xf32>
    %131 = vector.shape_cast %130 : vector<1x8x64xf32> to vector<8x64xf32>
    %132 = vector.shape_cast %129 : vector<8x64xf32> to vector<1x8x64xf32>
    tpu.vector_store %arg7[%c1_96, %c0_97, %c0_98], %132 {strides = array<i32>} : memref<2x8x64xf32, #tpu.memory_space<vmem>>, vector<1x8x64xf32>,
    return
  }
  func.func @transform_0(%arg0: i32) -> (i32, i32, i32) {
    %c0_i32 = arith.constant 0 : i32
    %c0_i32_0 = arith.constant 0 : i32
    %c0_i32_1 = arith.constant 0 : i32
    return %arg0, %c0_i32, %c0_i32_0 : i32, i32, i32
  }
  func.func @transform_1(%arg0: i32) -> (i32, i32, i32) {
    %c0_i32 = arith.constant 0 : i32
    %c0_i32_0 = arith.constant 0 : i32
    %c0_i32_1 = arith.constant 0 : i32
    return %arg0, %c0_i32, %c0_i32_0 : i32, i32, i32
  }
  func.func @transform_2(%arg0: i32) -> (i32, i32, i32) {
    %c0_i32 = arith.constant 0 : i32
    %c0_i32_0 = arith.constant 0 : i32
    %c0_i32_1 = arith.constant 0 : i32
    return %arg0, %c0_i32, %c0_i32_0 : i32, i32, i32
  }
  func.func @transform_3(%arg0: i32) -> (i32, i32) {
    %c0_i32 = arith.constant 0 : i32
    %c0_i32_0 = arith.constant 0 : i32
    %c0_i32_1 = arith.constant 0 : i32
    return %c0_i32, %c0_i32_0 : i32, i32
  }
  func.func @transform_4(%arg0: i32) -> (i32, i32) {
    %c0_i32 = arith.constant 0 : i32
    %c0_i32_0 = arith.constant 0 : i32
    %c0_i32_1 = arith.constant 0 : i32
    return %c0_i32, %c0_i32_0 : i32, i32
  }
  func.func @transform_5(%arg0: i32) -> (i32, i32) {
    %c0_i32 = arith.constant 0 : i32
    %c0_i32_0 = arith.constant 0 : i32
    %c0_i32_1 = arith.constant 0 : i32
    return %c0_i32, %c0_i32_0 : i32, i32
  }
  func.func @transform_6(%arg0: i32) -> (i32, i32, i32) {
    %c0_i32 = arith.constant 0 : i32
    %c0_i32_0 = arith.constant 0 : i32
    %c0_i32_1 = arith.constant 0 : i32
    return %arg0, %c0_i32, %c0_i32_0 : i32, i32, i32
  }
}

</mosaic_0001>

<bundles_post_ra>
// kernel: _lambda_.1
= control target key start
LH: loop header
LB: loop body
LE: loop exit
PB: predicated region body
PF: predicated region fallthrough
CT: control target
= control target key end

     0   :  { %s6372_s21 = smov 0   ;;  %s7926_s0 = inlined_call_operand.vmem [shape: f32[4,13,48], index: 0, kind: input, shape index: {}]   ;;  %s7927_s1 = inlined_call_operand.vmem [shape: f32[4,64,5], index: 1, kind: input, shape index: {}]   ;;  %s7928_s2 = inlined_call_operand.vmem [shape: f32[4,8,8], index: 2, kind: input, shape index: {}]   ;;  %s7929_s3 = inlined_call_operand.vmem [shape: f32[24,13], index: 3, kind: input, shape index: {}]   ;;  %s7930_s4 = inlined_call_operand.vmem [shape: f32[6,8], index: 4, kind: input, shape index: {}]   ;;  %s7931_s5 = inlined_call_operand.vmem [shape: f32[5,8], index: 5, kind: input, shape index: {}]   ;;  %s7932_s6 = inlined_call_operand.vmem [shape: f32[4,8,64], index: 6, kind: output, shape index: {}]  }
   0x1 LB: > { %s5729_s22 = sadd.s32 4294967295, %s6323_s21   ;;  %p5733_p0 = scmp.ge.s32.totalorder %s6323_s21, 1  ;;  %s6323_s21 = sphi %s6372_s21, %s16_s21  }
   0x2   : > { %p237_p1 = scmp.lt.s32.totalorder %s6323_s21, 3 }
   0x4   : > { %p238_p2 = pnand %p5733_p0, %p237_p1 }
   0x5   : > { %s5734_s23 = sshll.u32 (!%p238_p2), %s5729_s22, 1  ;;  %v6325_v0 = vmov (!%p238_p2), 0.0|0.0   ;;  %vm6326_vm0 = vmmov (!%p238_p2), 0   ;;  %v6327_v1 = vmov (!%p238_p2), 0.0   ;;  %vm322_vm1 = vcmask (!%p238_p2), 1044480   ;;  %v305_v6 = vld [vmem:[%s7929_s3] sm:$0xff] (!%p238_p2) }
   0x6   : > { %241 = sbr.rel (%p238_p2) target bundleno = 2695 (0xa87), region = 44  ;;  %6204 = vmatprep.subr.bf16.mxu0 (!%p238_p2), %v6325_v0  ;;  %p280_p3 = scmp.lt.s32.totalorder (!%p238_p2), %s5734_s23, 3  ;;  %5966 = vmatprep.mubr.msk.f32.mxu0 (!%p238_p2), %vm6326_vm0, %v6327_v1  ;;  %vm6328_vm2 = vmmov (!%p238_p2), 1   ;;  %vm312_vm4 = vcmask (!%p238_p2), 105472   ;;  %v306_v7 = vld [vmem:[%s7929_s3 + $0x8] sm:$0xff] (!%p238_p2)  ;;  %v307_v8 = vld [vmem:[%s7929_s3 + $0x10] sm:$0xff] (!%p238_p2)  ;;  %v413_v11 = vlaneseq (!%p238_p2) }
   0x7   : > { %5975 = vmatprep.subr.mxu1 (!%p238_p2), %v6327_v1  ;;  %5977 = vmatprep.mubr.msk.f32.mxu1 (!%p238_p2), %vm6326_vm0, %v6327_v1  ;;  %vm6397_vm3 = vmpackc.low (!%p238_p2), %vm322_vm1, %vm6328_vm2  ;;  %v6329_v9 = vmov (!%p238_p2), 1966171168   ;;  %vm580_vm5 = vcmask (!%p238_p2), 40960   ;;  %s6330_s10 = smov (!%p238_p2), 116   ;;  %s6331_s11 = smov (!%p238_p2), 122   ;;  %vm1400_vm6 = vcmask (!%p238_p2), 48128  }
   0x8   : > { %v411_v10 = vunpack.c.l.s4 (!%p238_p2), %v6329_v9  ;;  %v414_v13 = vshrl.u32 (!%p238_p2), %v413_v11, 7  ;;  %s6332_s12 = smov (!%p238_p2), 104   ;;  %s6333_s13 = smov (!%p238_p2), 110   ;;  %vm2009_vm7 = vcmask (!%p238_p2), 64512   ;;  %v6313_v4 = vld [vmem:[%s7929_s3 + $0x8] sm:$0xff] (!%p238_p2)  ;;  %vm2690_vm8 = vcmask (!%p238_p2), 39936  }
   0x9   : > { %s6334_s14 = smov (!%p238_p2), 92   ;;  %s6335_s15 = smov (!%p238_p2), 98   ;;  %vm2847_vm9 = vcmask (!%p238_p2), 1045504   ;;  %vm2988_vm10 = vcmask (!%p238_p2), 523264  }
   0xa   : > { %v412_v12 = vunpack.c.0.s8 (!%p238_p2), %v411_v10  ;;  %v6425_v19 = vsub.s32 (!%p238_p2), 0, %v414_v13  ;;  %s6336_s16 = smov (!%p238_p2), 86  }
   0xc   : > { %v6422_v14 = vsub.s32 (!%p238_p2), %v412_v12, %v414_v13 }
   0xd   : > { %s7936_s23 = smov (!%p280_p3, %s5734_s23), 3 }
   0xe   : > { %s5850_s24 = sshll.u32 %s7936_s23, 4  ;;  %s5741_s17 = sshll.u32 %s7936_s23, 3 }
   0xf   : > { %s6392_s27 = scalar_lea.vmem %s7926_s0, %s5850_s24  ;;  %s6902_s20 = scalar_lea.vmem %s7928_s2, %s5741_s17 }
  0x10   : > { %v310_v2 = vld [vmem:[%s6392_s27] sm:$0xff]  ;;  %v311_v3 = vld [vmem:[%s6392_s27 + $0x8] sm:$0x1f]  ;;  %s5851_s29 = sshll.u32 %s7936_s23, 6 }
  0x11   : > { %v6205_v5 = vpack.c.bf16 %v311_v3, %v310_v2  ;;  %s7138_s8 = scalar_lea.vmem %s7927_s1, %s5851_s29 }
  0x13   : > { %6207 = vmatpush3.bf16.msk.msra.mxu0 %vm6397_vm3, %v6205_v5 }
  0x14   : > { %5990 = vmatprep.subr.mxu0 %v6327_v1 }
  0x16   : > { %5967 = vmatmul.mubr.msk.f32.vlgmr.msra.gmra.mrb[0].mxu0 %vm312_vm4, %v305_v6 }
  0x17   : > { %5969 = vmatprep.mubr.msk.f32.mxu0 %vm6326_vm0, %v6327_v1 }
  0x1a   : > { %5970 = vmatmul.mubr.msk.f32.gmra.mrb[2].mxu0 %vm312_vm4, %v306_v7 }
  0x1b   : > { %5972 = vmatprep.mubr.msk.f32.mxu0 %vm6326_vm0, %v6327_v1 }
  0x1e   : > { %5973 = vmatmul.mubr.msk.f32.gmra.mrb[4].mxu0 %vm312_vm4, %v307_v8 }
  0x1f   : > { %5992 = vmatprep.mubr.msk.f32.mxu0 %vm6326_vm0, %v6327_v1 }
  0xe9   : > { %v392_v15 = vpop.f32.mrb[0].mxu0 }
  0xea   : > { %v409_v16 = vcombine.high %v392_v15, %v392_v15  ;;  %v416_v17 = vrot.slane %v392_v15, %v6422_v14  ;;  %v5968_v18 = vpop.f32.mrb[1].mxu0 }
  0xec   : > { %v423_v20 = vrot.slane %v409_v16, %v6422_v14  ;;  %v424_v21 = vcombine.high %v416_v17, %v416_v17  ;;  %v432_v22 = vrot.slane %v416_v17, %v6422_v14 }
  0xed   : > { %v397_v23 = vpop.f32.mrb[2].mxu0 }
  0xee   : > { %v425_v24 = vcombine.high %v423_v20, %v423_v20  ;;  %v6430_v25 = vrot.slane %v423_v20, %v6422_v14  ;;  %v446_v26 = vrot.slane %v424_v21, %v6422_v14  ;;  %v6433_v27 = vcombine.high %v432_v22, %v432_v22  ;;  %581 = vst.msk [vmem:[#allocation2] sm:$0x1] %vm580_vm5, %v432_v22  ;;  %v5971_v28 = vpop.f32.mrb[3].mxu0 }
  0xef   : > { %v608_v29 = vrot.slane %v432_v22, %v6425_v19  ;;  %v458_v30 = vcombine.high %v397_v23, %v397_v23  ;;  %v465_v31 = vrot.slane %v397_v23, %v6422_v14 }
  0xf0   : > { %v6439_v32 = vrot.slane %v425_v24, %v6422_v14  ;;  %v6443_v33 = vcombine.high %v6430_v25, %v6430_v25  ;;  %v456_v34 = vcombine.high %v446_v26, %v446_v26  ;;  %582 = vst.msk [vmem:[#allocation2 + $0x8] sm:$0x1] %vm580_vm5, %v446_v26  ;;  %583 = vst.msk [vmem:[#allocation2 + $0x10] sm:$0x1] %vm580_vm5, %v6433_v27 }
  0xf1   : > { %585 = vst.msk [vmem:[#allocation2 + $0x20] sm:$0x1] %vm580_vm5, %v6430_v25  ;;  %797 = vrot.lane.b32.xlu0 %v608_v29, %s6330_s10  ;;  %701 = vrot.lane.b32.xlu1 %v608_v29, %s6331_s11  ;;  %v472_v35 = vrot.slane %v458_v30, %v6422_v14  ;;  %v473_v37 = vcombine.high %v465_v31, %v465_v31  ;;  %v402_v54 = vpop.f32.mrb[4].mxu0 }
  0xf2   : > { %v6455_v36 = vcombine.high %v6439_v32, %v6439_v32  ;;  %584 = vst.msk [vmem:[#allocation2 + $0x18] sm:$0x1] %vm580_vm5, %v456_v34  ;;  %586 = vst.msk [vmem:[#allocation2 + $0x28] sm:$0x1] %vm580_vm5, %v6439_v32  ;;  %v481_v39 = vrot.slane %v465_v31, %v6422_v14  ;;  %v612_v47 = vrot.slane %v446_v26, %v6425_v19  ;;  %v5974_v57 = vpop.f32.mrb[5].mxu0 }
  0xf3   : > { %587 = vst.msk [vmem:[#allocation2 + $0x30] sm:$0x1] %vm580_vm5, %v6443_v33  ;;  %v474_v38 = vcombine.high %v472_v35, %v472_v35  ;;  %v6464_v40 = vrot.slane %v472_v35, %v6422_v14  ;;  %v495_v41 = vrot.slane %v473_v37, %v6422_v14  ;;  %v620_v49 = vrot.slane %v456_v34, %v6425_v19 }
  0xf4   : > { %588 = vst.msk [vmem:[#allocation2 + $0x38] sm:$0x1] %vm580_vm5, %v6455_v36  ;;  %v6474_v43 = vcombine.high %v481_v39, %v481_v39  ;;  %589 = vst.msk [vmem:[#allocation2 + $0x40] sm:$0x1] %vm580_vm5, %v481_v39  ;;  %v640_v48 = vrot.slane %v481_v39, %v6425_v19  ;;  %v628_v50 = vrot.slane %v6439_v32, %v6425_v19 }
  0xf5   : > { %989 = vrot.lane.b32.xlu0 %v608_v29, %s6332_s12  ;;  %893 = vrot.lane.b32.xlu1 %v608_v29, %s6333_s13  ;;  %v6472_v42 = vrot.slane %v474_v38, %v6422_v14  ;;  %593 = vst.msk [vmem:[#allocation2 + $0x60] sm:$0x1] %vm580_vm5, %v6464_v40  ;;  %v6481_v44 = vcombine.high %v6464_v40, %v6464_v40  ;;  %590 = vst.msk [vmem:[#allocation2 + $0x48] sm:$0x1] %vm580_vm5, %v495_v41 }
  0xf6   : > { %v505_v45 = vcombine.high %v495_v41, %v495_v41  ;;  %591 = vst.msk [vmem:[#allocation2 + $0x50] sm:$0x1] %vm580_vm5, %v6474_v43  ;;  %v644_v51 = vrot.slane %v495_v41, %v6425_v19  ;;  %v6541_v52 = vrot.slane %v6455_v36, %v6425_v19  ;;  %v507_v55 = vcombine.high %v402_v54, %v402_v54 }
  0xf7   : > { %v6485_v46 = vcombine.high %v6472_v42, %v6472_v42  ;;  %594 = vst.msk [vmem:[#allocation2 + $0x68] sm:$0x1] %vm580_vm5, %v6472_v42  ;;  %595 = vst.msk [vmem:[#allocation2 + $0x70] sm:$0x1] %vm580_vm5, %v6481_v44  ;;  %v514_v56 = vrot.slane %v402_v54, %v6422_v14  ;;  %v660_v8 = vrot.slane %v6472_v42, %v6425_v19 }
  0xf8   : > { %592 = vst.msk [vmem:[#allocation2 + $0x58] sm:$0x1] %vm580_vm5, %v505_v45  ;;  %v652_v53 = vrot.slane %v505_v45, %v6425_v19  ;;  %v521_v58 = vrot.slane %v507_v55, %v6422_v14  ;;  %v648_v24 = vrot.slane %v6474_v43, %v6425_v19  ;;  %v616_v34 = vrot.slane %v6433_v27, %v6425_v19 }
  0xf9   : > { %1181 = vrot.lane.b32.xlu0 %v608_v29, %s6334_s14  ;;  %1085 = vrot.lane.b32.xlu1 %v608_v29, %s6335_s15  ;;  %596 = vst.msk [vmem:[#allocation2 + $0x78] sm:$0x1] %vm580_vm5, %v6485_v46  ;;  %v522_v59 = vcombine.high %v514_v56, %v514_v56  ;;  %v6556_v60 = vrot.slane %v514_v56, %v6422_v14 }
  0xfa   : > { %v523_v61 = vcombine.high %v521_v58, %v521_v58  ;;  %v6562_v62 = vrot.slane %v521_v58, %v6422_v14  ;;  %v668_v11 = vrot.slane %v6485_v46, %v6425_v19  ;;  %v656_v46 = vrot.slane %v6464_v40, %v6425_v19 }
  0xfb   : > { %v6565_v63 = vrot.slane %v522_v59, %v6422_v14  ;;  %597 = vst.msk [vmem:[#allocation2 + $0x80] sm:$0x1] %vm580_vm5, %v6556_v60  ;;  %v6571_v2 = vcombine.high %v6556_v60, %v6556_v60 }
  0xfc   : > { %v6574_v3 = vrot.slane %v523_v61, %v6422_v14  ;;  %v6578_v5 = vcombine.high %v6562_v62, %v6562_v62  ;;  %601 = vst.msk [vmem:[#allocation2 + $0xa0] sm:$0x1] %vm580_vm5, %v6562_v62  ;;  %v664_v61 = vrot.slane %v6481_v44, %v6425_v19 }
  0xfd   : > { %1277 = vrot.lane.b32.xlu1 %v608_v29, %s6336_s16  ;;  %799 = vrot.lane.b32.xlu0 %v612_v47, %s6330_s10  ;;  %v6582_v6 = vcombine.high %v6565_v63, %v6565_v63  ;;  %598 = vst.msk [vmem:[#allocation2 + $0x88] sm:$0x1] %vm580_vm5, %v6565_v63  ;;  %599 = vst.msk [vmem:[#allocation2 + $0x90] sm:$0x1] %vm580_vm5, %v6571_v2 }
  0xfe   : > { %v6595_v7 = vcombine.high %v6574_v3, %v6574_v3  ;;  %602 = vst.msk [vmem:[#allocation2 + $0xa8] sm:$0x1] %vm580_vm5, %v6574_v3  ;;  %603 = vst.msk [vmem:[#allocation2 + $0xb0] sm:$0x1] %vm580_vm5, %v6578_v5 }
  0xff   : > { %600 = vst.msk [vmem:[#allocation2 + $0x98] sm:$0x1] %vm580_vm5, %v6582_v6 }
 0x100   : > { %604 = vst.msk [vmem:[#allocation2 + $0xb8] sm:$0x1] %vm580_vm5, %v6595_v7 }
 0x101   : > { %991 = vrot.lane.b32.xlu0 %v612_v47, %s6332_s12  ;;  %703 = vrot.lane.b32.xlu1 %v612_v47, %s6331_s11 }
 0x105   : > { %1183 = vrot.lane.b32.xlu0 %v612_v47, %s6334_s14  ;;  %895 = vrot.lane.b32.xlu1 %v612_v47, %s6333_s13 }
 0x109   : > { %1087 = vrot.lane.b32.xlu1 %v612_v47, %s6335_s15  ;;  %717 = vrot.lane.b32.xlu0 %v640_v48, %s6331_s11 }
 0x10d   : > { %1279 = vrot.lane.b32.xlu1 %v612_v47, %s6336_s16  ;;  %813 = vrot.lane.b32.xlu0 %v640_v48, %s6330_s10 }
 0x111   : > { %909 = vrot.lane.b32.xlu1 %v640_v48, %s6333_s13  ;;  %1101 = vrot.lane.b32.xlu0 %v640_v48, %s6335_s15 }
 0x115   : > { %1005 = vrot.lane.b32.xlu1 %v640_v48, %s6332_s12  ;;  %1293 = vrot.lane.b32.xlu0 %v640_v48, %s6336_s16 }
 0x119   : > { %1197 = vrot.lane.b32.xlu1 %v640_v48, %s6334_s14  ;;  %803 = vrot.lane.b32.xlu0 %v620_v49, %s6330_s10 }
 0x11d   : > { %707 = vrot.lane.b32.xlu1 %v620_v49, %s6331_s11  ;;  %995 = vrot.lane.b32.xlu0 %v620_v49, %s6332_s12 }
 0x121   : > { %899 = vrot.lane.b32.xlu1 %v620_v49, %s6333_s13  ;;  %1187 = vrot.lane.b32.xlu0 %v620_v49, %s6334_s14 }
 0x125   : > { %1091 = vrot.lane.b32.xlu1 %v620_v49, %s6335_s15  ;;  %807 = vrot.lane.b32.xlu0 %v628_v50, %s6330_s10 }
 0x129   : > { %1283 = vrot.lane.b32.xlu1 %v620_v49, %s6336_s16  ;;  %999 = vrot.lane.b32.xlu0 %v628_v50, %s6332_s12 }
 0x12d   : > { %711 = vrot.lane.b32.xlu1 %v628_v50, %s6331_s11  ;;  %1191 = vrot.lane.b32.xlu0 %v628_v50, %s6334_s14 }
 0x131   : > { %903 = vrot.lane.b32.xlu1 %v628_v50, %s6333_s13  ;;  %719 = vrot.lane.b32.xlu0 %v644_v51, %s6331_s11 }
 0x135   : > { %1095 = vrot.lane.b32.xlu1 %v628_v50, %s6335_s15  ;;  %911 = vrot.lane.b32.xlu0 %v644_v51, %s6333_s13 }
 0x139   : > { %1287 = vrot.lane.b32.xlu1 %v628_v50, %s6336_s16  ;;  %1103 = vrot.lane.b32.xlu0 %v644_v51, %s6335_s15 }
 0x13d   : > { %815 = vrot.lane.b32.xlu1 %v644_v51, %s6330_s10  ;;  %1295 = vrot.lane.b32.xlu0 %v644_v51, %s6336_s16 }
 0x141   : > { %1007 = vrot.lane.b32.xlu1 %v644_v51, %s6332_s12  ;;  %811 = vrot.lane.b32.xlu0 %v6541_v52, %s6330_s10 }
 0x145   : > { %1199 = vrot.lane.b32.xlu1 %v644_v51, %s6334_s14  ;;  %1003 = vrot.lane.b32.xlu0 %v6541_v52, %s6332_s12 }
 0x149   : > { %715 = vrot.lane.b32.xlu1 %v6541_v52, %s6331_s11  ;;  %723 = vrot.lane.b32.xlu0 %v652_v53, %s6331_s11 }
 0x14d   : > { %907 = vrot.lane.b32.xlu1 %v6541_v52, %s6333_s13  ;;  %915 = vrot.lane.b32.xlu0 %v652_v53, %s6333_s13 }
 0x151   : > { %1099 = vrot.lane.b32.xlu1 %v6541_v52, %s6335_s15  ;;  %1107 = vrot.lane.b32.xlu0 %v652_v53, %s6335_s15 }
 0x155   : > { %819 = vrot.lane.b32.xlu1 %v652_v53, %s6330_s10  ;;  %1299 = vrot.lane.b32.xlu0 %v652_v53, %s6336_s16 }
 0x159   : > { %1011 = vrot.lane.b32.xlu1 %v652_v53, %s6332_s12  ;;  %727 = vrot.lane.b32.xlu0 %v660_v8, %s6331_s11 }
 0x15d   : > { %1203 = vrot.lane.b32.xlu1 %v652_v53, %s6334_s14  ;;  %919 = vrot.lane.b32.xlu0 %v660_v8, %s6333_s13 }
 0x161   : > { %823 = vrot.lane.b32.xlu1 %v660_v8, %s6330_s10  ;;  %1111 = vrot.lane.b32.xlu0 %v660_v8, %s6335_s15 }
 0x163   : > { %v798_v9 = vpop.permute.xlu0 %797  ;;  %v702_v10 = vpop.permute.xlu1 %701 }
 0x164   : > { %869 = vst.msk [vmem:[#allocation2 + $0x2] sm:$0x1] %vm580_vm5, %v798_v9  ;;  %773 = vst.msk [vmem:[#allocation2 + $0x1] sm:$0x1] %vm580_vm5, %v702_v10 }
 0x165   : > { %1015 = vrot.lane.b32.xlu1 %v660_v8, %s6332_s12  ;;  %1303 = vrot.lane.b32.xlu0 %v660_v8, %s6336_s16 }
 0x167   : > { %v990_v12 = vpop.permute.xlu0 %989  ;;  %v894_v13 = vpop.permute.xlu1 %893 }
 0x168   : > { %1061 = vst.msk [vmem:[#allocation2 + $0x4] sm:$0x1] %vm580_vm5, %v990_v12  ;;  %965 = vst.msk [vmem:[#allocation2 + $0x3] sm:$0x1] %vm580_vm5, %v894_v13  ;;  %v632_v13 = vrot.slane %v6443_v33, %v6425_v19 }
 0x169   : > { %1207 = vrot.lane.b32.xlu1 %v660_v8, %s6334_s14  ;;  %731 = vrot.lane.b32.xlu0 %v668_v11, %s6331_s11 }
 0x16b   : > { %v1182_v15 = vpop.permute.xlu0 %1181  ;;  %v1086_v16 = vpop.permute.xlu1 %1085 }
 0x16c   : > { %1253 = vst.msk [vmem:[#allocation2 + $0x6] sm:$0x1] %vm580_vm5, %v1182_v15  ;;  %1157 = vst.msk [vmem:[#allocation2 + $0x5] sm:$0x1] %vm580_vm5, %v1086_v16 }
 0x16d   : > { %827 = vrot.lane.b32.xlu1 %v668_v11, %s6330_s10  ;;  %923 = vrot.lane.b32.xlu0 %v668_v11, %s6333_s13 }
 0x16f   : > { %v1278_v17 = vpop.permute.xlu1 %1277  ;;  %v800_v18 = vpop.permute.xlu0 %799 }
 0x170   : > { %1349 = vst.msk [vmem:[#allocation2 + $0x7] sm:$0x1] %vm580_vm5, %v1278_v17  ;;  %870 = vst.msk [vmem:[#allocation2 + $0xa] sm:$0x1] %vm580_vm5, %v800_v18 }
 0x171   : > { %1019 = vrot.lane.b32.xlu1 %v668_v11, %s6332_s12  ;;  %1115 = vrot.lane.b32.xlu0 %v668_v11, %s6335_s15 }
 0x173   : > { %v992_v20 = vpop.permute.xlu0 %991  ;;  %v704_v21 = vpop.permute.xlu1 %703 }
 0x174   : > { %1062 = vst.msk [vmem:[#allocation2 + $0xc] sm:$0x1] %vm580_vm5, %v992_v20  ;;  %774 = vst.msk [vmem:[#allocation2 + $0x9] sm:$0x1] %vm580_vm5, %v704_v21 }
 0x175   : > { %1211 = vrot.lane.b32.xlu1 %v668_v11, %s6334_s14  ;;  %1307 = vrot.lane.b32.xlu0 %v668_v11, %s6336_s16 }
 0x177   : > { %v1184_v22 = vpop.permute.xlu0 %1183  ;;  %v896_v23 = vpop.permute.xlu1 %895  ;;  %v1373_v45 = vld [vmem:[#allocation2] sm:$0xff] }
 0x178   : > { %1254 = vst.msk [vmem:[#allocation2 + $0xe] sm:$0x1] %vm580_vm5, %v1184_v22  ;;  %966 = vst.msk [vmem:[#allocation2 + $0xb] sm:$0x1] %vm580_vm5, %v896_v23 }
 0x179   : > { %1291 = vrot.lane.b32.xlu1 %v6541_v52, %s6336_s16  ;;  %1195 = vrot.lane.b32.xlu0 %v6541_v52, %s6334_s14  ;;  %v624_v52 = vrot.slane %v6430_v25, %v6425_v19 }
 0x17b   : > { %v1088_v26 = vpop.permute.xlu1 %1087  ;;  %v718_v28 = vpop.permute.xlu0 %717 }
 0x17c   : > { %1158 = vst.msk [vmem:[#allocation2 + $0xd] sm:$0x1] %vm580_vm5, %v1088_v26  ;;  %781 = vst.msk [vmem:[#allocation2 + $0x41] sm:$0x1] %vm580_vm5, %v718_v28  ;;  %v676_v26 = vrot.slane %v6565_v63, %v6425_v19 }
 0x17d   : > { %817 = vrot.lane.b32.xlu1 %v648_v24, %s6330_s10  ;;  %721 = vrot.lane.b32.xlu0 %v648_v24, %s6331_s11 }
 0x17f   : > { %v1280_v29 = vpop.permute.xlu1 %1279  ;;  %v814_v30 = vpop.permute.xlu0 %813 }
 0x180   : > { %1350 = vst.msk [vmem:[#allocation2 + $0xf] sm:$0x1] %vm580_vm5, %v1280_v29  ;;  %877 = vst.msk [vmem:[#allocation2 + $0x42] sm:$0x1] %vm580_vm5, %v814_v30 }
 0x181   : > { %1009 = vrot.lane.b32.xlu1 %v648_v24, %s6332_s12  ;;  %913 = vrot.lane.b32.xlu0 %v648_v24, %s6333_s13 }
 0x183   : > { %v910_v31 = vpop.permute.xlu1 %909  ;;  %v1102_v32 = vpop.permute.xlu0 %1101 }
 0x184   : > { %973 = vst.msk [vmem:[#allocation2 + $0x43] sm:$0x1] %vm580_vm5, %v910_v31  ;;  %1165 = vst.msk [vmem:[#allocation2 + $0x45] sm:$0x1] %vm580_vm5, %v1102_v32 }
 0x185   : > { %1201 = vrot.lane.b32.xlu1 %v648_v24, %s6334_s14  ;;  %1105 = vrot.lane.b32.xlu0 %v648_v24, %s6335_s15 }
 0x187   : > { %v1006_v35 = vpop.permute.xlu1 %1005  ;;  %v1294_v36 = vpop.permute.xlu0 %1293  ;;  %v1374_v18 = vld [vmem:[#allocation2 + $0x8] sm:$0xff] }
 0x188   : > { %1069 = vst.msk [vmem:[#allocation2 + $0x44] sm:$0x1] %vm580_vm5, %v1006_v35  ;;  %1357 = vst.msk [vmem:[#allocation2 + $0x47] sm:$0x1] %vm580_vm5, %v1294_v36  ;;  %v6767_v36 = vrot.slane %v6574_v3, %v6425_v19 }
 0x189   : > { %705 = vrot.lane.b32.xlu1 %v616_v34, %s6331_s11  ;;  %1297 = vrot.lane.b32.xlu0 %v648_v24, %s6336_s16 }
 0x18b   : > { %v1198_v37 = vpop.permute.xlu1 %1197  ;;  %v804_v38 = vpop.permute.xlu0 %803 }
 0x18c   : > { %1261 = vst.msk [vmem:[#allocation2 + $0x46] sm:$0x1] %vm580_vm5, %v1198_v37  ;;  %872 = vst.msk [vmem:[#allocation2 + $0x1a] sm:$0x1] %vm580_vm5, %v804_v38 }
 0x18d   : > { %897 = vrot.lane.b32.xlu1 %v616_v34, %s6333_s13  ;;  %801 = vrot.lane.b32.xlu0 %v616_v34, %s6330_s10 }
 0x18f   : > { %v708_v27 = vpop.permute.xlu1 %707  ;;  %v996_v39 = vpop.permute.xlu0 %995 }
 0x190   : > { %776 = vst.msk [vmem:[#allocation2 + $0x19] sm:$0x1] %vm580_vm5, %v708_v27  ;;  %1064 = vst.msk [vmem:[#allocation2 + $0x1c] sm:$0x1] %vm580_vm5, %v996_v39  ;;  %v684_v27 = vrot.slane %v6582_v6, %v6425_v19  ;;  %v6778_v39 = vrot.slane %v6595_v7, %v6425_v19 }
 0x191   : > { %1089 = vrot.lane.b32.xlu1 %v616_v34, %s6335_s15  ;;  %993 = vrot.lane.b32.xlu0 %v616_v34, %s6332_s12 }
 0x193   : > { %v900_v41 = vpop.permute.xlu1 %899  ;;  %v1188_v42 = vpop.permute.xlu0 %1187  ;;  %v1382_v43 = vld [vmem:[#allocation2 + $0x40] sm:$0xff] }
 0x194   : > { %968 = vst.msk [vmem:[#allocation2 + $0x1b] sm:$0x1] %vm580_vm5, %v900_v41  ;;  %1256 = vst.msk [vmem:[#allocation2 + $0x1e] sm:$0x1] %vm580_vm5, %v1188_v42  ;;  %5976 = vmatpush3.xpose.msk.msra.mxu1 %vm1400_vm6, %v1382_v43 }
 0x195   : > { %1281 = vrot.lane.b32.xlu1 %v616_v34, %s6336_s16  ;;  %1185 = vrot.lane.b32.xlu0 %v616_v34, %s6334_s14 }
 0x196   : > { %5980 = vmatprep.subr.mxu1 %v6327_v1 }
 0x197   : > { %v1092_v47 = vpop.permute.xlu1 %1091  ;;  %v808_v48 = vpop.permute.xlu0 %807  ;;  %5978 = vmatmul.mubr.msk.f32.vlgmr.msra.gmra.mrb[0].mxu1 %vm1400_vm6, %v1373_v45 }
 0x198   : > { %1160 = vst.msk [vmem:[#allocation2 + $0x1d] sm:$0x1] %vm580_vm5, %v1092_v47  ;;  %874 = vst.msk [vmem:[#allocation2 + $0x2a] sm:$0x1] %vm580_vm5, %v808_v48  ;;  %5982 = vmatprep.mubr.msk.f32.mxu1 %vm6326_vm0, %v6327_v1 }
 0x199   : > { %821 = vrot.lane.b32.xlu1 %v656_v46, %s6330_s10  ;;  %725 = vrot.lane.b32.xlu0 %v656_v46, %s6331_s11 }
 0x19b   : > { %v1284_v49 = vpop.permute.xlu1 %1283  ;;  %v1000_v50 = vpop.permute.xlu0 %999 }
 0x19c   : > { %1352 = vst.msk [vmem:[#allocation2 + $0x1f] sm:$0x1] %vm580_vm5, %v1284_v49  ;;  %1066 = vst.msk [vmem:[#allocation2 + $0x2c] sm:$0x1] %vm580_vm5, %v1000_v50 }
 0x19d   : > { %1013 = vrot.lane.b32.xlu1 %v656_v46, %s6332_s12  ;;  %917 = vrot.lane.b32.xlu0 %v656_v46, %s6333_s13 }
 0x19f   : > { %v712_v40 = vpop.permute.xlu1 %711  ;;  %v1192_v51 = vpop.permute.xlu0 %1191 }
 0x1a0   : > { %778 = vst.msk [vmem:[#allocation2 + $0x29] sm:$0x1] %vm580_vm5, %v712_v40  ;;  %1258 = vst.msk [vmem:[#allocation2 + $0x2e] sm:$0x1] %vm580_vm5, %v1192_v51 }
 0x1a1   : > { %1205 = vrot.lane.b32.xlu1 %v656_v46, %s6334_s14  ;;  %1109 = vrot.lane.b32.xlu0 %v656_v46, %s6335_s15 }
 0x1a3   : > { %v904_v53 = vpop.permute.xlu1 %903  ;;  %v720_v54 = vpop.permute.xlu0 %719  ;;  %v1376_v35 = vld [vmem:[#allocation2 + $0x18] sm:$0xff] }
 0x1a4   : > { %970 = vst.msk [vmem:[#allocation2 + $0x2b] sm:$0x1] %vm580_vm5, %v904_v53  ;;  %782 = vst.msk [vmem:[#allocation2 + $0x49] sm:$0x1] %vm580_vm5, %v720_v54 }
 0x1a5   : > { %709 = vrot.lane.b32.xlu1 %v624_v52, %s6331_s11  ;;  %1301 = vrot.lane.b32.xlu0 %v656_v46, %s6336_s16 }
 0x1a7   : > { %v1096_v55 = vpop.permute.xlu1 %1095  ;;  %v912_v56 = vpop.permute.xlu0 %911 }
 0x1a8   : > { %1162 = vst.msk [vmem:[#allocation2 + $0x2d] sm:$0x1] %vm580_vm5, %v1096_v55  ;;  %974 = vst.msk [vmem:[#allocation2 + $0x4b] sm:$0x1] %vm580_vm5, %v912_v56 }
 0x1a9   : > { %901 = vrot.lane.b32.xlu1 %v624_v52, %s6333_s13  ;;  %805 = vrot.lane.b32.xlu0 %v624_v52, %s6330_s10 }
 0x1ab   : > { %v1288_v25 = vpop.permute.xlu1 %1287  ;;  %v1104_v57 = vpop.permute.xlu0 %1103 }
 0x1ac   : > { %1354 = vst.msk [vmem:[#allocation2 + $0x2f] sm:$0x1] %vm580_vm5, %v1288_v25  ;;  %1166 = vst.msk [vmem:[#allocation2 + $0x4d] sm:$0x1] %vm580_vm5, %v1104_v57 }
 0x1ad   : > { %1093 = vrot.lane.b32.xlu1 %v624_v52, %s6335_s15  ;;  %997 = vrot.lane.b32.xlu0 %v624_v52, %s6332_s12 }
 0x1af   : > { %v816_v58 = vpop.permute.xlu1 %815  ;;  %v1296_v59 = vpop.permute.xlu0 %1295 }
 0x1b0   : > { %878 = vst.msk [vmem:[#allocation2 + $0x4a] sm:$0x1] %vm580_vm5, %v816_v58  ;;  %1358 = vst.msk [vmem:[#allocation2 + $0x4f] sm:$0x1] %vm580_vm5, %v1296_v59 }
 0x1b1   : > { %1285 = vrot.lane.b32.xlu1 %v624_v52, %s6336_s16  ;;  %1189 = vrot.lane.b32.xlu0 %v624_v52, %s6334_s14 }
 0x1b3   : > { %v1008_v8 = vpop.permute.xlu1 %1007  ;;  %v812_v9 = vpop.permute.xlu0 %811  ;;  %v1378_v43 = vld [vmem:[#allocation2 + $0x28] sm:$0xff] }
 0x1b4   : > { %1070 = vst.msk [vmem:[#allocation2 + $0x4c] sm:$0x1] %vm580_vm5, %v1008_v8  ;;  %876 = vst.msk [vmem:[#allocation2 + $0x3a] sm:$0x1] %vm580_vm5, %v812_v9 }
 0x1b5   : > { %825 = vrot.lane.b32.xlu1 %v664_v61, %s6330_s10  ;;  %729 = vrot.lane.b32.xlu0 %v664_v61, %s6331_s11 }
 0x1b7   : > { %v1200_v10 = vpop.permute.xlu1 %1199  ;;  %v1004_v11 = vpop.permute.xlu0 %1003 }
 0x1b8   : > { %1262 = vst.msk [vmem:[#allocation2 + $0x4e] sm:$0x1] %vm580_vm5, %v1200_v10  ;;  %1068 = vst.msk [vmem:[#allocation2 + $0x3c] sm:$0x1] %vm580_vm5, %v1004_v11 }
 0x1b9   : > { %1017 = vrot.lane.b32.xlu1 %v664_v61, %s6332_s12  ;;  %921 = vrot.lane.b32.xlu0 %v664_v61, %s6333_s13 }
 0x1bb   : > { %v716_v44 = vpop.permute.xlu1 %715  ;;  %v724_v12 = vpop.permute.xlu0 %723 }
 0x1bc   : > { %780 = vst.msk [vmem:[#allocation2 + $0x39] sm:$0x1] %vm580_vm5, %v716_v44  ;;  %784 = vst.msk [vmem:[#allocation2 + $0x59] sm:$0x1] %vm580_vm5, %v724_v12 }
 0x1bd   : > { %1209 = vrot.lane.b32.xlu1 %v664_v61, %s6334_s14  ;;  %1113 = vrot.lane.b32.xlu0 %v664_v61, %s6335_s15 }
 0x1bf   : > { %v908_v15 = vpop.permute.xlu1 %907  ;;  %v916_v16 = vpop.permute.xlu0 %915  ;;  %v1383_v17 = vld [vmem:[#allocation2 + $0x48] sm:$0xff] }
 0x1c0   : > { %972 = vst.msk [vmem:[#allocation2 + $0x3b] sm:$0x1] %vm580_vm5, %v908_v15  ;;  %976 = vst.msk [vmem:[#allocation2 + $0x5b] sm:$0x1] %vm580_vm5, %v916_v16  ;;  %5981 = vmatpush3.xpose.msk.msra.mxu1 %vm1400_vm6, %v1383_v17 }
 0x1c1   : > { %713 = vrot.lane.b32.xlu1 %v632_v13, %s6331_s11  ;;  %1305 = vrot.lane.b32.xlu0 %v664_v61, %s6336_s16 }
 0x1c2   : > { %5985 = vmatprep.subr.mxu1 %v6327_v1 }
 0x1c3   : > { %v1100_v20 = vpop.permute.xlu1 %1099  ;;  %5983 = vmatmul.mubr.msk.f32.vlgmr.msra.gmra.mrb[2].mxu1 %vm1400_vm6, %v1374_v18  ;;  %v1108_v33 = vpop.permute.xlu0 %1107 }
 0x1c4   : > { %1164 = vst.msk [vmem:[#allocation2 + $0x3d] sm:$0x1] %vm580_vm5, %v1100_v20  ;;  %1168 = vst.msk [vmem:[#allocation2 + $0x5d] sm:$0x1] %vm580_vm5, %v1108_v33  ;;  %5987 = vmatprep.mubr.msk.f32.mxu1 %vm6326_vm0, %v6327_v1 }
 0x1c5   : > { %905 = vrot.lane.b32.xlu1 %v632_v13, %s6333_s13  ;;  %809 = vrot.lane.b32.xlu0 %v632_v13, %s6330_s10 }
 0x1c7   : > { %v820_v21 = vpop.permute.xlu1 %819  ;;  %v1300_v22 = vpop.permute.xlu0 %1299 }
 0x1c8   : > { %880 = vst.msk [vmem:[#allocation2 + $0x5a] sm:$0x1] %vm580_vm5, %v820_v21  ;;  %1360 = vst.msk [vmem:[#allocation2 + $0x5f] sm:$0x1] %vm580_vm5, %v1300_v22 }
 0x1c9   : > { %1097 = vrot.lane.b32.xlu1 %v632_v13, %s6335_s15  ;;  %1001 = vrot.lane.b32.xlu0 %v632_v13, %s6332_s12 }
 0x1cb   : > { %v1012_v23 = vpop.permute.xlu1 %1011  ;;  %v728_v24 = vpop.permute.xlu0 %727 }
 0x1cc   : > { %1072 = vst.msk [vmem:[#allocation2 + $0x5c] sm:$0x1] %vm580_vm5, %v1012_v23  ;;  %786 = vst.msk [vmem:[#allocation2 + $0x69] sm:$0x1] %vm580_vm5, %v728_v24 }
 0x1cd   : > { %1289 = vrot.lane.b32.xlu1 %v632_v13, %s6336_s16  ;;  %1193 = vrot.lane.b32.xlu0 %v632_v13, %s6334_s14 }
 0x1cf   : > { %v1204_v28 = vpop.permute.xlu1 %1203  ;;  %v920_v29 = vpop.permute.xlu0 %919 }
 0x1d0   : > { %1264 = vst.msk [vmem:[#allocation2 + $0x5e] sm:$0x1] %vm580_vm5, %v1204_v28  ;;  %978 = vst.msk [vmem:[#allocation2 + $0x6b] sm:$0x1] %vm580_vm5, %v920_v29 }
 0x1d1   : > { %831 = vrot.lane.b32.xlu1 %v676_v26, %s6330_s10  ;;  %735 = vrot.lane.b32.xlu0 %v676_v26, %s6331_s11 }
 0x1d3   : > { %v824_v30 = vpop.permute.xlu1 %823  ;;  %v1112_v31 = vpop.permute.xlu0 %1111 }
 0x1d4   : > { %882 = vst.msk [vmem:[#allocation2 + $0x6a] sm:$0x1] %vm580_vm5, %v824_v30  ;;  %1170 = vst.msk [vmem:[#allocation2 + $0x6d] sm:$0x1] %vm580_vm5, %v1112_v31 }
 0x1d5   : > { %927 = vrot.lane.b32.xlu1 %v676_v26, %s6333_s13  ;;  %1023 = vrot.lane.b32.xlu0 %v676_v26, %s6332_s12 }
 0x1d7   : > { %v1016_v63 = vpop.permute.xlu1 %1015  ;;  %v1304_v32 = vpop.permute.xlu0 %1303  ;;  %v1385_v34 = vld [vmem:[#allocation2 + $0x58] sm:$0xff] }
 0x1d8   : > { %1074 = vst.msk [vmem:[#allocation2 + $0x6c] sm:$0x1] %vm580_vm5, %v1016_v63  ;;  %1362 = vst.msk [vmem:[#allocation2 + $0x6f] sm:$0x1] %vm580_vm5, %v1304_v32  ;;  %5991 = vmatpush3.xpose.msk.msra.mxu0 %vm1400_vm6, %v1385_v34 }
 0x1d9   : > { %1119 = vrot.lane.b32.xlu1 %v676_v26, %s6335_s15  ;;  %1215 = vrot.lane.b32.xlu0 %v676_v26, %s6334_s14 }
 0x1da   : > { %6000 = vmatprep.subr.mxu0 %v6327_v1 }
 0x1db   : > { %5993 = vmatmul.mubr.msk.f32.vlgmr.msra.gmra.mrb[6].mxu0 %vm1400_vm6, %v1376_v35  ;;  %v1208_v37 = vpop.permute.xlu1 %1207  ;;  %v732_v38 = vpop.permute.xlu0 %731 }
 0x1dc   : > { %1266 = vst.msk [vmem:[#allocation2 + $0x6e] sm:$0x1] %vm580_vm5, %v1208_v37  ;;  %788 = vst.msk [vmem:[#allocation2 + $0x79] sm:$0x1] %vm580_vm5, %v732_v38  ;;  %6002 = vmatprep.mubr.msk.f32.mxu0 %vm6326_vm0, %v6327_v1 }
 0x1dd   : > { %1311 = vrot.lane.b32.xlu1 %v676_v26, %s6336_s16  ;;  %839 = vrot.lane.b32.xlu0 %v6767_v36, %s6330_s10 }
 0x1df   : > { %v828_v3 = vpop.permute.xlu1 %827  ;;  %v924_v41 = vpop.permute.xlu0 %923 }
 0x1e0   : > { %884 = vst.msk [vmem:[#allocation2 + $0x7a] sm:$0x1] %vm580_vm5, %v828_v3  ;;  %980 = vst.msk [vmem:[#allocation2 + $0x7b] sm:$0x1] %vm580_vm5, %v924_v41 }
 0x1e1   : > { %739 = vrot.lane.b32.xlu1 %v684_v27, %s6331_s11  ;;  %843 = vrot.lane.b32.xlu0 %v6778_v39, %s6330_s10 }
 0x1e3   : > { %v1020_v6 = vpop.permute.xlu1 %1019  ;;  %v1116_v42 = vpop.permute.xlu0 %1115  ;;  %v1387_v7 = vld [vmem:[#allocation2 + $0x68] sm:$0xff] }
 0x1e4   : > { %1076 = vst.msk [vmem:[#allocation2 + $0x7c] sm:$0x1] %vm580_vm5, %v1020_v6  ;;  %1172 = vst.msk [vmem:[#allocation2 + $0x7d] sm:$0x1] %vm580_vm5, %v1116_v42  ;;  %6001 = vmatpush3.xpose.msk.msra.mxu0 %vm1400_vm6, %v1387_v7 }
 0x1e5   : > { %835 = vrot.lane.b32.xlu1 %v684_v27, %s6330_s10  ;;  %6010 = vmatprep.subr.mxu0 %v6327_v1 }
 0x1e7   : > { %6003 = vmatmul.mubr.msk.f32.vlgmr.msra.gmra.mrb[8].mxu0 %vm1400_vm6, %v1378_v43  ;;  %v1212_v45 = vpop.permute.xlu1 %1211  ;;  %v1308_v46 = vpop.permute.xlu0 %1307 }
 0x1e8   : > { %1268 = vst.msk [vmem:[#allocation2 + $0x7e] sm:$0x1] %vm580_vm5, %v1212_v45  ;;  %1364 = vst.msk [vmem:[#allocation2 + $0x7f] sm:$0x1] %vm580_vm5, %v1308_v46  ;;  %6012 = vmatprep.mubr.msk.f32.mxu0 %vm6326_vm0, %v6327_v1 }
 0x1e9   : > { %931 = vrot.lane.b32.xlu1 %v684_v27, %s6333_s13 }
 0x1eb   : > { %v1292_v47 = vpop.permute.xlu1 %1291  ;;  %v1196_v48 = vpop.permute.xlu0 %1195 }
 0x1ec   : > { %1356 = vst.msk [vmem:[#allocation2 + $0x3f] sm:$0x1] %vm580_vm5, %v1292_v47  ;;  %1260 = vst.msk [vmem:[#allocation2 + $0x3e] sm:$0x1] %vm580_vm5, %v1196_v48 }
 0x1ed   : > { %1027 = vrot.lane.b32.xlu1 %v684_v27, %s6332_s12 }
 0x1ef   : > { %v818_v49 = vpop.permute.xlu1 %817  ;;  %v722_v50 = vpop.permute.xlu0 %721  ;;  %v1389_v40 = vld [vmem:[#allocation2 + $0x78] sm:$0xff] }
 0x1f0   : > { %879 = vst.msk [vmem:[#allocation2 + $0x52] sm:$0x1] %vm580_vm5, %v818_v49  ;;  %783 = vst.msk [vmem:[#allocation2 + $0x51] sm:$0x1] %vm580_vm5, %v722_v50  ;;  %6011 = vmatpush3.xpose.msk.msra.mxu0 %vm1400_vm6, %v1389_v40 }
 0x1f1   : > { %1123 = vrot.lane.b32.xlu1 %v684_v27, %s6335_s15  ;;  %6020 = vmatprep.subr.mxu0 %v6327_v1 }
 0x1f3   : > { %v1010_v51 = vpop.permute.xlu1 %1009  ;;  %v914_v52 = vpop.permute.xlu0 %913  ;;  %v1380_v53 = vld [vmem:[#allocation2 + $0x38] sm:$0xff] }
 0x1f4   : > { %1071 = vst.msk [vmem:[#allocation2 + $0x54] sm:$0x1] %vm580_vm5, %v1010_v51  ;;  %975 = vst.msk [vmem:[#allocation2 + $0x53] sm:$0x1] %vm580_vm5, %v914_v52  ;;  %6013 = vmatmul.mubr.msk.f32.vlgmr.msra.gmra.mrb[10].mxu0 %vm1400_vm6, %v1380_v53 }
 0x1f5   : > { %1219 = vrot.lane.b32.xlu1 %v684_v27, %s6334_s14  ;;  %6022 = vmatprep.mubr.msk.f32.mxu0 %vm6326_vm0, %v6327_v1 }
 0x1f7   : > { %v1202_v54 = vpop.permute.xlu1 %1201  ;;  %v1106_v55 = vpop.permute.xlu0 %1105 }
 0x1f8   : > { %1263 = vst.msk [vmem:[#allocation2 + $0x56] sm:$0x1] %vm580_vm5, %v1202_v54  ;;  %1167 = vst.msk [vmem:[#allocation2 + $0x55] sm:$0x1] %vm580_vm5, %v1106_v55 }
 0x1f9   : > { %1315 = vrot.lane.b32.xlu1 %v684_v27, %s6336_s16 }
 0x1fb   : > { %v706_v56 = vpop.permute.xlu1 %705  ;;  %v1298_v25 = vpop.permute.xlu0 %1297 }
 0x1fc   : > { %775 = vst.msk [vmem:[#allocation2 + $0x11] sm:$0x1] %vm580_vm5, %v706_v56  ;;  %1359 = vst.msk [vmem:[#allocation2 + $0x57] sm:$0x1] %vm580_vm5, %v1298_v25 }
 0x1fd   : > { %743 = vrot.lane.b32.xlu1 %v6767_v36, %s6331_s11 }
 0x1ff   : > { %v898_v57 = vpop.permute.xlu1 %897  ;;  %v802_v58 = vpop.permute.xlu0 %801 }
 0x200   : > { %967 = vst.msk [vmem:[#allocation2 + $0x13] sm:$0x1] %vm580_vm5, %v898_v57  ;;  %871 = vst.msk [vmem:[#allocation2 + $0x12] sm:$0x1] %vm580_vm5, %v802_v58 }
 0x201   : > { %935 = vrot.lane.b32.xlu1 %v6767_v36, %s6333_s13 }
 0x203   : > { %v1090_v59 = vpop.permute.xlu1 %1089  ;;  %v994_v61 = vpop.permute.xlu0 %993  ;;  %v1384_v8 = vld [vmem:[#allocation2 + $0x50] sm:$0xff] }
 0x204   : > { %1159 = vst.msk [vmem:[#allocation2 + $0x15] sm:$0x1] %vm580_vm5, %v1090_v59  ;;  %1063 = vst.msk [vmem:[#allocation2 + $0x14] sm:$0x1] %vm580_vm5, %v994_v61  ;;  %5986 = vmatpush3.xpose.msk.msra.mxu1 %vm1400_vm6, %v1384_v8  ;;  %v6906_v59 = vld [vmem:[%s6902_s20] sm:$0xff] }
 0x205   : > { %1031 = vrot.lane.b32.xlu1 %v6767_v36, %s6332_s12  ;;  %5995 = vmatprep.subr.mxu1 %v6327_v1 }
 0x207   : > { %v1282_v9 = vpop.permute.xlu1 %1281  ;;  %v1186_v10 = vpop.permute.xlu0 %1185 }
 0x208   : > { %1351 = vst.msk [vmem:[#allocation2 + $0x17] sm:$0x1] %vm580_vm5, %v1282_v9  ;;  %1255 = vst.msk [vmem:[#allocation2 + $0x16] sm:$0x1] %vm580_vm5, %v1186_v10 }
 0x209   : > { %1127 = vrot.lane.b32.xlu1 %v6767_v36, %s6335_s15 }
 0x20b   : > { %v822_v11 = vpop.permute.xlu1 %821  ;;  %v726_v44 = vpop.permute.xlu0 %725 }
 0x20c   : > { %881 = vst.msk [vmem:[#allocation2 + $0x62] sm:$0x1] %vm580_vm5, %v822_v11  ;;  %785 = vst.msk [vmem:[#allocation2 + $0x61] sm:$0x1] %vm580_vm5, %v726_v44 }
 0x20d   : > { %1223 = vrot.lane.b32.xlu1 %v6767_v36, %s6334_s14 }
 0x20f   : > { %v1014_v12 = vpop.permute.xlu1 %1013  ;;  %v918_v13 = vpop.permute.xlu0 %917  ;;  %v1375_v15 = vld [vmem:[#allocation2 + $0x10] sm:$0xff] }
 0x210   : > { %1073 = vst.msk [vmem:[#allocation2 + $0x64] sm:$0x1] %vm580_vm5, %v1014_v12  ;;  %977 = vst.msk [vmem:[#allocation2 + $0x63] sm:$0x1] %vm580_vm5, %v918_v13  ;;  %5988 = vmatmul.mubr.msk.f32.vlgmr.msra.gmra.mrb[4].mxu1 %vm1400_vm6, %v1375_v15 }
 0x211   : > { %1319 = vrot.lane.b32.xlu1 %v6767_v36, %s6336_s16  ;;  %5997 = vmatprep.mubr.msk.f32.mxu1 %vm6326_vm0, %v6327_v1 }
 0x213   : > { %v1206_v16 = vpop.permute.xlu1 %1205  ;;  %v1110_v17 = vpop.permute.xlu0 %1109 }
 0x214   : > { %1265 = vst.msk [vmem:[#allocation2 + $0x66] sm:$0x1] %vm580_vm5, %v1206_v16  ;;  %1169 = vst.msk [vmem:[#allocation2 + $0x65] sm:$0x1] %vm580_vm5, %v1110_v17 }
 0x215   : > { %747 = vrot.lane.b32.xlu1 %v6778_v39, %s6331_s11 }
 0x217   : > { %v710_v18 = vpop.permute.xlu1 %709  ;;  %v1302_v20 = vpop.permute.xlu0 %1301 }
 0x218   : > { %777 = vst.msk [vmem:[#allocation2 + $0x21] sm:$0x1] %vm580_vm5, %v710_v18  ;;  %1361 = vst.msk [vmem:[#allocation2 + $0x67] sm:$0x1] %vm580_vm5, %v1302_v20 }
 0x21b   : > { %v902_v33 = vpop.permute.xlu1 %901  ;;  %v806_v21 = vpop.permute.xlu0 %805 }
 0x21c   : > { %969 = vst.msk [vmem:[#allocation2 + $0x23] sm:$0x1] %vm580_vm5, %v902_v33  ;;  %873 = vst.msk [vmem:[#allocation2 + $0x22] sm:$0x1] %vm580_vm5, %v806_v21 }
 0x21f   : > { %v1094_v22 = vpop.permute.xlu1 %1093  ;;  %v998_v23 = vpop.permute.xlu0 %997  ;;  %v1386_v24 = vld [vmem:[#allocation2 + $0x60] sm:$0xff] }
 0x220   : > { %1161 = vst.msk [vmem:[#allocation2 + $0x25] sm:$0x1] %vm580_vm5, %v1094_v22  ;;  %1065 = vst.msk [vmem:[#allocation2 + $0x24] sm:$0x1] %vm580_vm5, %v998_v23  ;;  %5996 = vmatpush3.xpose.msk.msra.mxu1 %vm1400_vm6, %v1386_v24 }
 0x221   : > { %6005 = vmatprep.subr.mxu1 %v6327_v1 }
 0x223   : > { %v1286_v26 = vpop.permute.xlu1 %1285  ;;  %v1190_v28 = vpop.permute.xlu0 %1189 }
 0x224   : > { %1353 = vst.msk [vmem:[#allocation2 + $0x27] sm:$0x1] %vm580_vm5, %v1286_v26  ;;  %1257 = vst.msk [vmem:[#allocation2 + $0x26] sm:$0x1] %vm580_vm5, %v1190_v28 }
 0x227   : > { %v826_v29 = vpop.permute.xlu1 %825  ;;  %v730_v30 = vpop.permute.xlu0 %729 }
 0x228   : > { %883 = vst.msk [vmem:[#allocation2 + $0x72] sm:$0x1] %vm580_vm5, %v826_v29  ;;  %787 = vst.msk [vmem:[#allocation2 + $0x71] sm:$0x1] %vm580_vm5, %v730_v30  ;;  %v672_v29 = vrot.slane %v6556_v60, %v6425_v19 }
 0x22b   : > { %v1018_v31 = vpop.permute.xlu1 %1017  ;;  %v922_v63 = vpop.permute.xlu0 %921  ;;  %v1377_v32 = vld [vmem:[#allocation2 + $0x20] sm:$0xff] }
 0x22c   : > { %1075 = vst.msk [vmem:[#allocation2 + $0x74] sm:$0x1] %vm580_vm5, %v1018_v31  ;;  %979 = vst.msk [vmem:[#allocation2 + $0x73] sm:$0x1] %vm580_vm5, %v922_v63  ;;  %5998 = vmatmul.mubr.msk.f32.vlgmr.msra.gmra.mrb[6].mxu1 %vm1400_vm6, %v1377_v32 }
 0x22d   : > { %6007 = vmatprep.mubr.msk.f32.mxu1 %vm6326_vm0, %v6327_v1 }
 0x22f   : > { %v1210_v34 = vpop.permute.xlu1 %1209  ;;  %v1114_v35 = vpop.permute.xlu0 %1113 }
 0x230   : > { %1267 = vst.msk [vmem:[#allocation2 + $0x76] sm:$0x1] %vm580_vm5, %v1210_v34  ;;  %1171 = vst.msk [vmem:[#allocation2 + $0x75] sm:$0x1] %vm580_vm5, %v1114_v35 }
 0x233   : > { %v714_v36 = vpop.permute.xlu1 %713  ;;  %v1306_v37 = vpop.permute.xlu0 %1305 }
 0x234   : > { %779 = vst.msk [vmem:[#allocation2 + $0x31] sm:$0x1] %vm580_vm5, %v714_v36  ;;  %1363 = vst.msk [vmem:[#allocation2 + $0x77] sm:$0x1] %vm580_vm5, %v1306_v37 }
 0x237   : > { %v906_v38 = vpop.permute.xlu1 %905  ;;  %v810_v27 = vpop.permute.xlu0 %809 }
 0x238   : > { %971 = vst.msk [vmem:[#allocation2 + $0x33] sm:$0x1] %vm580_vm5, %v906_v38  ;;  %875 = vst.msk [vmem:[#allocation2 + $0x32] sm:$0x1] %vm580_vm5, %v810_v27 }
 0x23b   : > { %v1098_v3 = vpop.permute.xlu1 %1097  ;;  %v1002_v41 = vpop.permute.xlu0 %1001  ;;  %v1388_v6 = vld [vmem:[#allocation2 + $0x70] sm:$0xff] }
 0x23c   : > { %1163 = vst.msk [vmem:[#allocation2 + $0x35] sm:$0x1] %vm580_vm5, %v1098_v3  ;;  %1067 = vst.msk [vmem:[#allocation2 + $0x34] sm:$0x1] %vm580_vm5, %v1002_v41  ;;  %6006 = vmatpush3.xpose.msk.msra.mxu1 %vm1400_vm6, %v1388_v6 }
 0x23d   : > { %6015 = vmatprep.subr.mxu1 %v6327_v1 }
 0x23f   : > { %v1290_v42 = vpop.permute.xlu1 %1289  ;;  %v1194_v7 = vpop.permute.xlu0 %1193 }
 0x240   : > { %1355 = vst.msk [vmem:[#allocation2 + $0x37] sm:$0x1] %vm580_vm5, %v1290_v42  ;;  %1259 = vst.msk [vmem:[#allocation2 + $0x36] sm:$0x1] %vm580_vm5, %v1194_v7 }
 0x243   : > { %v832_v43 = vpop.permute.xlu1 %831  ;;  %v736_v45 = vpop.permute.xlu0 %735 }
 0x244   : > { %886 = vst.msk [vmem:[#allocation2 + $0x8a] sm:$0x1] %vm580_vm5, %v832_v43  ;;  %790 = vst.msk [vmem:[#allocation2 + $0x89] sm:$0x1] %vm580_vm5, %v736_v45 }
 0x247   : > { %v928_v46 = vpop.permute.xlu1 %927  ;;  %v1379_v47 = vld [vmem:[#allocation2 + $0x30] sm:$0xff]  ;;  %v1024_v48 = vpop.permute.xlu0 %1023 }
 0x248   : > { %982 = vst.msk [vmem:[#allocation2 + $0x8b] sm:$0x1] %vm580_vm5, %v928_v46  ;;  %6008 = vmatmul.mubr.msk.f32.vlgmr.msra.gmra.mrb[8].mxu1 %vm1400_vm6, %v1379_v47  ;;  %1078 = vst.msk [vmem:[#allocation2 + $0x8c] sm:$0x1] %vm580_vm5, %v1024_v48 }
 0x249   : > { %6017 = vmatprep.mubr.msk.f32.mxu1 %vm6326_vm0, %v6327_v1 }
 0x24b   : > { %v1120_v49 = vpop.permute.xlu1 %1119  ;;  %v1216_v50 = vpop.permute.xlu0 %1215 }
 0x24c   : > { %1174 = vst.msk [vmem:[#allocation2 + $0x8d] sm:$0x1] %vm580_vm5, %v1120_v49  ;;  %1270 = vst.msk [vmem:[#allocation2 + $0x8e] sm:$0x1] %vm580_vm5, %v1216_v50 }
 0x24f   : > { %v1312_v40 = vpop.permute.xlu1 %1311  ;;  %v840_v51 = vpop.permute.xlu0 %839 }
 0x250   : > { %1366 = vst.msk [vmem:[#allocation2 + $0x8f] sm:$0x1] %vm580_vm5, %v1312_v40  ;;  %890 = vst.msk [vmem:[#allocation2 + $0xaa] sm:$0x1] %vm580_vm5, %v840_v51 }
 0x253   : > { %v740_v52 = vpop.permute.xlu1 %739  ;;  %v844_v53 = vpop.permute.xlu0 %843 }
 0x254   : > { %792 = vst.msk [vmem:[#allocation2 + $0x99] sm:$0x1] %vm580_vm5, %v740_v52  ;;  %892 = vst.msk [vmem:[#allocation2 + $0xba] sm:$0x1] %vm580_vm5, %v844_v53 }
 0x257   : > { %v836_v54 = vpop.permute.xlu1 %835  ;;  %v1392_v55 = vld [vmem:[#allocation2 + $0x88] sm:$0xff] }
 0x258   : > { %888 = vst.msk [vmem:[#allocation2 + $0x9a] sm:$0x1] %vm580_vm5, %v836_v54  ;;  %6021 = vmatpush3.msra.mxu0 %v1392_v55 }
 0x259   : > { %6030 = vmatprep.subr.mxu0 %v6327_v1 }
 0x25b   : > { %v932_v56 = vpop.permute.xlu1 %931 }
 0x25c   : > { %984 = vst.msk [vmem:[#allocation2 + $0x9b] sm:$0x1] %vm580_vm5, %v932_v56 }
 0x25f   : > { %v1028_v25 = vpop.permute.xlu1 %1027 }
 0x260   : > { %1080 = vst.msk [vmem:[#allocation2 + $0x9c] sm:$0x1] %vm580_vm5, %v1028_v25 }
 0x263   : > { %v1124_v57 = vpop.permute.xlu1 %1123 }
 0x264   : > { %1176 = vst.msk [vmem:[#allocation2 + $0x9d] sm:$0x1] %vm580_vm5, %v1124_v57  ;;  %v6984_v57 = vrot.slane %v6571_v2, %v6425_v19 }
 0x267   : > { %v1220_v58 = vpop.permute.xlu1 %1219 }
 0x268   : > { %1272 = vst.msk [vmem:[#allocation2 + $0x9e] sm:$0x1] %vm580_vm5, %v1220_v58 }
 0x26a   : > { %v1473_v61 = vpop.f32.mrb[0].mxu1 }
 0x26b   : > { %v6909_v8 = vadd.f32 %v1473_v61, %v6906_v59  ;;  %v5979_v9 = vpop.f32.mrb[1].mxu1  ;;  %v1316_v10 = vpop.permute.xlu1 %1315 }
 0x26c   : > { %1368 = vst.msk [vmem:[#allocation2 + $0x9f] sm:$0x1] %vm580_vm5, %v1316_v10 }
 0x26d   : > { %v2010_v11 = vsel %vm2009_vm7, %v6909_v8, -inf }
 0x26e   : > { %2011 = vmax.xlane.f32.xlu1 %v2010_v11 }
 0x26f   : > { %v744_v44 = vpop.permute.xlu1 %743 }
 0x270   : > { %794 = vst.msk [vmem:[#allocation2 + $0xa9] sm:$0x1] %vm580_vm5, %v744_v44 }
 0x273   : > { %v936_v12 = vpop.permute.xlu1 %935 }
 0x274   : > { %986 = vst.msk [vmem:[#allocation2 + $0xab] sm:$0x1] %vm580_vm5, %v936_v12 }
 0x277   : > { %v1032_v13 = vpop.permute.xlu1 %1031 }
 0x278   : > { %1082 = vst.msk [vmem:[#allocation2 + $0xac] sm:$0x1] %vm580_vm5, %v1032_v13 }
 0x27b   : > { %v1128_v15 = vpop.permute.xlu1 %1127 }
 0x27c   : > { %1178 = vst.msk [vmem:[#allocation2 + $0xad] sm:$0x1] %vm580_vm5, %v1128_v15 }
 0x27f   : > { %v1224_v16 = vpop.permute.xlu1 %1223 }
 0x280   : > { %1274 = vst.msk [vmem:[#allocation2 + $0xae] sm:$0x1] %vm580_vm5, %v1224_v16 }
 0x283   : > { %v1320_v17 = vpop.permute.xlu1 %1319 }
 0x284   : > { %1370 = vst.msk [vmem:[#allocation2 + $0xaf] sm:$0x1] %vm580_vm5, %v1320_v17 }
 0x287   : > { %v748_v18 = vpop.permute.xlu1 %747 }
 0x288   : > { %796 = vst.msk [vmem:[#allocation2 + $0xb9] sm:$0x1] %vm580_vm5, %v748_v18 }
 0x296   : > { %v1549_v20 = vpop.f32.mrb[2].mxu1 }
 0x297   : > { %v1550_v33 = vadd.f32 %v1549_v20, %v6906_v59  ;;  %v5984_v21 = vpop.f32.mrb[3].mxu1 }
 0x299   : > { %v2013_v22 = vsel %vm2009_vm7, %v1550_v33, -inf }
 0x29a   : > { %2014 = vmax.xlane.f32.xlu0 %v2013_v22 }
 0x2ae   : > { %v1701_v23 = vpop.f32.mrb[6].mxu0 }
 0x2af   : > { %v6924_v24 = vadd.f32 %v1701_v23, %v6906_v59  ;;  %v5994_v26 = vpop.f32.mrb[7].mxu0 }
 0x2b0   : > { %1035 = vrot.lane.b32.xlu0 %v6778_v39, %s6332_s12 }
 0x2b1   : > { %v2019_v28 = vsel %vm2009_vm7, %v6924_v24, -inf }
 0x2b2   : > { %2020 = vmax.xlane.f32.xlu1 %v2019_v28 }
 0x2b4   : > { %1227 = vrot.lane.b32.xlu0 %v6778_v39, %s6334_s14 }
 0x2b8   : > { %733 = vrot.lane.b32.xlu0 %v672_v29, %s6331_s11 }
 0x2ba   : > { %v1853_v30 = vpop.f32.mrb[8].mxu0 }
 0x2bb   : > { %v6004_v31 = vpop.f32.mrb[9].mxu0  ;;  %v6945_v60 = vadd.f32 %v1853_v30, %v6906_v59 }
 0x2bc   : > { %1117 = vrot.lane.b32.xlu0 %v672_v29, %s6335_s15 }
 0x2bd   : > { %v2025_v35 = vsel %vm2009_vm7, %v6945_v60, -inf }
 0x2c3   : > { %939 = vrot.lane.b32.xlu1 %v6778_v39, %s6333_s13 }
 0x2c7   : > { %1131 = vrot.lane.b32.xlu1 %v6778_v39, %s6335_s15  ;;  %v2005_v63 = vpop.f32.mrb[10].mxu0 }
 0x2c8   : > { %v6014_v32 = vpop.f32.mrb[11].mxu0  ;;  %v6949_v34 = vadd.f32 %v2005_v63, %v6906_v59 }
 0x2cb   : > { %1323 = vrot.lane.b32.xlu1 %v6778_v39, %s6336_s16  ;;  %v2031_v39 = vsel %vm2009_vm7, %v6949_v34, -inf }
 0x2cf   : > { %829 = vrot.lane.b32.xlu1 %v672_v29, %s6330_s10 }
 0x2d3   : > { %925 = vrot.lane.b32.xlu1 %v672_v29, %s6333_s13 }
 0x2d7   : > { %1021 = vrot.lane.b32.xlu1 %v672_v29, %s6332_s12 }
 0x2db   : > { %1213 = vrot.lane.b32.xlu1 %v672_v29, %s6334_s14  ;;  %2026 = vmax.xlane.f32.xlu0 %v2025_v35 }
 0x2df   : > { %2032 = vmax.xlane.f32.xlu0 %v2031_v39 }
 0x2e3   : > { %v1625_v36 = vpop.f32.mrb[4].mxu1 }
 0x2e4   : > { %v5989_v37 = vpop.f32.mrb[5].mxu1  ;;  %v6958_v38 = vadd.f32 %v1625_v36, %v6906_v59  ;;  %v696_v36 = vrot.slane %v6578_v5, %v6425_v19 }
 0x2e6   : > { %v2016_v27 = vsel %vm2009_vm7, %v6958_v38, -inf }
 0x2f5   : > { %1309 = vrot.lane.b32.xlu0 %v672_v29, %s6336_s16 }
 0x2fb   : > { %v2012_v7 = vpop.xlane.xlu1 %2011 }
 0x2fc   : > { %v2034_v43 = vsub.f32 %v6909_v8, %v2012_v7 }
 0x2fe   : > { %v2042_v45 = vmul.f32 1.442695, %v2034_v43 }
 0x2ff   : > { %v1777_v3 = vpop.f32.mrb[6].mxu1  ;;  %2017 = vmax.xlane.f32.xlu1 %v2016_v27 }
 0x300   : > { %v6963_v41 = vadd.f32 %v1777_v3, %v6906_v59  ;;  %v5999_v6 = vpop.f32.mrb[7].mxu1  ;;  %6248 = vpow2.f32 %v2042_v45 }
 0x302   : > { %v2022_v42 = vsel %vm2009_vm7, %v6963_v41, -inf }
 0x303   : > { %2023 = vmax.xlane.f32.xlu1 %v2022_v42 }
 0x30a   : > { %v6973_v50 = vpop.eup %6248 }
 0x30b   : > { %v2058_v40 = vsel %vm2009_vm7, %v6973_v50, 0.0 }
 0x31b   : > { %v1929_v46 = vpop.f32.mrb[8].mxu1 }
 0x31c   : > { %v6969_v47 = vadd.f32 %v1929_v46, %v6906_v59  ;;  %v6009_v48 = vpop.f32.mrb[9].mxu1 }
 0x31e   : > { %v2028_v49 = vsel %vm2009_vm7, %v6969_v47, -inf }
 0x31f   : > { %2029 = vmax.xlane.f32.xlu0 %v2028_v49 }
 0x323   : > { %2059 = vadd.xlane.f32.xlu0 %v2058_v40 }
 0x327   : > { %v2015_v51 = vpop.xlane.xlu0 %2014 }
 0x328   : > { %v2035_v52 = vsub.f32 %v1550_v33, %v2015_v51 }
 0x32a   : > { %v2044_v53 = vmul.f32 1.442695, %v2035_v52 }
 0x32b   : > { %v1036_v54 = vpop.permute.xlu0 %1035 }
 0x32c   : > { %6250 = vpow2.f32 %v2044_v53  ;;  %1084 = vst.msk [vmem:[#allocation2 + $0xbc] sm:$0x1] %vm580_vm5, %v1036_v54  ;;  %v1394_v54 = vld [vmem:[#allocation2 + $0x98] sm:$0xff] }
 0x32f   : > { %v1228_v55 = vpop.permute.xlu0 %1227 }
 0x330   : > { %1276 = vst.msk [vmem:[#allocation2 + $0xbe] sm:$0x1] %vm580_vm5, %v1228_v55 }
 0x333   : > { %v734_v56 = vpop.permute.xlu0 %733 }
 0x334   : > { %789 = vst.msk [vmem:[#allocation2 + $0x81] sm:$0x1] %vm580_vm5, %v734_v56 }
 0x336   : > { %v6980_v25 = vpop.eup %6250 }
 0x337   : > { %v1118_v58 = vpop.permute.xlu0 %1117  ;;  %v2061_v59 = vsel %vm2009_vm7, %v6980_v25, 0.0 }
 0x338   : > { %1173 = vst.msk [vmem:[#allocation2 + $0x85] sm:$0x1] %vm580_vm5, %v1118_v58  ;;  %2062 = vadd.xlane.f32.xlu1 %v2061_v59 }
 0x339   : > { %833 = vrot.lane.b32.xlu0 %v6984_v57, %s6330_s10 }
 0x33d   : > { %1025 = vrot.lane.b32.xlu0 %v6984_v57, %s6332_s12 }
 0x33f   : > { %v2021_v61 = vpop.xlane.xlu1 %2020 }
 0x340   : > { %v2037_v2 = vsub.f32 %v6924_v24, %v2021_v61 }
 0x342   : > { %v2048_v10 = vmul.f32 1.442695, %v2037_v2 }
 0x343   : > { %v940_v8 = vpop.permute.xlu1 %939 }
 0x344   : > { %988 = vst.msk [vmem:[#allocation2 + $0xbb] sm:$0x1] %vm580_vm5, %v940_v8  ;;  %6252 = vpow2.f32 %v2048_v10  ;;  %v5790_v10 = vld [vmem:[%s6392_s27 + $0x10] sm:$0xff] }
 0x347   : > { %v1132_v9 = vpop.permute.xlu1 %1131 }
 0x348   : > { %1180 = vst.msk [vmem:[#allocation2 + $0xbd] sm:$0x1] %vm580_vm5, %v1132_v9 }
 0x349   : > { %737 = vrot.lane.b32.xlu1 %v6984_v57, %s6331_s11 }
 0x34b   : > { %v1324_v11 = vpop.permute.xlu1 %1323 }
 0x34c   : > { %1372 = vst.msk [vmem:[#allocation2 + $0xbf] sm:$0x1] %vm580_vm5, %v1324_v11  ;;  %v5791_v11 = vld [vmem:[%s6392_s27 + $0x18] sm:$0x1f] }
 0x34d   : > { %929 = vrot.lane.b32.xlu1 %v6984_v57, %s6333_s13 }
 0x34e   : > { %v7005_v15 = vpop.eup %6252 }
 0x34f   : > { %v830_v44 = vpop.permute.xlu1 %829  ;;  %v2067_v17 = vsel %vm2009_vm7, %v7005_v15, 0.0 }
 0x350   : > { %885 = vst.msk [vmem:[#allocation2 + $0x82] sm:$0x1] %vm580_vm5, %v830_v44 }
 0x351   : > { %1121 = vrot.lane.b32.xlu1 %v6984_v57, %s6335_s15 }
 0x353   : > { %v926_v12 = vpop.permute.xlu1 %925  ;;  %v1398_v44 = vld [vmem:[#allocation2 + $0xb8] sm:$0xff] }
 0x354   : > { %981 = vst.msk [vmem:[#allocation2 + $0x83] sm:$0x1] %vm580_vm5, %v926_v12 }
 0x357   : > { %v1022_v13 = vpop.permute.xlu1 %1021 }
 0x358   : > { %1077 = vst.msk [vmem:[#allocation2 + $0x84] sm:$0x1] %vm580_vm5, %v1022_v13  ;;  %v6209_v13 = vpack.c.bf16 %v5791_v11, %v5790_v10 }
 0x35b   : > { %v1214_v16 = vpop.permute.xlu1 %1213 }
 0x35c   : > { %1269 = vst.msk [vmem:[#allocation2 + $0x86] sm:$0x1] %vm580_vm5, %v1214_v16  ;;  %2068 = vadd.xlane.f32.xlu0 %v2067_v17 }
 0x368   : > { %v2027_v18 = vpop.xlane.xlu0 %2026 }
 0x369   : > { %v2039_v20 = vsub.f32 %v6945_v60, %v2027_v18  ;;  %v6312_v18 = vld [vmem:[%s7929_s3] sm:$0xff] }
 0x36b   : > { %v2052_v33 = vmul.f32 1.442695, %v2039_v20 }
 0x36c   : > { %v2033_v21 = vpop.xlane.xlu0 %2032 }
 0x36d   : > { %6254 = vpow2.f32 %v2052_v33  ;;  %v2041_v22 = vsub.f32 %v6949_v34, %v2033_v21  ;;  %v688_v34 = vrot.slane %v6562_v62, %v6425_v19  ;;  %v6314_v33 = vld [vmem:[%s7929_s3 + $0x10] sm:$0xff] }
 0x36f   : > { %v2056_v23 = vmul.f32 1.442695, %v2041_v22 }
 0x370   : > { %v1310_v24 = vpop.permute.xlu0 %1309 }
 0x371   : > { %6256 = vpow2.f32 %v2056_v23  ;;  %1365 = vst.msk [vmem:[#allocation2 + $0x87] sm:$0x1] %vm580_vm5, %v1310_v24 }
 0x377   : > { %v7014_v26 = vpop.eup %6254 }
 0x378   : > { %v2073_v28 = vsel %vm2009_vm7, %v7014_v26, 0.0  ;;  %v1391_v29 = vld [vmem:[#allocation2 + $0x80] sm:$0xff] }
 0x379   : > { %2074 = vadd.xlane.f32.xlu0 %v2073_v28  ;;  %6016 = vmatpush3.msra.mxu1 %v1391_v29 }
 0x37a   : > { %6025 = vmatprep.subr.mxu1 %v6327_v1 }
 0x37b   : > { %v7019_v30 = vpop.eup %6256 }
 0x37c   : > { %v2079_v31 = vsel %vm2009_vm7, %v7019_v30, 0.0 }
 0x37d   : > { %2080 = vadd.xlane.f32.xlu0 %v2079_v31 }
 0x38c   : > { %v2018_v63 = vpop.xlane.xlu1 %2017 }
 0x38d   : > { %v2036_v32 = vsub.f32 %v6958_v38, %v2018_v63 }
 0x38f   : > { %v2046_v60 = vmul.f32 1.442695, %v2036_v32 }
 0x390   : > { %v2024_v27 = vpop.xlane.xlu1 %2023 }
 0x391   : > { %6258 = vpow2.f32 %v2046_v60  ;;  %v2038_v5 = vsub.f32 %v6963_v41, %v2024_v27  ;;  %v309_v27 = vld [vmem:[%s7931_s5] sm:$0x1f] }
 0x393   : > { %1217 = vrot.lane.b32.xlu0 %v6984_v57, %s6334_s14  ;;  %v2050_v42 = vmul.f32 1.442695, %v2038_v5 }
 0x397   : > { %741 = vrot.lane.b32.xlu0 %v688_v34, %s6331_s11 }
 0x39b   : > { %v7029_v35 = vpop.eup %6258  ;;  %933 = vrot.lane.b32.xlu0 %v688_v34, %s6333_s13 }
 0x39c   : > { %v2064_v39 = vsel %vm2009_vm7, %v7029_v35, 0.0 }
 0x39d   : > { %2065 = vadd.xlane.f32.xlu1 %v2064_v39 }
 0x39f   : > { %1125 = vrot.lane.b32.xlu0 %v688_v34, %s6335_s15 }
 0x3a3   : > { %1317 = vrot.lane.b32.xlu0 %v688_v34, %s6336_s16 }
 0x3a7   : > { %841 = vrot.lane.b32.xlu0 %v696_v36, %s6330_s10 }
 0x3ab   : > { %1033 = vrot.lane.b32.xlu0 %v696_v36, %s6332_s12 }
 0x3ac   : > { %v2030_v62 = vpop.xlane.xlu0 %2029 }
 0x3ad   : > { %v2040_v7 = vsub.f32 %v6969_v47, %v2030_v62 }
 0x3ae   : > { %1313 = vrot.lane.b32.xlu1 %v6984_v57, %s6336_s16 }
 0x3af   : > { %1225 = vrot.lane.b32.xlu0 %v696_v36, %s6334_s14  ;;  %v2054_v45 = vmul.f32 1.442695, %v2040_v7  ;;  %v308_v7 = vld [vmem:[%s7930_s4] sm:$0x3f] }
 0x3b0   : > { %v2060_v37 = vpop.xlane.xlu0 %2059 }
 0x3b1   : > { %6260 = vrcp.f32 %v2060_v37 }
 0x3b2   : > { %837 = vrot.lane.b32.xlu1 %v688_v34, %s6330_s10  ;;  %6262 = vpow2.f32 %v2050_v42  ;;  %v2682_v42 = vld [vmem:[%s7138_s8] sm:$0xff] }
 0x3b3   : > { %6264 = vpow2.f32 %v2054_v45  ;;  %v2684_v45 = vld [vmem:[%s7138_s8 + $0x10] sm:$0xff] }
 0x3b4   : > { %v834_v38 = vpop.permute.xlu0 %833 }
 0x3b5   : > { %887 = vst.msk [vmem:[#allocation2 + $0x92] sm:$0x1] %vm580_vm5, %v834_v38 }
 0x3b6   : > { %1029 = vrot.lane.b32.xlu1 %v688_v34, %s6332_s12 }
 0x3b8   : > { %v1026_v3 = vpop.permute.xlu0 %1025 }
 0x3b9   : > { %1079 = vst.msk [vmem:[#allocation2 + $0x94] sm:$0x1] %vm580_vm5, %v1026_v3 }
 0x3ba   : > { %1221 = vrot.lane.b32.xlu1 %v688_v34, %s6334_s14 }
 0x3bb   : > { %v6261_v6 = vpop.eup %6260 }
 0x3bc   : > { %v2090_v43 = vmul.f32 %v6261_v6, %v6973_v50  ;;  %v7057_v47 = vpop.eup %6262 }
 0x3bd   : > { %v2070_v49 = vsel %vm2009_vm7, %v7057_v47, 0.0  ;;  %v7063_v50 = vpop.eup %6264 }
 0x3be   : > { %745 = vrot.lane.b32.xlu1 %v696_v36, %s6331_s11  ;;  %6018 = vmatmul.mubr.msk.f32.vlgmr.msra.gmra.mrb[10].mxu1 %vm2009_vm7, %v2090_v43  ;;  %v2076_v52 = vsel %vm2009_vm7, %v7063_v50, 0.0  ;;  %v2683_v43 = vld [vmem:[%s7138_s8 + $0x8] sm:$0xff] }
 0x3bf   : > { %6027 = vmatprep.mubr.msk.f32.mxu1 %vm6326_vm0, %v6327_v1 }
 0x3c2   : > { %937 = vrot.lane.b32.xlu1 %v696_v36, %s6333_s13 }
 0x3c5   : > { %v2063_v41 = vpop.xlane.xlu1 %2062 }
 0x3c6   : > { %6266 = vrcp.f32 %v2063_v41  ;;  %1129 = vrot.lane.b32.xlu1 %v696_v36, %s6335_s15  ;;  %v2685_v41 = vld [vmem:[%s7138_s8 + $0x18] sm:$0xff] }
 0x3c9   : > { %v738_v46 = vpop.permute.xlu1 %737 }
 0x3ca   : > { %791 = vst.msk [vmem:[#allocation2 + $0x91] sm:$0x1] %vm580_vm5, %v738_v46  ;;  %1321 = vrot.lane.b32.xlu1 %v696_v36, %s6336_s16  ;;  %v2686_v46 = vld [vmem:[%s7138_s8 + $0x20] sm:$0xff] }
 0x3cd   : > { %v930_v48 = vpop.permute.xlu1 %929 }
 0x3ce   : > { %983 = vst.msk [vmem:[#allocation2 + $0x93] sm:$0x1] %vm580_vm5, %v930_v48  ;;  %2071 = vadd.xlane.f32.xlu0 %v2070_v49  ;;  %v2688_v48 = vld [vmem:[%s7138_s8 + $0x30] sm:$0xff]  ;;  %v2689_v49 = vld [vmem:[%s7138_s8 + $0x38] sm:$0xff] }
 0x3d0   : > { %v6267_v40 = vpop.eup %6266 }
 0x3d1   : > { %v1122_v51 = vpop.permute.xlu1 %1121  ;;  %v2091_v53 = vmul.f32 %v6267_v40, %v6980_v25  ;;  %v1396_v25 = vld [vmem:[#allocation2 + $0xa8] sm:$0xff] }
 0x3d2   : > { %1175 = vst.msk [vmem:[#allocation2 + $0x95] sm:$0x1] %vm580_vm5, %v1122_v51  ;;  %2077 = vadd.xlane.f32.xlu0 %v2076_v52 }
 0x3d3   : > { %6023 = vmatmul.mubr.msk.f32.vlgmr.msra.gmra.mrb[12].mxu0 %vm2009_vm7, %v2091_v53 }
 0x3d4   : > { %6031 = vmatpush3.msra.mxu0 %v1394_v54  ;;  %6032 = vmatprep.mubr.msk.f32.mxu0 %vm6326_vm0, %v6327_v1 }
 0x3d5   : > { %6040 = vmatprep.subr.mxu0 %v6327_v1 }
 0x3e9   : > { %v2069_v55 = vpop.xlane.xlu0 %2068 }
 0x3ea   : > { %6268 = vrcp.f32 %v2069_v55 }
 0x3f4   : > { %v6269_v56 = vpop.eup %6268 }
 0x3f5   : > { %v2093_v57 = vmul.f32 %v6269_v56, %v7005_v15 }
 0x3f7   : > { %6033 = vmatmul.mubr.msk.f32.vlgmr.msra.gmra.mrb[14].mxu0 %vm2009_vm7, %v2093_v57 }
 0x3f8   : > { %6041 = vmatpush3.msra.mxu0 %v1396_v25  ;;  %6042 = vmatprep.mubr.msk.f32.mxu0 %vm6326_vm0, %v6327_v1 }
 0x3f9   : > { %6050 = vmatprep.subr.mxu0 %v6327_v1 }
 0x406   : > { %v2075_v58 = vpop.xlane.xlu0 %2074 }
 0x407   : > { %6270 = vrcp.f32 %v2075_v58 }
 0x40a   : > { %v2081_v59 = vpop.xlane.xlu0 %2080 }
 0x40b   : > { %6272 = vrcp.f32 %v2081_v59 }
 0x40e   : > { %v1218_v61 = vpop.permute.xlu0 %1217 }
 0x40f   : > { %1271 = vst.msk [vmem:[#allocation2 + $0x96] sm:$0x1] %vm580_vm5, %v1218_v61 }
 0x411   : > { %v6271_v8 = vpop.eup %6270 }
 0x412   : > { %v742_v2 = vpop.permute.xlu0 %741  ;;  %v2095_v9 = vmul.f32 %v6271_v8, %v7014_v26 }
 0x413   : > { %793 = vst.msk [vmem:[#allocation2 + $0xa1] sm:$0x1] %vm580_vm5, %v742_v2 }
 0x414   : > { %6043 = vmatmul.mubr.msk.f32.vlgmr.msra.gmra.mrb[16].mxu0 %vm2009_vm7, %v2095_v9 }
 0x415   : > { %v6273_v12 = vpop.eup %6272  ;;  %6051 = vmatpush3.msra.mxu0 %v1398_v44  ;;  %6052 = vmatprep.mubr.msk.f32.mxu0 %vm6326_vm0, %v6327_v1 }
 0x416   : > { %v934_v15 = vpop.permute.xlu0 %933  ;;  %v2097_v16 = vmul.f32 %v6273_v12, %v7019_v30  ;;  %6208 = vmatprep.subr.bf16.mxu0 %v6325_v0 }
 0x417   : > { %985 = vst.msk [vmem:[#allocation2 + $0xa3] sm:$0x1] %vm580_vm5, %v934_v15 }
 0x418   : > { %6053 = vmatmul.mubr.msk.f32.vlgmr.msra.gmra.mrb[18].mxu0 %vm2009_vm7, %v2097_v16 }
 0x419   : > { %6211 = vmatpush3.bf16.msk.msra.mxu0 %vm6397_vm3, %v6209_v13  ;;  %6087 = vmatprep.mubr.msk.f32.mxu0 %vm6326_vm0, %v6327_v1 }
 0x41a   : > { %v1126_v17 = vpop.permute.xlu0 %1125  ;;  %6096 = vmatprep.subr.mxu0 %v6327_v1 }
 0x41b   : > { %1177 = vst.msk [vmem:[#allocation2 + $0xa5] sm:$0x1] %vm580_vm5, %v1126_v17 }
 0x41c   : > { %6088 = vmatmul.mubr.msk.f32.vlgmr.msra.gmra.mrb[20].mxu0 %vm312_vm4, %v6312_v18 }
 0x41d   : > { %6090 = vmatprep.mubr.msk.f32.mxu0 %vm6326_vm0, %v6327_v1 }
 0x41e   : > { %v1318_v0 = vpop.permute.xlu0 %1317 }
 0x41f   : > { %1369 = vst.msk [vmem:[#allocation2 + $0xa7] sm:$0x1] %vm580_vm5, %v1318_v0 }
 0x420   : > { %6091 = vmatmul.mubr.msk.f32.gmra.mrb[22].mxu0 %vm312_vm4, %v6313_v4 }
 0x421   : > { %6093 = vmatprep.mubr.msk.f32.mxu0 %vm6326_vm0, %v6327_v1 }
 0x422   : > { %v842_v20 = vpop.permute.xlu0 %841 }
 0x423   : > { %891 = vst.msk [vmem:[#allocation2 + $0xb2] sm:$0x1] %vm580_vm5, %v842_v20 }
 0x424   : > { %6094 = vmatmul.mubr.msk.f32.gmra.mrb[24].mxu0 %vm312_vm4, %v6314_v33 }
 0x425   : > { %6098 = vmatprep.mubr.msk.f32.mxu0 %vm6326_vm0, %v6327_v1 }
 0x426   : > { %v1034_v21 = vpop.permute.xlu0 %1033 }
 0x427   : > { %1083 = vst.msk [vmem:[#allocation2 + $0xb4] sm:$0x1] %vm580_vm5, %v1034_v21 }
 0x42a   : > { %v2066_v22 = vpop.xlane.xlu1 %2065  ;;  %v1226_v23 = vpop.permute.xlu0 %1225 }
 0x42b   : > { %6274 = vrcp.f32 %v2066_v22  ;;  %1275 = vst.msk [vmem:[#allocation2 + $0xb6] sm:$0x1] %vm580_vm5, %v1226_v23 }
 0x42e   : > { %v1314_v24 = vpop.permute.xlu1 %1313 }
 0x42f   : > { %1367 = vst.msk [vmem:[#allocation2 + $0x97] sm:$0x1] %vm580_vm5, %v1314_v24 }
 0x432   : > { %v838_v26 = vpop.permute.xlu1 %837 }
 0x433   : > { %889 = vst.msk [vmem:[#allocation2 + $0xa2] sm:$0x1] %vm580_vm5, %v838_v26 }
 0x435   : > { %v6275_v28 = vpop.eup %6274 }
 0x436   : > { %v1030_v29 = vpop.permute.xlu1 %1029  ;;  %v1393_v30 = vld [vmem:[#allocation2 + $0x90] sm:$0xff]  ;;  %v2092_v31 = vmul.f32 %v6275_v28, %v7029_v35 }
 0x437   : > { %1081 = vst.msk [vmem:[#allocation2 + $0xa4] sm:$0x1] %vm580_vm5, %v1030_v29  ;;  %6026 = vmatpush3.msra.mxu1 %v1393_v30 }
 0x438   : > { %6028 = vmatmul.mubr.msk.f32.vlgmr.msra.gmra.mrb[12].mxu1 %vm2009_vm7, %v2092_v31  ;;  %6035 = vmatprep.subr.mxu1 %v6327_v1 }
 0x439   : > { %6037 = vmatprep.mubr.msk.f32.mxu1 %vm6326_vm0, %v6327_v1 }
 0x43a   : > { %v1222_v63 = vpop.permute.xlu1 %1221 }
 0x43b   : > { %1273 = vst.msk [vmem:[#allocation2 + $0xa6] sm:$0x1] %vm580_vm5, %v1222_v63 }
 0x43e   : > { %v746_v32 = vpop.permute.xlu1 %745 }
 0x43f   : > { %795 = vst.msk [vmem:[#allocation2 + $0xb1] sm:$0x1] %vm580_vm5, %v746_v32 }
 0x442   : > { %v938_v60 = vpop.permute.xlu1 %937  ;;  %v1395_v34 = vld [vmem:[#allocation2 + $0xa0] sm:$0xff] }
 0x443   : > { %987 = vst.msk [vmem:[#allocation2 + $0xb3] sm:$0x1] %vm580_vm5, %v938_v60  ;;  %6036 = vmatpush3.msra.mxu1 %v1395_v34 }
 0x444   : > { %6045 = vmatprep.subr.mxu1 %v6327_v1 }
 0x446   : > { %v1130_v35 = vpop.permute.xlu1 %1129 }
 0x447   : > { %1179 = vst.msk [vmem:[#allocation2 + $0xb5] sm:$0x1] %vm580_vm5, %v1130_v35 }
 0x44a   : > { %v1322_v39 = vpop.permute.xlu1 %1321 }
 0x44b   : > { %1371 = vst.msk [vmem:[#allocation2 + $0xb7] sm:$0x1] %vm580_vm5, %v1322_v39 }
 0x452   : > { %v1397_v5 = vld [vmem:[#allocation2 + $0xb0] sm:$0xff] }
 0x45b   : > { %v2072_v36 = vpop.xlane.xlu0 %2071 }
 0x45c   : > { %6276 = vrcp.f32 %v2072_v36 }
 0x45f   : > { %v2078_v62 = vpop.xlane.xlu0 %2077 }
 0x460   : > { %6278 = vrcp.f32 %v2078_v62 }
 0x466   : > { %v6277_v37 = vpop.eup %6276 }
 0x467   : > { %v2094_v38 = vmul.f32 %v6277_v37, %v7057_v47  ;;  %v2687_v47 = vld [vmem:[%s7138_s8 + $0x28] sm:$0xff] }
 0x469   : > { %6038 = vmatmul.mubr.msk.f32.vlgmr.msra.gmra.mrb[14].mxu1 %vm2009_vm7, %v2094_v38 }
 0x46a   : > { %v6279_v3 = vpop.eup %6278  ;;  %6046 = vmatpush3.msra.mxu1 %v1397_v5  ;;  %6047 = vmatprep.mubr.msk.f32.mxu1 %vm6326_vm0, %v6327_v1 }
 0x46b   : > { %v2096_v6 = vmul.f32 %v6279_v3, %v7063_v50  ;;  %6055 = vmatprep.subr.msk.mxu1 %vm322_vm1, %v309_v27 }
 0x46d   : > { %6048 = vmatmul.mubr.msk.f32.vlgmr.msra.gmra.mrb[16].mxu1 %vm2009_vm7, %v2096_v6 }
 0x46e   : > { %6056 = vmatpush3.msk.msra.mxu1 %vm322_vm1, %v309_v27  ;;  %6057 = vmatprep.mubr.msk.f32.mxu1 %vm2690_vm8, %v2682_v42 }
 0x46f   : > { %6069 = vmatprep.subr.msk.mxu1 %vm2847_vm9, %v308_v7 }
 0x471   : > { %6058 = vmatmul.mubr.msk.f32.vlgmr.msra.gmra.mrb[18].mxu1 %vm2690_vm8, %v2683_v43 }
 0x472   : > { %6060 = vmatprep.mubr.msk.f32.mxu1 %vm2690_vm8, %v2684_v45  ;;  %6070 = vmatpush3.msk.msra.mxu1 %vm2847_vm9, %v308_v7 }
 0x473   : > { %6121 = vmatprep.subr.mxu1 %v6327_v1 }
 0x475   : > { %6061 = vmatmul.mubr.msk.f32.gmra.mrb[20].mxu1 %vm2690_vm8, %v2685_v41 }
 0x476   : > { %6063 = vmatprep.mubr.msk.f32.mxu1 %vm2690_vm8, %v2686_v46 }
 0x479   : > { %6064 = vmatmul.mubr.msk.f32.gmra.mrb[22].mxu1 %vm2690_vm8, %v2687_v47 }
 0x47a   : > { %6066 = vmatprep.mubr.msk.f32.mxu1 %vm2690_vm8, %v2688_v48 }
 0x47d   : > { %6067 = vmatmul.mubr.msk.f32.gmra.mrb[24].mxu1 %vm2690_vm8, %v2689_v49 }
 0x491   : > { %v2167_v50 = vpop.f32.mrb[10].mxu1 }
 0x492   : > { %v6019_v40 = vpop.f32.mrb[11].mxu1  ;;  %6071 = vmatprep.mubr.msk.f32.mxu1 %vm1400_vm6, %v2167_v50 }
 0x4a6   : > { %v2240_v51 = vpop.f32.mrb[12].mxu0 }
 0x4a7   : > { %v6024_v52 = vpop.f32.mrb[13].mxu0  ;;  %6072 = vmatmul.mubr.msk.f32.vlgmr.msra.gmra.mrb[18].mxu1 %vm1400_vm6, %v2240_v51 }
 0x4ca   : > { %v7174_v53 = vpop.f32.mrb[14].mxu0 }
 0x4cb   : > { %v6034_v54 = vpop.f32.mrb[15].mxu0 }
 0x4e7   : > { %v7176_v55 = vpop.f32.mrb[16].mxu0 }
 0x4e8   : > { %v6044_v56 = vpop.f32.mrb[17].mxu0 }
 0x4eb   : > { %v7178_v57 = vpop.f32.mrb[18].mxu0 }
 0x4ec   : > { %v6054_v25 = vpop.f32.mrb[19].mxu0 }
 0x4ef   : > { %v3062_v58 = vpop.f32.mrb[20].mxu0 }
 0x4f0   : > { %v3079_v59 = vcombine.high %v3062_v58, %v3062_v58  ;;  %v3086_v61 = vrot.slane %v3062_v58, %v6422_v14  ;;  %v6089_v8 = vpop.f32.mrb[21].mxu0 }
 0x4f2   : > { %v3093_v2 = vrot.slane %v3079_v59, %v6422_v14  ;;  %v3094_v9 = vcombine.high %v3086_v61, %v3086_v61  ;;  %v3102_v10 = vrot.slane %v3086_v61, %v6422_v14 }
 0x4f3   : > { %v3067_v11 = vpop.f32.mrb[22].mxu0 }
 0x4f4   : > { %v3095_v44 = vcombine.high %v3093_v2, %v3093_v2  ;;  %v3109_v12 = vrot.slane %v3093_v2, %v6422_v14  ;;  %v3116_v13 = vrot.slane %v3094_v9, %v6422_v14  ;;  %v3124_v15 = vcombine.high %v3102_v10, %v3102_v10  ;;  %3250 = vst.msk [vmem:[#allocation2] sm:$0x1] %vm580_vm5, %v3102_v10  ;;  %v6092_v16 = vpop.f32.mrb[23].mxu0 }
 0x4f5   : > { %v3277_v17 = vrot.slane %v3102_v10, %v6425_v19  ;;  %v3128_v18 = vcombine.high %v3067_v11, %v3067_v11  ;;  %v3135_v0 = vrot.slane %v3067_v11, %v6422_v14 }
 0x4f6   : > { %v7189_v4 = vrot.slane %v3095_v44, %v6422_v14  ;;  %v7191_v20 = vcombine.high %v3109_v12, %v3109_v12  ;;  %v7193_v33 = vcombine.high %v3116_v13, %v3116_v13  ;;  %3251 = vst.msk [vmem:[#allocation2 + $0x8] sm:$0x1] %vm580_vm5, %v3116_v13  ;;  %3252 = vst.msk [vmem:[#allocation2 + $0x10] sm:$0x1] %vm580_vm5, %v3124_v15 }
 0x4f7   : > { %3254 = vst.msk [vmem:[#allocation2 + $0x20] sm:$0x1] %vm580_vm5, %v3109_v12  ;;  %3466 = vrot.lane.b32.xlu0 %v3277_v17, %s6330_s10  ;;  %3370 = vrot.lane.b32.xlu1 %v3277_v17, %s6331_s11  ;;  %v3142_v21 = vrot.slane %v3128_v18, %v6422_v14  ;;  %v3143_v23 = vcombine.high %v3135_v0, %v3135_v0  ;;  %v3072_v43 = vpop.f32.mrb[24].mxu0 }
 0x4f8   : > { %v7203_v22 = vcombine.high %v7189_v4, %v7189_v4  ;;  %3253 = vst.msk [vmem:[#allocation2 + $0x18] sm:$0x1] %vm580_vm5, %v7193_v33  ;;  %3255 = vst.msk [vmem:[#allocation2 + $0x28] sm:$0x1] %vm580_vm5, %v7189_v4  ;;  %v3151_v26 = vrot.slane %v3135_v0, %v6422_v14  ;;  %v3281_v34 = vrot.slane %v3116_v13, %v6425_v19  ;;  %v6095_v46 = vpop.f32.mrb[25].mxu0 }
 0x4f9   : > { %3256 = vst.msk [vmem:[#allocation2 + $0x30] sm:$0x1] %vm580_vm5, %v7191_v20  ;;  %v3144_v24 = vcombine.high %v3142_v21, %v3142_v21  ;;  %v7213_v28 = vrot.slane %v3142_v21, %v6422_v14  ;;  %v7220_v29 = vrot.slane %v3143_v23, %v6422_v14  ;;  %v3285_v36 = vrot.slane %v3124_v15, %v6425_v19 }
 0x4fa   : > { %3257 = vst.msk [vmem:[#allocation2 + $0x38] sm:$0x1] %vm580_vm5, %v7203_v22  ;;  %v7225_v31 = vcombine.high %v3151_v26, %v3151_v26  ;;  %3258 = vst.msk [vmem:[#allocation2 + $0x40] sm:$0x1] %vm580_vm5, %v3151_v26  ;;  %v3293_v62 = vrot.slane %v3109_v12, %v6425_v19  ;;  %v3309_v37 = vrot.slane %v3151_v26, %v6425_v19 }
 0x4fb   : > { %3658 = vrot.lane.b32.xlu0 %v3277_v17, %s6332_s12  ;;  %3562 = vrot.lane.b32.xlu1 %v3277_v17, %s6333_s13  ;;  %v7223_v30 = vrot.slane %v3144_v24, %v6422_v14  ;;  %3262 = vst.msk [vmem:[#allocation2 + $0x60] sm:$0x1] %vm580_vm5, %v7213_v28  ;;  %v7232_v63 = vcombine.high %v7213_v28, %v7213_v28  ;;  %3259 = vst.msk [vmem:[#allocation2 + $0x48] sm:$0x1] %vm580_vm5, %v7220_v29 }
 0x4fc   : > { %v7236_v32 = vcombine.high %v7220_v29, %v7220_v29  ;;  %3260 = vst.msk [vmem:[#allocation2 + $0x50] sm:$0x1] %vm580_vm5, %v7225_v31  ;;  %v3289_v38 = vrot.slane %v7193_v33, %v6425_v19  ;;  %v3301_v42 = vrot.slane %v7191_v20, %v6425_v19  ;;  %v3297_v7 = vrot.slane %v7189_v4, %v6425_v19 }
 0x4fd   : > { %v7240_v60 = vcombine.high %v7223_v30, %v7223_v30  ;;  %3263 = vst.msk [vmem:[#allocation2 + $0x68] sm:$0x1] %vm580_vm5, %v7223_v30  ;;  %3264 = vst.msk [vmem:[#allocation2 + $0x70] sm:$0x1] %vm580_vm5, %v7232_v63  ;;  %v3177_v45 = vcombine.high %v3072_v43, %v3072_v43  ;;  %v3184_v41 = vrot.slane %v3072_v43, %v6422_v14 }
 0x4fe   : > { %3261 = vst.msk [vmem:[#allocation2 + $0x58] sm:$0x1] %vm580_vm5, %v7236_v32  ;;  %v7326_v50 = vrot.slane %v7220_v29, %v6425_v19  ;;  %v3325_v9 = vrot.slane %v7213_v28, %v6425_v19  ;;  %v7424_v4 = vrot.slane %v7203_v22, %v6425_v19  ;;  %v3321_v22 = vrot.slane %v7236_v32, %v6425_v19 }
 0x4ff   : > { %3850 = vrot.lane.b32.xlu0 %v3277_v17, %s6334_s14  ;;  %3754 = vrot.lane.b32.xlu1 %v3277_v17, %s6335_s15  ;;  %3265 = vst.msk [vmem:[#allocation2 + $0x78] sm:$0x1] %vm580_vm5, %v7240_v60  ;;  %v3191_v47 = vrot.slane %v3177_v45, %v6422_v14  ;;  %v3192_v48 = vcombine.high %v3184_v41, %v3184_v41 }
 0x500   : > { %v7322_v49 = vrot.slane %v3184_v41, %v6422_v14 }
 0x501   : > { %v3193_v40 = vcombine.high %v3191_v47, %v3191_v47  ;;  %v7329_v51 = vrot.slane %v3191_v47, %v6422_v14  ;;  %v7332_v52 = vrot.slane %v3192_v48, %v6422_v14 }
 0x502   : > { %3266 = vst.msk [vmem:[#allocation2 + $0x80] sm:$0x1] %vm580_vm5, %v7322_v49 }
 0x503   : > { %3946 = vrot.lane.b32.xlu1 %v3277_v17, %s6336_s16  ;;  %3468 = vrot.lane.b32.xlu0 %v3281_v34, %s6330_s10  ;;  %v7344_v54 = vrot.slane %v3193_v40, %v6422_v14  ;;  %v7352_v56 = vcombine.high %v7332_v52, %v7332_v52  ;;  %3267 = vst.msk [vmem:[#allocation2 + $0x88] sm:$0x1] %vm580_vm5, %v7332_v52  ;;  %3270 = vst.msk [vmem:[#allocation2 + $0xa0] sm:$0x1] %vm580_vm5, %v7329_v51 }
 0x505   : > { %v7362_v14 = vcombine.high %v7344_v54, %v7344_v54  ;;  %3269 = vst.msk [vmem:[#allocation2 + $0x98] sm:$0x1] %vm580_vm5, %v7352_v56  ;;  %3271 = vst.msk [vmem:[#allocation2 + $0xa8] sm:$0x1] %vm580_vm5, %v7344_v54 }
 0x507   : > { %3660 = vrot.lane.b32.xlu0 %v3281_v34, %s6332_s12  ;;  %3372 = vrot.lane.b32.xlu1 %v3281_v34, %s6331_s11  ;;  %3273 = vst.msk [vmem:[#allocation2 + $0xb8] sm:$0x1] %vm580_vm5, %v7362_v14 }
 0x50b   : > { %3852 = vrot.lane.b32.xlu0 %v3281_v34, %s6334_s14  ;;  %3564 = vrot.lane.b32.xlu1 %v3281_v34, %s6333_s13  ;;  %v2313_v35 = vpop.f32.mrb[12].mxu1 }
 0x50c   : > { %v6029_v39 = vpop.f32.mrb[13].mxu1  ;;  %6074 = vmatprep.mubr.msk.f32.mxu1 %vm1400_vm6, %v2313_v35 }
 0x50d   : > { %6075 = vmatmul.mubr.msk.f32.gmra.mrb[20].mxu1 %vm1400_vm6, %v7174_v53  ;;  %v7336_v53 = vcombine.high %v7322_v49, %v7322_v49  ;;  %v3329_v39 = vrot.slane %v7223_v30, %v6425_v19 }
 0x50f   : > { %3470 = vrot.lane.b32.xlu0 %v3285_v36, %s6330_s10  ;;  %3756 = vrot.lane.b32.xlu1 %v3281_v34, %s6335_s15  ;;  %3268 = vst.msk [vmem:[#allocation2 + $0x90] sm:$0x1] %vm580_vm5, %v7336_v53 }
 0x513   : > { %3662 = vrot.lane.b32.xlu0 %v3285_v36, %s6332_s12  ;;  %3948 = vrot.lane.b32.xlu1 %v3281_v34, %s6336_s16 }
 0x517   : > { %3854 = vrot.lane.b32.xlu0 %v3285_v36, %s6334_s14  ;;  %3374 = vrot.lane.b32.xlu1 %v3285_v36, %s6331_s11 }
 0x51b   : > { %3566 = vrot.lane.b32.xlu1 %v3285_v36, %s6333_s13  ;;  %3378 = vrot.lane.b32.xlu0 %v3293_v62, %s6331_s11 }
 0x51f   : > { %3758 = vrot.lane.b32.xlu1 %v3285_v36, %s6335_s15  ;;  %3570 = vrot.lane.b32.xlu0 %v3293_v62, %s6333_s13 }
 0x523   : > { %3950 = vrot.lane.b32.xlu1 %v3285_v36, %s6336_s16  ;;  %3762 = vrot.lane.b32.xlu0 %v3293_v62, %s6335_s15 }
 0x527   : > { %3474 = vrot.lane.b32.xlu1 %v3293_v62, %s6330_s10  ;;  %3954 = vrot.lane.b32.xlu0 %v3293_v62, %s6336_s16 }
 0x52b   : > { %3666 = vrot.lane.b32.xlu1 %v3293_v62, %s6332_s12  ;;  %3386 = vrot.lane.b32.xlu0 %v3309_v37, %s6331_s11 }
 0x52f   : > { %3858 = vrot.lane.b32.xlu1 %v3293_v62, %s6334_s14  ;;  %3578 = vrot.lane.b32.xlu0 %v3309_v37, %s6333_s13 }
 0x533   : > { %3482 = vrot.lane.b32.xlu1 %v3309_v37, %s6330_s10  ;;  %3770 = vrot.lane.b32.xlu0 %v3309_v37, %s6335_s15 }
 0x537   : > { %3674 = vrot.lane.b32.xlu1 %v3309_v37, %s6332_s12  ;;  %3962 = vrot.lane.b32.xlu0 %v3309_v37, %s6336_s16 }
 0x53b   : > { %3866 = vrot.lane.b32.xlu1 %v3309_v37, %s6334_s14  ;;  %3472 = vrot.lane.b32.xlu0 %v3289_v38, %s6330_s10 }
 0x53c   : > { %v2459_v27 = vpop.f32.mrb[14].mxu1 }
 0x53d   : > { %v6039_v5 = vpop.f32.mrb[15].mxu1  ;;  %6077 = vmatprep.mubr.msk.f32.mxu1 %vm1400_vm6, %v2459_v27 }
 0x53e   : > { %6078 = vmatmul.mubr.msk.f32.gmra.mrb[22].mxu1 %vm1400_vm6, %v7176_v55  ;;  %v7348_v55 = vcombine.high %v7329_v51, %v7329_v51  ;;  %v3333_v5 = vrot.slane %v7232_v63, %v6425_v19 }
 0x53f   : > { %3376 = vrot.lane.b32.xlu1 %v3289_v38, %s6331_s11  ;;  %3664 = vrot.lane.b32.xlu0 %v3289_v38, %s6332_s12 }
 0x540   : > { %v2605_v3 = vpop.f32.mrb[16].mxu1  ;;  %3272 = vst.msk [vmem:[#allocation2 + $0xb0] sm:$0x1] %vm580_vm5, %v7348_v55 }
 0x541   : > { %v6049_v6 = vpop.f32.mrb[17].mxu1  ;;  %6080 = vmatprep.mubr.msk.f32.mxu1 %vm1400_vm6, %v2605_v3 }
 0x542   : > { %6081 = vmatmul.mubr.msk.f32.gmra.mrb[24].mxu1 %vm1400_vm6, %v7178_v57  ;;  %v3317_v57 = vrot.slane %v7225_v31, %v6425_v19 }
 0x543   : > { %3568 = vrot.lane.b32.xlu1 %v3289_v38, %s6333_s13  ;;  %3856 = vrot.lane.b32.xlu0 %v3289_v38, %s6334_s14 }
 0x544   : > { %6123 = vmatprep.mubr.msk.f32.mxu1 %vm6326_vm0, %v6327_v1 }
 0x547   : > { %3760 = vrot.lane.b32.xlu1 %v3289_v38, %s6335_s15  ;;  %3382 = vrot.lane.b32.xlu0 %v3301_v42, %s6331_s11 }
 0x54b   : > { %3952 = vrot.lane.b32.xlu1 %v3289_v38, %s6336_s16  ;;  %3574 = vrot.lane.b32.xlu0 %v3301_v42, %s6333_s13 }
 0x54f   : > { %3380 = vrot.lane.b32.xlu1 %v3297_v7, %s6331_s11  ;;  %3766 = vrot.lane.b32.xlu0 %v3301_v42, %s6335_s15 }
 0x553   : > { %3476 = vrot.lane.b32.xlu1 %v3297_v7, %s6330_s10  ;;  %3958 = vrot.lane.b32.xlu0 %v3301_v42, %s6336_s16 }
 0x557   : > { %3572 = vrot.lane.b32.xlu1 %v3297_v7, %s6333_s13  ;;  %3388 = vrot.lane.b32.xlu0 %v7326_v50, %s6331_s11 }
 0x55b   : > { %3668 = vrot.lane.b32.xlu1 %v3297_v7, %s6332_s12  ;;  %3580 = vrot.lane.b32.xlu0 %v7326_v50, %s6333_s13 }
 0x55f   : > { %3764 = vrot.lane.b32.xlu1 %v3297_v7, %s6335_s15  ;;  %3772 = vrot.lane.b32.xlu0 %v7326_v50, %s6335_s15 }
 0x563   : > { %3860 = vrot.lane.b32.xlu1 %v3297_v7, %s6334_s14  ;;  %3964 = vrot.lane.b32.xlu0 %v7326_v50, %s6336_s16 }
 0x567   : > { %3956 = vrot.lane.b32.xlu1 %v3297_v7, %s6336_s16  ;;  %3390 = vrot.lane.b32.xlu0 %v3317_v57, %s6331_s11 }
 0x569   : > { %v3467_v25 = vpop.permute.xlu0 %3466  ;;  %v3371_v58 = vpop.permute.xlu1 %3370 }
 0x56a   : > { %3538 = vst.msk [vmem:[#allocation2 + $0x2] sm:$0x1] %vm580_vm5, %v3467_v25  ;;  %3442 = vst.msk [vmem:[#allocation2 + $0x1] sm:$0x1] %vm580_vm5, %v3371_v58  ;;  %v3337_v25 = vrot.slane %v7240_v60, %v6425_v19 }
 0x56b   : > { %3478 = vrot.lane.b32.xlu1 %v3301_v42, %s6330_s10  ;;  %3582 = vrot.lane.b32.xlu0 %v3317_v57, %s6333_s13 }
 0x56d   : > { %v3659_v59 = vpop.permute.xlu0 %3658  ;;  %v3563_v61 = vpop.permute.xlu1 %3562 }
 0x56e   : > { %3730 = vst.msk [vmem:[#allocation2 + $0x4] sm:$0x1] %vm580_vm5, %v3659_v59  ;;  %3634 = vst.msk [vmem:[#allocation2 + $0x3] sm:$0x1] %vm580_vm5, %v3563_v61 }
 0x56f   : > { %3670 = vrot.lane.b32.xlu1 %v3301_v42, %s6332_s12  ;;  %3774 = vrot.lane.b32.xlu0 %v3317_v57, %s6335_s15 }
 0x571   : > { %v3851_v8 = vpop.permute.xlu0 %3850  ;;  %v3755_v2 = vpop.permute.xlu1 %3754 }
 0x572   : > { %3922 = vst.msk [vmem:[#allocation2 + $0x6] sm:$0x1] %vm580_vm5, %v3851_v8  ;;  %3826 = vst.msk [vmem:[#allocation2 + $0x5] sm:$0x1] %vm580_vm5, %v3755_v2 }
 0x573   : > { %3862 = vrot.lane.b32.xlu1 %v3301_v42, %s6334_s14  ;;  %3966 = vrot.lane.b32.xlu0 %v3317_v57, %s6336_s16 }
 0x575   : > { %v3947_v10 = vpop.permute.xlu1 %3946  ;;  %v3469_v11 = vpop.permute.xlu0 %3468 }
 0x576   : > { %4018 = vst.msk [vmem:[#allocation2 + $0x7] sm:$0x1] %vm580_vm5, %v3947_v10  ;;  %3539 = vst.msk [vmem:[#allocation2 + $0xa] sm:$0x1] %vm580_vm5, %v3469_v11 }
 0x577   : > { %3484 = vrot.lane.b32.xlu1 %v7326_v50, %s6330_s10  ;;  %3394 = vrot.lane.b32.xlu0 %v3325_v9, %s6331_s11 }
 0x579   : > { %v3661_v44 = vpop.permute.xlu0 %3660  ;;  %v3373_v12 = vpop.permute.xlu1 %3372 }
 0x57a   : > { %3731 = vst.msk [vmem:[#allocation2 + $0xc] sm:$0x1] %vm580_vm5, %v3661_v44  ;;  %3443 = vst.msk [vmem:[#allocation2 + $0x9] sm:$0x1] %vm580_vm5, %v3373_v12  ;;  %v7406_v13 = vpop.f32.mrb[18].mxu1  ;;  %v3341_v12 = vrot.slane %v7322_v49, %v6425_v19 }
 0x57b   : > { %3676 = vrot.lane.b32.xlu1 %v7326_v50, %s6332_s12  ;;  %3586 = vrot.lane.b32.xlu0 %v3325_v9, %s6333_s13  ;;  %v7411_v15 = vpop.f32.mrb[19].mxu1 }
 0x57d   : > { %v3853_v16 = vpop.permute.xlu0 %3852  ;;  %v3565_v17 = vpop.permute.xlu1 %3564  ;;  %v4042_v47 = vld [vmem:[#allocation2] sm:$0xff] }
 0x57e   : > { %3923 = vst.msk [vmem:[#allocation2 + $0xe] sm:$0x1] %vm580_vm5, %v3853_v16  ;;  %3635 = vst.msk [vmem:[#allocation2 + $0xb] sm:$0x1] %vm580_vm5, %v3565_v17 }
 0x57f   : > { %3868 = vrot.lane.b32.xlu1 %v7326_v50, %s6334_s14  ;;  %3778 = vrot.lane.b32.xlu0 %v3325_v9, %s6335_s15 }
 0x581   : > { %v3471_v18 = vpop.permute.xlu0 %3470  ;;  %v3757_v0 = vpop.permute.xlu1 %3756 }
 0x582   : > { %3540 = vst.msk [vmem:[#allocation2 + $0x12] sm:$0x1] %vm580_vm5, %v3471_v18  ;;  %3827 = vst.msk [vmem:[#allocation2 + $0xd] sm:$0x1] %vm580_vm5, %v3757_v0 }
 0x583   : > { %3486 = vrot.lane.b32.xlu1 %v3317_v57, %s6330_s10  ;;  %3970 = vrot.lane.b32.xlu0 %v3325_v9, %s6336_s16 }
 0x585   : > { %v3663_v20 = vpop.permute.xlu0 %3662  ;;  %v3949_v33 = vpop.permute.xlu1 %3948 }
 0x586   : > { %3732 = vst.msk [vmem:[#allocation2 + $0x14] sm:$0x1] %vm580_vm5, %v3663_v20  ;;  %4019 = vst.msk [vmem:[#allocation2 + $0xf] sm:$0x1] %vm580_vm5, %v3949_v33  ;;  %v3345_v33 = vrot.slane %v7332_v52, %v6425_v19 }
 0x587   : > { %3678 = vrot.lane.b32.xlu1 %v3317_v57, %s6332_s12  ;;  %3480 = vrot.lane.b32.xlu0 %v7424_v4, %s6330_s10 }
 0x589   : > { %v3855_v21 = vpop.permute.xlu0 %3854  ;;  %v3375_v23 = vpop.permute.xlu1 %3374 }
 0x58a   : > { %3924 = vst.msk [vmem:[#allocation2 + $0x16] sm:$0x1] %vm580_vm5, %v3855_v21  ;;  %3444 = vst.msk [vmem:[#allocation2 + $0x11] sm:$0x1] %vm580_vm5, %v3375_v23 }
 0x58b   : > { %3870 = vrot.lane.b32.xlu1 %v3317_v57, %s6334_s14  ;;  %3672 = vrot.lane.b32.xlu0 %v7424_v4, %s6332_s12 }
 0x58d   : > { %v3567_v24 = vpop.permute.xlu1 %3566  ;;  %v3379_v26 = vpop.permute.xlu0 %3378 }
 0x58e   : > { %3636 = vst.msk [vmem:[#allocation2 + $0x13] sm:$0x1] %vm580_vm5, %v3567_v24  ;;  %3446 = vst.msk [vmem:[#allocation2 + $0x21] sm:$0x1] %vm580_vm5, %v3379_v26 }
 0x58f   : > { %3490 = vrot.lane.b32.xlu1 %v3325_v9, %s6330_s10  ;;  %3392 = vrot.lane.b32.xlu0 %v3321_v22, %s6331_s11 }
 0x591   : > { %v3759_v28 = vpop.permute.xlu1 %3758  ;;  %v3571_v29 = vpop.permute.xlu0 %3570 }
 0x592   : > { %3828 = vst.msk [vmem:[#allocation2 + $0x15] sm:$0x1] %vm580_vm5, %v3759_v28  ;;  %3638 = vst.msk [vmem:[#allocation2 + $0x23] sm:$0x1] %vm580_vm5, %v3571_v29  ;;  %v3349_v29 = vrot.slane %v7336_v53, %v6425_v19 }
 0x593   : > { %3682 = vrot.lane.b32.xlu1 %v3325_v9, %s6332_s12  ;;  %3584 = vrot.lane.b32.xlu0 %v3321_v22, %s6333_s13 }
 0x595   : > { %v3951_v31 = vpop.permute.xlu1 %3950  ;;  %v3763_v32 = vpop.permute.xlu0 %3762 }
 0x596   : > { %4020 = vst.msk [vmem:[#allocation2 + $0x17] sm:$0x1] %vm580_vm5, %v3951_v31  ;;  %3830 = vst.msk [vmem:[#allocation2 + $0x25] sm:$0x1] %vm580_vm5, %v3763_v32 }
 0x597   : > { %3874 = vrot.lane.b32.xlu1 %v3325_v9, %s6334_s14  ;;  %3776 = vrot.lane.b32.xlu0 %v3321_v22, %s6335_s15 }
 0x599   : > { %v3475_v34 = vpop.permute.xlu1 %3474  ;;  %v3955_v35 = vpop.permute.xlu0 %3954 }
 0x59a   : > { %3542 = vst.msk [vmem:[#allocation2 + $0x22] sm:$0x1] %vm580_vm5, %v3475_v34  ;;  %4022 = vst.msk [vmem:[#allocation2 + $0x27] sm:$0x1] %vm580_vm5, %v3955_v35 }
 0x59b   : > { %3384 = vrot.lane.b32.xlu1 %v7424_v4, %s6331_s11  ;;  %3968 = vrot.lane.b32.xlu0 %v3321_v22, %s6336_s16 }
 0x59d   : > { %v3667_v36 = vpop.permute.xlu1 %3666  ;;  %v3387_v62 = vpop.permute.xlu0 %3386 }
 0x59e   : > { %3734 = vst.msk [vmem:[#allocation2 + $0x24] sm:$0x1] %vm580_vm5, %v3667_v36  ;;  %3450 = vst.msk [vmem:[#allocation2 + $0x41] sm:$0x1] %vm580_vm5, %v3387_v62 }
 0x59f   : > { %3576 = vrot.lane.b32.xlu1 %v7424_v4, %s6333_s13  ;;  %3492 = vrot.lane.b32.xlu0 %v3329_v39, %s6330_s10 }
 0x5a1   : > { %v3859_v37 = vpop.permute.xlu1 %3858  ;;  %v3579_v38 = vpop.permute.xlu0 %3578 }
 0x5a2   : > { %3926 = vst.msk [vmem:[#allocation2 + $0x26] sm:$0x1] %vm580_vm5, %v3859_v37  ;;  %3642 = vst.msk [vmem:[#allocation2 + $0x43] sm:$0x1] %vm580_vm5, %v3579_v38  ;;  %v4043_v38 = vld [vmem:[#allocation2 + $0x8] sm:$0xff] }
 0x5a3   : > { %3768 = vrot.lane.b32.xlu1 %v7424_v4, %s6335_s15  ;;  %3684 = vrot.lane.b32.xlu0 %v3329_v39, %s6332_s12 }
 0x5a5   : > { %v3483_v30 = vpop.permute.xlu1 %3482  ;;  %v3771_v27 = vpop.permute.xlu0 %3770 }
 0x5a6   : > { %3546 = vst.msk [vmem:[#allocation2 + $0x42] sm:$0x1] %vm580_vm5, %v3483_v30  ;;  %3834 = vst.msk [vmem:[#allocation2 + $0x45] sm:$0x1] %vm580_vm5, %v3771_v27 }
 0x5a7   : > { %3488 = vrot.lane.b32.xlu1 %v3321_v22, %s6330_s10  ;;  %3876 = vrot.lane.b32.xlu0 %v3329_v39, %s6334_s14 }
 0x5a9   : > { %v3675_v3 = vpop.permute.xlu1 %3674  ;;  %v3963_v6 = vpop.permute.xlu0 %3962 }
 0x5aa   : > { %3738 = vst.msk [vmem:[#allocation2 + $0x44] sm:$0x1] %vm580_vm5, %v3675_v3  ;;  %4026 = vst.msk [vmem:[#allocation2 + $0x47] sm:$0x1] %vm580_vm5, %v3963_v6 }
 0x5ab   : > { %3680 = vrot.lane.b32.xlu1 %v3321_v22, %s6332_s12  ;;  %3398 = vrot.lane.b32.xlu0 %v3333_v5, %s6331_s11 }
 0x5ad   : > { %v3867_v42 = vpop.permute.xlu1 %3866  ;;  %v3473_v7 = vpop.permute.xlu0 %3472 }
 0x5ae   : > { %3930 = vst.msk [vmem:[#allocation2 + $0x46] sm:$0x1] %vm580_vm5, %v3867_v42  ;;  %3541 = vst.msk [vmem:[#allocation2 + $0x1a] sm:$0x1] %vm580_vm5, %v3473_v7 }
 0x5af   : > { %3872 = vrot.lane.b32.xlu1 %v3321_v22, %s6334_s14  ;;  %3494 = vrot.lane.b32.xlu0 %v3333_v5, %s6330_s10 }
 0x5b1   : > { %v3377_v63 = vpop.permute.xlu1 %3376  ;;  %v3665_v43 = vpop.permute.xlu0 %3664 }
 0x5b2   : > { %3445 = vst.msk [vmem:[#allocation2 + $0x19] sm:$0x1] %vm580_vm5, %v3377_v63  ;;  %3733 = vst.msk [vmem:[#allocation2 + $0x1c] sm:$0x1] %vm580_vm5, %v3665_v43  ;;  %v4044_v63 = vld [vmem:[#allocation2 + $0x10] sm:$0xff] }
 0x5b3   : > { %3590 = vrot.lane.b32.xlu0 %v3333_v5, %s6333_s13  ;;  %3396 = vrot.lane.b32.xlu1 %v3329_v39, %s6331_s11 }
 0x5b5   : > { %v3569_v45 = vpop.permute.xlu1 %3568  ;;  %v3857_v41 = vpop.permute.xlu0 %3856  ;;  %v4050_v46 = vld [vmem:[#allocation2 + $0x40] sm:$0xff] }
 0x5b6   : > { %3637 = vst.msk [vmem:[#allocation2 + $0x1b] sm:$0x1] %vm580_vm5, %v3569_v45  ;;  %3925 = vst.msk [vmem:[#allocation2 + $0x1e] sm:$0x1] %vm580_vm5, %v3857_v41  ;;  %6097 = vmatpush3.xpose.msk.msra.mxu0 %vm1400_vm6, %v4050_v46  ;;  %v3353_v41 = vrot.slane %v7352_v56, %v6425_v19 }
 0x5b7   : > { %3686 = vrot.lane.b32.xlu0 %v3333_v5, %s6332_s12  ;;  %3588 = vrot.lane.b32.xlu1 %v3329_v39, %s6333_s13 }
 0x5b8   : > { %6101 = vmatprep.subr.mxu0 %v6327_v1 }
 0x5b9   : > { %v3761_v48 = vpop.permute.xlu1 %3760  ;;  %v3383_v50 = vpop.permute.xlu0 %3382  ;;  %6099 = vmatmul.mubr.msk.f32.vlgmr.msra.gmra.mrb[26].mxu0 %vm1400_vm6, %v4042_v47 }
 0x5ba   : > { %3829 = vst.msk [vmem:[#allocation2 + $0x1d] sm:$0x1] %vm580_vm5, %v3761_v48  ;;  %3448 = vst.msk [vmem:[#allocation2 + $0x31] sm:$0x1] %vm580_vm5, %v3383_v50  ;;  %6103 = vmatprep.mubr.msk.f32.mxu0 %vm6326_vm0, %v6327_v1 }
 0x5bb   : > { %3782 = vrot.lane.b32.xlu0 %v3333_v5, %s6335_s15  ;;  %3780 = vrot.lane.b32.xlu1 %v3329_v39, %s6335_s15 }
 0x5bd   : > { %v3953_v40 = vpop.permute.xlu1 %3952  ;;  %v3575_v57 = vpop.permute.xlu0 %3574 }
 0x5be   : > { %4021 = vst.msk [vmem:[#allocation2 + $0x1f] sm:$0x1] %vm580_vm5, %v3953_v40  ;;  %3640 = vst.msk [vmem:[#allocation2 + $0x33] sm:$0x1] %vm580_vm5, %v3575_v57 }
 0x5bf   : > { %3878 = vrot.lane.b32.xlu0 %v3333_v5, %s6334_s14  ;;  %3972 = vrot.lane.b32.xlu1 %v3329_v39, %s6336_s16 }
 0x5c1   : > { %v3381_v58 = vpop.permute.xlu1 %3380  ;;  %v3767_v59 = vpop.permute.xlu0 %3766 }
 0x5c2   : > { %3447 = vst.msk [vmem:[#allocation2 + $0x29] sm:$0x1] %vm580_vm5, %v3381_v58  ;;  %3832 = vst.msk [vmem:[#allocation2 + $0x35] sm:$0x1] %vm580_vm5, %v3767_v59 }
 0x5c3   : > { %3974 = vrot.lane.b32.xlu0 %v3333_v5, %s6336_s16  ;;  %3400 = vrot.lane.b32.xlu1 %v3337_v25, %s6331_s11  ;;  %v3357_v5 = vrot.slane %v7329_v51, %v6425_v19 }
 0x5c5   : > { %v3477_v61 = vpop.permute.xlu1 %3476  ;;  %v3959_v8 = vpop.permute.xlu0 %3958 }
 0x5c6   : > { %3543 = vst.msk [vmem:[#allocation2 + $0x2a] sm:$0x1] %vm580_vm5, %v3477_v61  ;;  %4024 = vst.msk [vmem:[#allocation2 + $0x37] sm:$0x1] %vm580_vm5, %v3959_v8 }
 0x5c7   : > { %3496 = vrot.lane.b32.xlu0 %v3337_v25, %s6330_s10  ;;  %3592 = vrot.lane.b32.xlu1 %v3337_v25, %s6333_s13 }
 0x5c9   : > { %v3573_v60 = vpop.permute.xlu1 %3572  ;;  %v3389_v2 = vpop.permute.xlu0 %3388 }
 0x5ca   : > { %3639 = vst.msk [vmem:[#allocation2 + $0x2b] sm:$0x1] %vm580_vm5, %v3573_v60  ;;  %3451 = vst.msk [vmem:[#allocation2 + $0x49] sm:$0x1] %vm580_vm5, %v3389_v2  ;;  %v3361_v60 = vrot.slane %v7344_v54, %v6425_v19 }
 0x5cb   : > { %3688 = vrot.lane.b32.xlu0 %v3337_v25, %s6332_s12  ;;  %3784 = vrot.lane.b32.xlu1 %v3337_v25, %s6335_s15 }
 0x5cd   : > { %v3669_v9 = vpop.permute.xlu1 %3668  ;;  %v3581_v10 = vpop.permute.xlu0 %3580 }
 0x5ce   : > { %3735 = vst.msk [vmem:[#allocation2 + $0x2c] sm:$0x1] %vm580_vm5, %v3669_v9  ;;  %3643 = vst.msk [vmem:[#allocation2 + $0x4b] sm:$0x1] %vm580_vm5, %v3581_v10 }
 0x5cf   : > { %3880 = vrot.lane.b32.xlu0 %v3337_v25, %s6334_s14  ;;  %3976 = vrot.lane.b32.xlu1 %v3337_v25, %s6336_s16 }
 0x5d1   : > { %v3765_v11 = vpop.permute.xlu1 %3764  ;;  %v3773_v44 = vpop.permute.xlu0 %3772 }
 0x5d2   : > { %3831 = vst.msk [vmem:[#allocation2 + $0x2d] sm:$0x1] %vm580_vm5, %v3765_v11  ;;  %3835 = vst.msk [vmem:[#allocation2 + $0x4d] sm:$0x1] %vm580_vm5, %v3773_v44  ;;  %v7641_v11 = vrot.slane %v7348_v55, %v6425_v19  ;;  %v4045_v55 = vld [vmem:[#allocation2 + $0x18] sm:$0xff] }
 0x5d3   : > { %3864 = vrot.lane.b32.xlu0 %v7424_v4, %s6334_s14  ;;  %3960 = vrot.lane.b32.xlu1 %v7424_v4, %s6336_s16 }
 0x5d5   : > { %v3861_v16 = vpop.permute.xlu1 %3860  ;;  %v3965_v17 = vpop.permute.xlu0 %3964 }
 0x5d6   : > { %3927 = vst.msk [vmem:[#allocation2 + $0x2e] sm:$0x1] %vm580_vm5, %v3861_v16  ;;  %4027 = vst.msk [vmem:[#allocation2 + $0x4f] sm:$0x1] %vm580_vm5, %v3965_v17 }
 0x5d7   : > { %3498 = vrot.lane.b32.xlu1 %v3341_v12, %s6330_s10  ;;  %3402 = vrot.lane.b32.xlu0 %v3341_v12, %s6331_s11 }
 0x5d9   : > { %v3957_v18 = vpop.permute.xlu1 %3956  ;;  %v3391_v0 = vpop.permute.xlu0 %3390 }
 0x5da   : > { %4023 = vst.msk [vmem:[#allocation2 + $0x2f] sm:$0x1] %vm580_vm5, %v3957_v18  ;;  %3452 = vst.msk [vmem:[#allocation2 + $0x51] sm:$0x1] %vm580_vm5, %v3391_v0 }
 0x5db   : > { %3594 = vrot.lane.b32.xlu1 %v3341_v12, %s6333_s13  ;;  %3786 = vrot.lane.b32.xlu0 %v3341_v12, %s6335_s15 }
 0x5dd   : > { %v3479_v49 = vpop.permute.xlu1 %3478  ;;  %v3583_v4 = vpop.permute.xlu0 %3582 }
 0x5de   : > { %3544 = vst.msk [vmem:[#allocation2 + $0x32] sm:$0x1] %vm580_vm5, %v3479_v49  ;;  %3644 = vst.msk [vmem:[#allocation2 + $0x53] sm:$0x1] %vm580_vm5, %v3583_v4 }
 0x5df   : > { %3690 = vrot.lane.b32.xlu1 %v3341_v12, %s6332_s12  ;;  %3978 = vrot.lane.b32.xlu0 %v3341_v12, %s6336_s16 }
 0x5e0   : > { %v7540_v20 = vpop.f32.mrb[20].mxu1 }
 0x5e1   : > { %v3671_v21 = vpop.permute.xlu1 %3670  ;;  %v3775_v23 = vpop.permute.xlu0 %3774 }
 0x5e2   : > { %3736 = vst.msk [vmem:[#allocation2 + $0x34] sm:$0x1] %vm580_vm5, %v3671_v21  ;;  %3836 = vst.msk [vmem:[#allocation2 + $0x55] sm:$0x1] %vm580_vm5, %v3775_v23  ;;  %v7546_v22 = vpop.f32.mrb[21].mxu1 }
 0x5e3   : > { %3882 = vrot.lane.b32.xlu1 %v3341_v12, %s6334_s14  ;;  %3500 = vrot.lane.b32.xlu0 %v3345_v33, %s6330_s10 }
 0x5e5   : > { %v3863_v24 = vpop.permute.xlu1 %3862  ;;  %v3967_v26 = vpop.permute.xlu0 %3966 }
 0x5e6   : > { %3928 = vst.msk [vmem:[#allocation2 + $0x36] sm:$0x1] %vm580_vm5, %v3863_v24  ;;  %4028 = vst.msk [vmem:[#allocation2 + $0x57] sm:$0x1] %vm580_vm5, %v3967_v26 }
 0x5e7   : > { %3404 = vrot.lane.b32.xlu1 %v3345_v33, %s6331_s11  ;;  %3692 = vrot.lane.b32.xlu0 %v3345_v33, %s6332_s12 }
 0x5e9   : > { %v3485_v52 = vpop.permute.xlu1 %3484  ;;  %v3395_v28 = vpop.permute.xlu0 %3394 }
 0x5ea   : > { %3547 = vst.msk [vmem:[#allocation2 + $0x4a] sm:$0x1] %vm580_vm5, %v3485_v52  ;;  %3454 = vst.msk [vmem:[#allocation2 + $0x61] sm:$0x1] %vm580_vm5, %v3395_v28 }
 0x5eb   : > { %3596 = vrot.lane.b32.xlu1 %v3345_v33, %s6333_s13  ;;  %3884 = vrot.lane.b32.xlu0 %v3345_v33, %s6334_s14 }
 0x5ed   : > { %v3677_v31 = vpop.permute.xlu1 %3676  ;;  %v3587_v32 = vpop.permute.xlu0 %3586 }
 0x5ee   : > { %3739 = vst.msk [vmem:[#allocation2 + $0x4c] sm:$0x1] %vm580_vm5, %v3677_v31  ;;  %3646 = vst.msk [vmem:[#allocation2 + $0x63] sm:$0x1] %vm580_vm5, %v3587_v32  ;;  %v4047_v31 = vld [vmem:[#allocation2 + $0x28] sm:$0xff] }
 0x5ef   : > { %3788 = vrot.lane.b32.xlu1 %v3345_v33, %s6335_s15  ;;  %3406 = vrot.lane.b32.xlu0 %v3349_v29, %s6331_s11 }
 0x5f1   : > { %v3869_v34 = vpop.permute.xlu1 %3868  ;;  %v3779_v35 = vpop.permute.xlu0 %3778 }
 0x5f2   : > { %3931 = vst.msk [vmem:[#allocation2 + $0x4e] sm:$0x1] %vm580_vm5, %v3869_v34  ;;  %3838 = vst.msk [vmem:[#allocation2 + $0x65] sm:$0x1] %vm580_vm5, %v3779_v35 }
 0x5f3   : > { %3980 = vrot.lane.b32.xlu1 %v3345_v33, %s6336_s16  ;;  %3598 = vrot.lane.b32.xlu0 %v3349_v29, %s6333_s13  ;;  %v4046_v33 = vld [vmem:[#allocation2 + $0x20] sm:$0xff] }
 0x5f5   : > { %v3487_v53 = vpop.permute.xlu1 %3486  ;;  %v3971_v39 = vpop.permute.xlu0 %3970 }
 0x5f6   : > { %3548 = vst.msk [vmem:[#allocation2 + $0x52] sm:$0x1] %vm580_vm5, %v3487_v53  ;;  %4030 = vst.msk [vmem:[#allocation2 + $0x67] sm:$0x1] %vm580_vm5, %v3971_v39  ;;  %v4048_v53 = vld [vmem:[#allocation2 + $0x30] sm:$0xff] }
 0x5f7   : > { %3502 = vrot.lane.b32.xlu1 %v3349_v29, %s6330_s10  ;;  %3790 = vrot.lane.b32.xlu0 %v3349_v29, %s6335_s15 }
 0x5f9   : > { %v3679_v36 = vpop.permute.xlu1 %3678  ;;  %v3481_v62 = vpop.permute.xlu0 %3480  ;;  %v4051_v37 = vld [vmem:[#allocation2 + $0x48] sm:$0xff] }
 0x5fa   : > { %3740 = vst.msk [vmem:[#allocation2 + $0x54] sm:$0x1] %vm580_vm5, %v3679_v36  ;;  %3545 = vst.msk [vmem:[#allocation2 + $0x3a] sm:$0x1] %vm580_vm5, %v3481_v62  ;;  %6102 = vmatpush3.xpose.msk.msra.mxu0 %vm1400_vm6, %v4051_v37 }
 0x5fb   : > { %3694 = vrot.lane.b32.xlu1 %v3349_v29, %s6332_s12  ;;  %6106 = vmatprep.subr.mxu0 %v6327_v1 }
 0x5fc   : > { %3982 = vrot.lane.b32.xlu0 %v3349_v29, %s6336_s16 }
 0x5fd   : > { %v3871_v30 = vpop.permute.xlu1 %3870  ;;  %6104 = vmatmul.mubr.msk.f32.vlgmr.msra.gmra.mrb[28].mxu0 %vm1400_vm6, %v4043_v38  ;;  %v3673_v27 = vpop.permute.xlu0 %3672 }
 0x5fe   : > { %3932 = vst.msk [vmem:[#allocation2 + $0x56] sm:$0x1] %vm580_vm5, %v3871_v30  ;;  %3737 = vst.msk [vmem:[#allocation2 + $0x3c] sm:$0x1] %vm580_vm5, %v3673_v27  ;;  %6108 = vmatprep.mubr.msk.f32.mxu0 %vm6326_vm0, %v6327_v1 }
 0x5ff   : > { %3886 = vrot.lane.b32.xlu1 %v3349_v29, %s6334_s14 }
 0x600   : > { %3410 = vrot.lane.b32.xlu0 %v3357_v5, %s6331_s11 }
 0x601   : > { %v3491_v3 = vpop.permute.xlu1 %3490  ;;  %v3393_v6 = vpop.permute.xlu0 %3392 }
 0x602   : > { %3550 = vst.msk [vmem:[#allocation2 + $0x62] sm:$0x1] %vm580_vm5, %v3491_v3  ;;  %3453 = vst.msk [vmem:[#allocation2 + $0x59] sm:$0x1] %vm580_vm5, %v3393_v6 }
 0x603   : > { %3506 = vrot.lane.b32.xlu1 %v3357_v5, %s6330_s10 }
 0x604   : > { %3602 = vrot.lane.b32.xlu0 %v3357_v5, %s6333_s13 }
 0x605   : > { %v3683_v51 = vpop.permute.xlu1 %3682  ;;  %v3585_v42 = vpop.permute.xlu0 %3584  ;;  %v4052_v7 = vld [vmem:[#allocation2 + $0x50] sm:$0xff] }
 0x606   : > { %3742 = vst.msk [vmem:[#allocation2 + $0x64] sm:$0x1] %vm580_vm5, %v3683_v51  ;;  %3645 = vst.msk [vmem:[#allocation2 + $0x5b] sm:$0x1] %vm580_vm5, %v3585_v42  ;;  %6107 = vmatpush3.xpose.msk.msra.mxu0 %vm1400_vm6, %v4052_v7 }
 0x607   : > { %3698 = vrot.lane.b32.xlu1 %v3357_v5, %s6332_s12  ;;  %6111 = vmatprep.subr.mxu0 %v6327_v1 }
 0x608   : > { %3794 = vrot.lane.b32.xlu0 %v3357_v5, %s6335_s15 }
 0x609   : > { %6109 = vmatmul.mubr.msk.f32.vlgmr.msra.gmra.mrb[30].mxu0 %vm1400_vm6, %v4044_v63  ;;  %v3875_v43 = vpop.permute.xlu1 %3874  ;;  %v3777_v45 = vpop.permute.xlu0 %3776 }
 0x60a   : > { %3934 = vst.msk [vmem:[#allocation2 + $0x66] sm:$0x1] %vm580_vm5, %v3875_v43  ;;  %3837 = vst.msk [vmem:[#allocation2 + $0x5d] sm:$0x1] %vm580_vm5, %v3777_v45  ;;  %6113 = vmatprep.mubr.msk.f32.mxu0 %vm6326_vm0, %v6327_v1 }
 0x60b   : > { %3890 = vrot.lane.b32.xlu1 %v3357_v5, %s6334_s14 }
 0x60c   : > { %3986 = vrot.lane.b32.xlu0 %v3357_v5, %s6336_s16 }
 0x60d   : > { %v3385_v46 = vpop.permute.xlu1 %3384  ;;  %v3969_v47 = vpop.permute.xlu0 %3968 }
 0x60e   : > { %3449 = vst.msk [vmem:[#allocation2 + $0x39] sm:$0x1] %vm580_vm5, %v3385_v46  ;;  %4029 = vst.msk [vmem:[#allocation2 + $0x5f] sm:$0x1] %vm580_vm5, %v3969_v47 }
 0x60f   : > { %3408 = vrot.lane.b32.xlu1 %v3353_v41, %s6331_s11 }
 0x610   : > { %3504 = vrot.lane.b32.xlu0 %v3353_v41, %s6330_s10 }
 0x611   : > { %v3577_v48 = vpop.permute.xlu1 %3576  ;;  %v3493_v50 = vpop.permute.xlu0 %3492  ;;  %v4054_v4 = vld [vmem:[#allocation2 + $0x60] sm:$0xff] }
 0x612   : > { %3641 = vst.msk [vmem:[#allocation2 + $0x3b] sm:$0x1] %vm580_vm5, %v3577_v48  ;;  %3551 = vst.msk [vmem:[#allocation2 + $0x6a] sm:$0x1] %vm580_vm5, %v3493_v50  ;;  %v7612_v56 = vpop.f32.mrb[22].mxu1 }
 0x613   : > { %v7614_v40 = vpop.f32.mrb[23].mxu1  ;;  %3600 = vrot.lane.b32.xlu1 %v3353_v41, %s6333_s13 }
 0x614   : > { %3696 = vrot.lane.b32.xlu0 %v3353_v41, %s6332_s12 }
 0x615   : > { %v3769_v57 = vpop.permute.xlu1 %3768  ;;  %v3685_v25 = vpop.permute.xlu0 %3684 }
 0x616   : > { %3833 = vst.msk [vmem:[#allocation2 + $0x3d] sm:$0x1] %vm580_vm5, %v3769_v57  ;;  %3743 = vst.msk [vmem:[#allocation2 + $0x6c] sm:$0x1] %vm580_vm5, %v3685_v25  ;;  %v7620_v58 = vpop.f32.mrb[24].mxu1 }
 0x617   : > { %v7622_v59 = vpop.f32.mrb[25].mxu1  ;;  %3792 = vrot.lane.b32.xlu1 %v3353_v41, %s6335_s15 }
 0x618   : > { %3888 = vrot.lane.b32.xlu0 %v3353_v41, %s6334_s14 }
 0x619   : > { %v3489_v61 = vpop.permute.xlu1 %3488  ;;  %v3877_v8 = vpop.permute.xlu0 %3876 }
 0x61a   : > { %3549 = vst.msk [vmem:[#allocation2 + $0x5a] sm:$0x1] %vm580_vm5, %v3489_v61  ;;  %3935 = vst.msk [vmem:[#allocation2 + $0x6e] sm:$0x1] %vm580_vm5, %v3877_v8 }
 0x61b   : > { %3984 = vrot.lane.b32.xlu1 %v3353_v41, %s6336_s16 }
 0x61c   : > { %3508 = vrot.lane.b32.xlu0 %v3361_v60, %s6330_s10 }
 0x61d   : > { %v3681_v2 = vpop.permute.xlu1 %3680  ;;  %v3399_v9 = vpop.permute.xlu0 %3398 }
 0x61e   : > { %3741 = vst.msk [vmem:[#allocation2 + $0x5c] sm:$0x1] %vm580_vm5, %v3681_v2  ;;  %3456 = vst.msk [vmem:[#allocation2 + $0x71] sm:$0x1] %vm580_vm5, %v3399_v9 }
 0x61f   : > { %3412 = vrot.lane.b32.xlu1 %v3361_v60, %s6331_s11 }
 0x620   : > { %3700 = vrot.lane.b32.xlu0 %v3361_v60, %s6332_s12 }
 0x621   : > { %v3873_v10 = vpop.permute.xlu1 %3872  ;;  %v3495_v54 = vpop.permute.xlu0 %3494 }
 0x622   : > { %3933 = vst.msk [vmem:[#allocation2 + $0x5e] sm:$0x1] %vm580_vm5, %v3873_v10  ;;  %3552 = vst.msk [vmem:[#allocation2 + $0x72] sm:$0x1] %vm580_vm5, %v3495_v54 }
 0x623   : > { %3604 = vrot.lane.b32.xlu1 %v3361_v60, %s6333_s13 }
 0x624   : > { %3892 = vrot.lane.b32.xlu0 %v3361_v60, %s6334_s14 }
 0x625   : > { %v3591_v44 = vpop.permute.xlu0 %3590  ;;  %v3397_v12 = vpop.permute.xlu1 %3396 }
 0x626   : > { %3648 = vst.msk [vmem:[#allocation2 + $0x73] sm:$0x1] %vm580_vm5, %v3591_v44  ;;  %3455 = vst.msk [vmem:[#allocation2 + $0x69] sm:$0x1] %vm580_vm5, %v3397_v12 }
 0x627   : > { %3796 = vrot.lane.b32.xlu1 %v3361_v60, %s6335_s15 }
 0x628   : > { %3414 = vrot.lane.b32.xlu0 %v7641_v11, %s6331_s11 }
 0x629   : > { %v3687_v16 = vpop.permute.xlu0 %3686  ;;  %v3589_v17 = vpop.permute.xlu1 %3588  ;;  %v4053_v18 = vld [vmem:[#allocation2 + $0x58] sm:$0xff] }
 0x62a   : > { %3744 = vst.msk [vmem:[#allocation2 + $0x74] sm:$0x1] %vm580_vm5, %v3687_v16  ;;  %3647 = vst.msk [vmem:[#allocation2 + $0x6b] sm:$0x1] %vm580_vm5, %v3589_v17  ;;  %6112 = vmatpush3.xpose.msk.msra.mxu0 %vm1400_vm6, %v4053_v18 }
 0x62b   : > { %6116 = vmatprep.subr.mxu0 %v6327_v1  ;;  %3988 = vrot.lane.b32.xlu1 %v3361_v60, %s6336_s16 }
 0x62c   : > { %3606 = vrot.lane.b32.xlu0 %v7641_v11, %s6333_s13 }
 0x62d   : > { %6114 = vmatmul.mubr.msk.f32.vlgmr.msra.gmra.mrb[32].mxu0 %vm1400_vm6, %v4045_v55  ;;  %v3783_v0 = vpop.permute.xlu0 %3782  ;;  %v3781_v49 = vpop.permute.xlu1 %3780 }
 0x62e   : > { %3840 = vst.msk [vmem:[#allocation2 + $0x75] sm:$0x1] %vm580_vm5, %v3783_v0  ;;  %3839 = vst.msk [vmem:[#allocation2 + $0x6d] sm:$0x1] %vm580_vm5, %v3781_v49  ;;  %6117 = vmatpush3.xpose.msk.msra.mxu0 %vm1400_vm6, %v4054_v4  ;;  %6118 = vmatprep.mubr.msk.f32.mxu0 %vm6326_vm0, %v6327_v1 }
 0x62f   : > { %6126 = vmatprep.subr.mxu0 %v6327_v1  ;;  %3510 = vrot.lane.b32.xlu1 %v7641_v11, %s6330_s10 }
 0x631   : > { %6119 = vmatmul.mubr.msk.f32.vlgmr.msra.gmra.mrb[34].mxu0 %vm1400_vm6, %v4046_v33  ;;  %v3879_v21 = vpop.permute.xlu0 %3878  ;;  %v3973_v23 = vpop.permute.xlu1 %3972 }
 0x632   : > { %3936 = vst.msk [vmem:[#allocation2 + $0x76] sm:$0x1] %vm580_vm5, %v3879_v21  ;;  %4031 = vst.msk [vmem:[#allocation2 + $0x6f] sm:$0x1] %vm580_vm5, %v3973_v23  ;;  %6128 = vmatprep.mubr.msk.f32.mxu0 %vm6326_vm0, %v6327_v1  ;;  %v7733_v23 = vld [vmem:[%s6902_s20 + $0x8] sm:$0xff] }
 0x633   : > { %3702 = vrot.lane.b32.xlu1 %v7641_v11, %s6332_s12 }
 0x635   : > { %v3975_v24 = vpop.permute.xlu0 %3974  ;;  %v3401_v26 = vpop.permute.xlu1 %3400 }
 0x636   : > { %4032 = vst.msk [vmem:[#allocation2 + $0x77] sm:$0x1] %vm580_vm5, %v3975_v24  ;;  %3457 = vst.msk [vmem:[#allocation2 + $0x79] sm:$0x1] %vm580_vm5, %v3401_v26 }
 0x639   : > { %v3497_v52 = vpop.permute.xlu0 %3496  ;;  %v3593_v28 = vpop.permute.xlu1 %3592  ;;  %v4055_v29 = vld [vmem:[#allocation2 + $0x68] sm:$0xff] }
 0x63a   : > { %3553 = vst.msk [vmem:[#allocation2 + $0x7a] sm:$0x1] %vm580_vm5, %v3497_v52  ;;  %3649 = vst.msk [vmem:[#allocation2 + $0x7b] sm:$0x1] %vm580_vm5, %v3593_v28  ;;  %6122 = vmatpush3.xpose.msk.msra.mxu1 %vm1400_vm6, %v4055_v29 }
 0x63b   : > { %6131 = vmatprep.subr.mxu1 %v6327_v1 }
 0x63d   : > { %6124 = vmatmul.mubr.msk.f32.vlgmr.msra.gmra.mrb[26].mxu1 %vm1400_vm6, %v4047_v31  ;;  %v3689_v32 = vpop.permute.xlu0 %3688  ;;  %v3785_v34 = vpop.permute.xlu1 %3784  ;;  %v4056_v35 = vld [vmem:[#allocation2 + $0x70] sm:$0xff] }
 0x63e   : > { %3745 = vst.msk [vmem:[#allocation2 + $0x7c] sm:$0x1] %vm580_vm5, %v3689_v32  ;;  %3841 = vst.msk [vmem:[#allocation2 + $0x7d] sm:$0x1] %vm580_vm5, %v3785_v34  ;;  %6127 = vmatpush3.xpose.msk.msra.mxu0 %vm1400_vm6, %v4056_v35  ;;  %6133 = vmatprep.mubr.msk.f32.mxu1 %vm6326_vm0, %v6327_v1 }
 0x63f   : > { %6136 = vmatprep.subr.mxu0 %v6327_v1 }
 0x641   : > { %6129 = vmatmul.mubr.msk.f32.vlgmr.msra.gmra.mrb[36].mxu0 %vm1400_vm6, %v4048_v53  ;;  %v3881_v39 = vpop.permute.xlu0 %3880  ;;  %v3977_v36 = vpop.permute.xlu1 %3976 }
 0x642   : > { %3937 = vst.msk [vmem:[#allocation2 + $0x7e] sm:$0x1] %vm580_vm5, %v3881_v39  ;;  %4033 = vst.msk [vmem:[#allocation2 + $0x7f] sm:$0x1] %vm580_vm5, %v3977_v36  ;;  %6138 = vmatprep.mubr.msk.f32.mxu0 %vm6326_vm0, %v6327_v1 }
 0x645   : > { %v3865_v62 = vpop.permute.xlu0 %3864  ;;  %v3961_v37 = vpop.permute.xlu1 %3960 }
 0x646   : > { %3929 = vst.msk [vmem:[#allocation2 + $0x3e] sm:$0x1] %vm580_vm5, %v3865_v62  ;;  %4025 = vst.msk [vmem:[#allocation2 + $0x3f] sm:$0x1] %vm580_vm5, %v3961_v37 }
 0x649   : > { %v4057_v38 = vld [vmem:[#allocation2 + $0x78] sm:$0xff]  ;;  %v3499_v30 = vpop.permute.xlu1 %3498  ;;  %v3403_v27 = vpop.permute.xlu0 %3402 }
 0x64a   : > { %6132 = vmatpush3.xpose.msk.msra.mxu1 %vm1400_vm6, %v4057_v38  ;;  %3554 = vst.msk [vmem:[#allocation2 + $0x82] sm:$0x1] %vm580_vm5, %v3499_v30  ;;  %3458 = vst.msk [vmem:[#allocation2 + $0x81] sm:$0x1] %vm580_vm5, %v3403_v27 }
 0x64b   : > { %6141 = vmatprep.subr.mxu1 %v6327_v1 }
 0x64d   : > { %v4049_v5 = vld [vmem:[#allocation2 + $0x38] sm:$0xff]  ;;  %v3595_v3 = vpop.permute.xlu1 %3594  ;;  %v3787_v6 = vpop.permute.xlu0 %3786 }
 0x64e   : > { %6134 = vmatmul.mubr.msk.f32.vlgmr.msra.gmra.mrb[28].mxu1 %vm1400_vm6, %v4049_v5  ;;  %3650 = vst.msk [vmem:[#allocation2 + $0x83] sm:$0x1] %vm580_vm5, %v3595_v3  ;;  %3842 = vst.msk [vmem:[#allocation2 + $0x85] sm:$0x1] %vm580_vm5, %v3787_v6 }
 0x64f   : > { %6143 = vmatprep.mubr.msk.f32.mxu1 %vm6326_vm0, %v6327_v1 }
 0x651   : > { %v3691_v51 = vpop.permute.xlu1 %3690  ;;  %v3979_v42 = vpop.permute.xlu0 %3978 }
 0x652   : > { %3746 = vst.msk [vmem:[#allocation2 + $0x84] sm:$0x1] %vm580_vm5, %v3691_v51  ;;  %4034 = vst.msk [vmem:[#allocation2 + $0x87] sm:$0x1] %vm580_vm5, %v3979_v42 }
 0x655   : > { %v3883_v7 = vpop.permute.xlu1 %3882  ;;  %v3501_v63 = vpop.permute.xlu0 %3500 }
 0x656   : > { %3938 = vst.msk [vmem:[#allocation2 + $0x86] sm:$0x1] %vm580_vm5, %v3883_v7  ;;  %3555 = vst.msk [vmem:[#allocation2 + $0x8a] sm:$0x1] %vm580_vm5, %v3501_v63 }
 0x659   : > { %v3405_v43 = vpop.permute.xlu1 %3404  ;;  %v3693_v45 = vpop.permute.xlu0 %3692 }
 0x65a   : > { %3459 = vst.msk [vmem:[#allocation2 + $0x89] sm:$0x1] %vm580_vm5, %v3405_v43  ;;  %3747 = vst.msk [vmem:[#allocation2 + $0x8c] sm:$0x1] %vm580_vm5, %v3693_v45 }
 0x65d   : > { %v3597_v41 = vpop.permute.xlu1 %3596  ;;  %v3885_v46 = vpop.permute.xlu0 %3884  ;;  %v4058_v47 = vld [vmem:[#allocation2 + $0x80] sm:$0xff] }
 0x65e   : > { %3651 = vst.msk [vmem:[#allocation2 + $0x8b] sm:$0x1] %vm580_vm5, %v3597_v41  ;;  %3939 = vst.msk [vmem:[#allocation2 + $0x8e] sm:$0x1] %vm580_vm5, %v3885_v46  ;;  %6137 = vmatpush3.msra.mxu0 %v4058_v47 }
 0x65f   : > { %6146 = vmatprep.subr.mxu0 %v6327_v1 }
 0x661   : > { %v3789_v48 = vpop.permute.xlu1 %3788  ;;  %v3407_v50 = vpop.permute.xlu0 %3406 }
 0x662   : > { %3843 = vst.msk [vmem:[#allocation2 + $0x8d] sm:$0x1] %vm580_vm5, %v3789_v48  ;;  %3460 = vst.msk [vmem:[#allocation2 + $0x91] sm:$0x1] %vm580_vm5, %v3407_v50 }
 0x665   : > { %v3981_v57 = vpop.permute.xlu1 %3980  ;;  %v3599_v25 = vpop.permute.xlu0 %3598 }
 0x666   : > { %4035 = vst.msk [vmem:[#allocation2 + $0x8f] sm:$0x1] %vm580_vm5, %v3981_v57  ;;  %3652 = vst.msk [vmem:[#allocation2 + $0x93] sm:$0x1] %vm580_vm5, %v3599_v25 }
 0x669   : > { %v3503_v61 = vpop.permute.xlu1 %3502  ;;  %v3791_v8 = vpop.permute.xlu0 %3790 }
 0x66a   : > { %3556 = vst.msk [vmem:[#allocation2 + $0x92] sm:$0x1] %vm580_vm5, %v3503_v61  ;;  %3844 = vst.msk [vmem:[#allocation2 + $0x95] sm:$0x1] %vm580_vm5, %v3791_v8 }
 0x66d   : > { %v3695_v60 = vpop.permute.xlu1 %3694  ;;  %v4059_v2 = vld [vmem:[#allocation2 + $0x88] sm:$0xff] }
 0x66e   : > { %3748 = vst.msk [vmem:[#allocation2 + $0x94] sm:$0x1] %vm580_vm5, %v3695_v60  ;;  %v3983_v9 = vpop.permute.xlu0 %3982  ;;  %6142 = vmatpush3.msra.mxu1 %v4059_v2 }
 0x66f   : > { %4036 = vst.msk [vmem:[#allocation2 + $0x97] sm:$0x1] %vm580_vm5, %v3983_v9  ;;  %6151 = vmatprep.subr.mxu1 %v6327_v1 }
 0x671   : > { %v3887_v10 = vpop.permute.xlu1 %3886 }
 0x672   : > { %3940 = vst.msk [vmem:[#allocation2 + $0x96] sm:$0x1] %vm580_vm5, %v3887_v10  ;;  %v3411_v54 = vpop.permute.xlu0 %3410 }
 0x673   : > { %3462 = vst.msk [vmem:[#allocation2 + $0xa1] sm:$0x1] %vm580_vm5, %v3411_v54 }
 0x675   : > { %v3507_v44 = vpop.permute.xlu1 %3506 }
 0x676   : > { %3558 = vst.msk [vmem:[#allocation2 + $0xa2] sm:$0x1] %vm580_vm5, %v3507_v44  ;;  %v3603_v12 = vpop.permute.xlu0 %3602 }
 0x677   : > { %3654 = vst.msk [vmem:[#allocation2 + $0xa3] sm:$0x1] %vm580_vm5, %v3603_v12 }
 0x679   : > { %v3699_v16 = vpop.permute.xlu1 %3698 }
 0x67a   : > { %3750 = vst.msk [vmem:[#allocation2 + $0xa4] sm:$0x1] %vm580_vm5, %v3699_v16  ;;  %v3795_v17 = vpop.permute.xlu0 %3794 }
 0x67b   : > { %3846 = vst.msk [vmem:[#allocation2 + $0xa5] sm:$0x1] %vm580_vm5, %v3795_v17 }
 0x67d   : > { %v3891_v18 = vpop.permute.xlu1 %3890 }
 0x67e   : > { %3942 = vst.msk [vmem:[#allocation2 + $0xa6] sm:$0x1] %vm580_vm5, %v3891_v18  ;;  %v3987_v55 = vpop.permute.xlu0 %3986 }
 0x67f   : > { %4038 = vst.msk [vmem:[#allocation2 + $0xa7] sm:$0x1] %vm580_vm5, %v3987_v55  ;;  %v7779_v55 = vrot.slane %v7362_v14, %v6425_v19 }
 0x681   : > { %v3409_v0 = vpop.permute.xlu1 %3408 }
 0x682   : > { %3461 = vst.msk [vmem:[#allocation2 + $0x99] sm:$0x1] %vm580_vm5, %v3409_v0  ;;  %v3505_v49 = vpop.permute.xlu0 %3504 }
 0x683   : > { %3557 = vst.msk [vmem:[#allocation2 + $0x9a] sm:$0x1] %vm580_vm5, %v3505_v49 }
 0x685   : > { %v3601_v4 = vpop.permute.xlu1 %3600 }
 0x686   : > { %3653 = vst.msk [vmem:[#allocation2 + $0x9b] sm:$0x1] %vm580_vm5, %v3601_v4  ;;  %v3697_v33 = vpop.permute.xlu0 %3696 }
 0x687   : > { %3749 = vst.msk [vmem:[#allocation2 + $0x9c] sm:$0x1] %vm580_vm5, %v3697_v33 }
 0x689   : > { %v3793_v21 = vpop.permute.xlu1 %3792 }
 0x68a   : > { %3845 = vst.msk [vmem:[#allocation2 + $0x9d] sm:$0x1] %vm580_vm5, %v3793_v21  ;;  %v3889_v24 = vpop.permute.xlu0 %3888 }
 0x68b   : > { %3941 = vst.msk [vmem:[#allocation2 + $0x9e] sm:$0x1] %vm580_vm5, %v3889_v24 }
 0x68c   : > { %v4140_v26 = vpop.f32.mrb[26].mxu0 }
 0x68d   : > { %v7737_v52 = vadd.f32 %v7733_v23, %v4140_v26  ;;  %v6100_v28 = vpop.f32.mrb[27].mxu0  ;;  %v3985_v29 = vpop.permute.xlu1 %3984 }
 0x68e   : > { %4037 = vst.msk [vmem:[#allocation2 + $0x9f] sm:$0x1] %vm580_vm5, %v3985_v29  ;;  %v3509_v31 = vpop.permute.xlu0 %3508 }
 0x68f   : > { %v4676_v32 = vsel %vm2009_vm7, %v7737_v52, -inf  ;;  %3559 = vst.msk [vmem:[#allocation2 + $0xaa] sm:$0x1] %vm580_vm5, %v3509_v31 }
 0x690   : > { %4677 = vmax.xlane.f32.xlu0 %v4676_v32 }
 0x691   : > { %v3413_v34 = vpop.permute.xlu1 %3412 }
 0x692   : > { %3463 = vst.msk [vmem:[#allocation2 + $0xa9] sm:$0x1] %vm580_vm5, %v3413_v34  ;;  %v3701_v35 = vpop.permute.xlu0 %3700 }
 0x693   : > { %3751 = vst.msk [vmem:[#allocation2 + $0xac] sm:$0x1] %vm580_vm5, %v3701_v35 }
 0x695   : > { %v3605_v53 = vpop.permute.xlu1 %3604 }
 0x696   : > { %3655 = vst.msk [vmem:[#allocation2 + $0xab] sm:$0x1] %vm580_vm5, %v3605_v53  ;;  %v3893_v39 = vpop.permute.xlu0 %3892 }
 0x697   : > { %3943 = vst.msk [vmem:[#allocation2 + $0xae] sm:$0x1] %vm580_vm5, %v3893_v39 }
 0x699   : > { %v3797_v36 = vpop.permute.xlu1 %3796 }
 0x69a   : > { %3847 = vst.msk [vmem:[#allocation2 + $0xad] sm:$0x1] %vm580_vm5, %v3797_v36  ;;  %v3415_v62 = vpop.permute.xlu0 %3414 }
 0x69b   : > { %3464 = vst.msk [vmem:[#allocation2 + $0xb1] sm:$0x1] %vm580_vm5, %v3415_v62 }
 0x69d   : > { %v3989_v37 = vpop.permute.xlu1 %3988 }
 0x69e   : > { %4039 = vst.msk [vmem:[#allocation2 + $0xaf] sm:$0x1] %vm580_vm5, %v3989_v37  ;;  %v3607_v38 = vpop.permute.xlu0 %3606 }
 0x69f   : > { %3656 = vst.msk [vmem:[#allocation2 + $0xb3] sm:$0x1] %vm580_vm5, %v3607_v38 }
 0x6a1   : > { %v3511_v30 = vpop.permute.xlu1 %3510 }
 0x6a2   : > { %3560 = vst.msk [vmem:[#allocation2 + $0xb2] sm:$0x1] %vm580_vm5, %v3511_v30 }
 0x6a5   : > { %v3703_v27 = vpop.permute.xlu1 %3702 }
 0x6a6   : > { %3752 = vst.msk [vmem:[#allocation2 + $0xb4] sm:$0x1] %vm580_vm5, %v3703_v27 }
 0x6d0   : > { %v4216_v5 = vpop.f32.mrb[28].mxu0 }
 0x6d1   : > { %v4217_v3 = vadd.f32 %v7733_v23, %v4216_v5  ;;  %v6105_v6 = vpop.f32.mrb[29].mxu0 }
 0x6d3   : > { %v4679_v51 = vsel %vm2009_vm7, %v4217_v3, -inf }
 0x6d4   : > { %4680 = vmax.xlane.f32.xlu1 %v4679_v51 }
 0x6dc   : > { %v4292_v42 = vpop.f32.mrb[30].mxu0 }
 0x6dd   : > { %v4293_v7 = vadd.f32 %v7733_v23, %v4292_v42  ;;  %v6110_v63 = vpop.f32.mrb[31].mxu0 }
 0x6df   : > { %v4682_v43 = vsel %vm2009_vm7, %v4293_v7, -inf }
 0x6e0   : > { %4683 = vmax.xlane.f32.xlu0 %v4682_v43 }
 0x700   : > { %v4368_v45 = vpop.f32.mrb[32].mxu0 }
 0x701   : > { %v7758_v41 = vadd.f32 %v7733_v23, %v4368_v45  ;;  %v6115_v46 = vpop.f32.mrb[33].mxu0 }
 0x703   : > { %v4685_v47 = vsel %vm2009_vm7, %v7758_v41, -inf }
 0x704   : > { %4686 = vmax.xlane.f32.xlu0 %v4685_v47  ;;  %v4444_v48 = vpop.f32.mrb[34].mxu0 }
 0x705   : > { %v4445_v50 = vadd.f32 %v7733_v23, %v4444_v48  ;;  %v6120_v57 = vpop.f32.mrb[35].mxu0 }
 0x707   : > { %v4688_v25 = vsel %vm2009_vm7, %v4445_v50, -inf }
 0x708   : > { %4689 = vmax.xlane.f32.xlu0 %v4688_v25 }
 0x710   : > { %v4520_v61 = vpop.f32.mrb[26].mxu1 }
 0x711   : > { %v4521_v8 = vadd.f32 %v7733_v23, %v4520_v61  ;;  %v6125_v60 = vpop.f32.mrb[27].mxu1 }
 0x713   : > { %v4691_v2 = vsel %vm2009_vm7, %v4521_v8, -inf }
 0x714   : > { %4692 = vmax.xlane.f32.xlu1 %v4691_v2  ;;  %v4596_v9 = vpop.f32.mrb[36].mxu0 }
 0x715   : > { %v4597_v10 = vadd.f32 %v7733_v23, %v4596_v9  ;;  %v6130_v54 = vpop.f32.mrb[37].mxu0 }
 0x717   : > { %v4694_v44 = vsel %vm2009_vm7, %v4597_v10, -inf }
 0x718   : > { %4695 = vmax.xlane.f32.xlu0 %v4694_v44 }
 0x71d   : > { %v4678_v0 = vpop.xlane.xlu0 %4677 }
 0x71e   : > { %v4700_v19 = vsub.f32 %v7737_v52, %v4678_v0 }
 0x720   : > { %v4708_v14 = vmul.f32 1.442695, %v4700_v19 }
 0x721   : > { %v4672_v12 = vpop.f32.mrb[28].mxu1 }
 0x722   : > { %v7769_v16 = vadd.f32 %v7733_v23, %v4672_v12  ;;  %v6135_v17 = vpop.f32.mrb[29].mxu1  ;;  %6280 = vpow2.f32 %v4708_v14  ;;  %v6315_v14 = vld [vmem:[%s7930_s4] sm:$0x3f] }
 0x724   : > { %v4697_v18 = vsel %vm2009_vm7, %v7769_v16, -inf }
 0x725   : > { %4698 = vmax.xlane.f32.xlu1 %v4697_v18 }
 0x72e   : > { %3798 = vrot.lane.b32.xlu0 %v7641_v11, %s6335_s15 }
 0x732   : > { %3990 = vrot.lane.b32.xlu0 %v7641_v11, %s6336_s16 }
 0x736   : > { %3894 = vrot.lane.b32.xlu1 %v7641_v11, %s6334_s14  ;;  %3512 = vrot.lane.b32.xlu0 %v7779_v55, %s6330_s10  ;;  %v7794_v11 = vpop.eup %6280 }
 0x737   : > { %v4724_v49 = vsel %vm2009_vm7, %v7794_v11, 0.0 }
 0x73a   : > { %3416 = vrot.lane.b32.xlu1 %v7779_v55, %s6331_s11  ;;  %3704 = vrot.lane.b32.xlu0 %v7779_v55, %s6332_s12 }
 0x73e   : > { %3608 = vrot.lane.b32.xlu1 %v7779_v55, %s6333_s13 }
 0x742   : > { %3800 = vrot.lane.b32.xlu1 %v7779_v55, %s6335_s15 }
 0x759   : > { %4725 = vadd.xlane.f32.xlu0 %v4724_v49 }
 0x761   : > { %v4681_v4 = vpop.xlane.xlu1 %4680 }
 0x762   : > { %v4701_v33 = vsub.f32 %v4217_v3, %v4681_v4 }
 0x764   : > { %v4710_v21 = vmul.f32 1.442695, %v4701_v33 }
 0x766   : > { %6282 = vpow2.f32 %v4710_v21 }
 0x76d   : > { %v4684_v23 = vpop.xlane.xlu0 %4683 }
 0x76e   : > { %v4702_v24 = vsub.f32 %v4293_v7, %v4684_v23 }
 0x770   : > { %v7798_v26 = vpop.eup %6282  ;;  %v4712_v28 = vmul.f32 1.442695, %v4702_v24 }
 0x771   : > { %v4727_v52 = vsel %vm2009_vm7, %v7798_v26, 0.0 }
 0x772   : > { %6284 = vpow2.f32 %v4712_v28  ;;  %4728 = vadd.xlane.f32.xlu1 %v4727_v52 }
 0x77c   : > { %v7802_v29 = vpop.eup %6284 }
 0x77d   : > { %v4730_v31 = vsel %vm2009_vm7, %v7802_v29, 0.0 }
 0x77e   : > { %4731 = vadd.xlane.f32.xlu0 %v4730_v31 }
 0x791   : > { %v4687_v32 = vpop.xlane.xlu0 %4686 }
 0x792   : > { %v4703_v42 = vsub.f32 %v7758_v41, %v4687_v32 }
 0x794   : > { %v4714_v47 = vmul.f32 1.442695, %v4703_v42 }
 0x795   : > { %v4690_v34 = vpop.xlane.xlu0 %4689 }
 0x796   : > { %v4704_v35 = vsub.f32 %v4445_v50, %v4690_v34 }
 0x798   : > { %v4716_v53 = vmul.f32 1.442695, %v4704_v35 }
 0x79a   : > { %6286 = vpow2.f32 %v4716_v53  ;;  %v6316_v53 = vld [vmem:[%s7931_s5] sm:$0x1f] }
 0x7a1   : > { %v4693_v39 = vpop.xlane.xlu1 %4692 }
 0x7a2   : > { %v4705_v36 = vsub.f32 %v4521_v8, %v4693_v39  ;;  %v5821_v39 = vld [vmem:[%s7138_s8 + $0x40] sm:$0xff] }
 0x7a4   : > { %v7806_v62 = vpop.eup %6286  ;;  %v4718_v37 = vmul.f32 1.442695, %v4705_v36  ;;  %v5822_v36 = vld [vmem:[%s7138_s8 + $0x48] sm:$0xff] }
 0x7a5   : > { %v4696_v38 = vpop.xlane.xlu0 %4695  ;;  %v4736_v30 = vsel %vm2009_vm7, %v7806_v62, 0.0 }
 0x7a6   : > { %6288 = vpow2.f32 %v4718_v37  ;;  %v4706_v27 = vsub.f32 %v4597_v10, %v4696_v38  ;;  %4737 = vadd.xlane.f32.xlu0 %v4736_v30  ;;  %v5825_v37 = vld [vmem:[%s7138_s8 + $0x60] sm:$0xff]  ;;  %v5826_v38 = vld [vmem:[%s7138_s8 + $0x68] sm:$0xff]  ;;  %v5827_v30 = vld [vmem:[%s7138_s8 + $0x70] sm:$0xff] }
 0x7a8   : > { %v4720_v5 = vmul.f32 1.442695, %v4706_v27  ;;  %v5828_v27 = vld [vmem:[%s7138_s8 + $0x78] sm:$0xff] }
 0x7a9   : > { %v3799_v3 = vpop.permute.xlu0 %3798 }
 0x7aa   : > { %6290 = vpow2.f32 %v4720_v5  ;;  %3848 = vst.msk [vmem:[#allocation2 + $0xb5] sm:$0x1] %vm580_vm5, %v3799_v3 }
 0x7ad   : > { %v3991_v6 = vpop.permute.xlu0 %3990 }
 0x7ae   : > { %4040 = vst.msk [vmem:[#allocation2 + $0xb7] sm:$0x1] %vm580_vm5, %v3991_v6 }
 0x7b0   : > { %v7812_v51 = vpop.eup %6288 }
 0x7b1   : > { %v3513_v7 = vpop.permute.xlu0 %3512  ;;  %v4739_v63 = vsel %vm2009_vm7, %v7812_v51, 0.0 }
 0x7b2   : > { %3561 = vst.msk [vmem:[#allocation2 + $0xba] sm:$0x1] %vm580_vm5, %v3513_v7  ;;  %4740 = vadd.xlane.f32.xlu1 %v4739_v63  ;;  %v4699_v43 = vpop.xlane.xlu1 %4698 }
 0x7b3   : > { %v4707_v45 = vsub.f32 %v7769_v16, %v4699_v43  ;;  %v4060_v16 = vld [vmem:[#allocation2 + $0x90] sm:$0xff] }
 0x7b4   : > { %v7819_v46 = vpop.eup %6290 }
 0x7b5   : > { %v4722_v48 = vmul.f32 1.442695, %v4707_v45  ;;  %v3705_v50 = vpop.permute.xlu0 %3704  ;;  %v4742_v57 = vsel %vm2009_vm7, %v7819_v46, 0.0 }
 0x7b6   : > { %3753 = vst.msk [vmem:[#allocation2 + $0xbc] sm:$0x1] %vm580_vm5, %v3705_v50  ;;  %v3895_v41 = vpop.permute.xlu1 %3894  ;;  %4743 = vadd.xlane.f32.xlu0 %v4742_v57 }
 0x7b7   : > { %6292 = vpow2.f32 %v4722_v48  ;;  %3944 = vst.msk [vmem:[#allocation2 + $0xb6] sm:$0x1] %vm580_vm5, %v3895_v41 }
 0x7b8   : > { %6294 = vpow2.f32 %v4714_v47 }
 0x7ba   : > { %v3417_v25 = vpop.permute.xlu1 %3416 }
 0x7bb   : > { %3465 = vst.msk [vmem:[#allocation2 + $0xb9] sm:$0x1] %vm580_vm5, %v3417_v25 }
 0x7be   : > { %v3609_v61 = vpop.permute.xlu1 %3608  ;;  %v4064_v0 = vld [vmem:[#allocation2 + $0xb0] sm:$0xff] }
 0x7bf   : > { %3657 = vst.msk [vmem:[#allocation2 + $0xbb] sm:$0x1] %vm580_vm5, %v3609_v61 }
 0x7c1   : > { %v7827_v8 = vpop.eup %6292 }
 0x7c2   : > { %v3801_v60 = vpop.permute.xlu1 %3800  ;;  %v4745_v2 = vsel %vm2009_vm7, %v7827_v8, 0.0  ;;  %v7831_v9 = vpop.eup %6294 }
 0x7c3   : > { %3849 = vst.msk [vmem:[#allocation2 + $0xbd] sm:$0x1] %vm580_vm5, %v3801_v60  ;;  %4746 = vadd.xlane.f32.xlu1 %v4745_v2  ;;  %v4733_v10 = vsel %vm2009_vm7, %v7831_v9, 0.0 }
 0x7c7   : > { %4734 = vadd.xlane.f32.xlu1 %v4733_v10 }
 0x7cc   : > { %3896 = vrot.lane.b32.xlu0 %v7779_v55, %s6334_s14 }
 0x7d8   : > { %3992 = vrot.lane.b32.xlu1 %v7779_v55, %s6336_s16  ;;  %s303_s16 = scalar_lea.vmem %s7932_s6, %s5741_s17 }
 0x7e6   : > { %v4726_v54 = vpop.xlane.xlu0 %4725 }
 0x7e7   : > { %6296 = vrcp.f32 %v4726_v54 }
 0x7ea   : > { %2956 = vxpose.xlu0.b32.start [1/8] (short) (narrow) %v7411_v15, 8 }
 0x7ee   : > { %2957 = vxpose.xlu0.b32.cont [2/8] (short) (narrow) %v7406_v13, 8 }
 0x7f1   : > { %v6297_v44 = vpop.eup %6296 }
 0x7f2   : > { %v4756_v12 = vmul.f32 %v6297_v44, %v7794_v11  ;;  %2958 = vxpose.xlu0.b32.cont [3/8] (short) (narrow) %v7546_v22, 8 }
 0x7f4   : > { %6139 = vmatmul.mubr.msk.f32.vlgmr.msra.gmra.mrb[38].mxu0 %vm2009_vm7, %v4756_v12 }
 0x7f5   : > { %6147 = vmatpush3.msra.mxu0 %v4060_v16  ;;  %6148 = vmatprep.mubr.msk.f32.mxu0 %vm6326_vm0, %v6327_v1 }
 0x7f6   : > { %2959 = vxpose.xlu0.b32.cont [4/8] (short) (narrow) %v7540_v20, 8  ;;  %6156 = vmatprep.subr.mxu0 %v6327_v1  ;;  %v4061_v20 = vld [vmem:[#allocation2 + $0x98] sm:$0xff] }
 0x7fa   : > { %2960 = vxpose.xlu0.b32.cont [5/8] (short) (narrow) %v7614_v40, 8 }
 0x7fe   : > { %2961 = vxpose.xlu0.b32.cont [6/8] (short) (narrow) %v7612_v56, 8 }
 0x7ff   : > { %v4729_v13 = vpop.xlane.xlu1 %4728 }
 0x800   : > { %6298 = vrcp.f32 %v4729_v13 }
 0x802   : > { %2962 = vxpose.xlu0.b32.cont [7/8] (short) (narrow) %v7622_v59, 8 }
 0x806   : > { %2963 = vxpose.xlu0.b32.end [8/8] (short) (narrow) %v7620_v58, 8  ;;  %v4062_v58 = vld [vmem:[#allocation2 + $0xa0] sm:$0xff] }
 0x80a   : > { %v6299_v15 = vpop.eup %6298 }
 0x80b   : > { %v4757_v22 = vmul.f32 %v6299_v15, %v7798_v26  ;;  %v4732_v17 = vpop.xlane.xlu0 %4731 }
 0x80c   : > { %6300 = vrcp.f32 %v4732_v17 }
 0x80d   : > { %6144 = vmatmul.mubr.msk.f32.vlgmr.msra.gmra.mrb[30].mxu1 %vm2009_vm7, %v4757_v22 }
 0x80e   : > { %6152 = vmatpush3.msra.mxu1 %v4061_v20  ;;  %6153 = vmatprep.mubr.msk.f32.mxu1 %vm6326_vm0, %v6327_v1 }
 0x80f   : > { %6161 = vmatprep.subr.mxu1 %v6327_v1 }
 0x816   : > { %v6301_v56 = vpop.eup %6300 }
 0x817   : > { %v4758_v40 = vmul.f32 %v6301_v56, %v7802_v29  ;;  %v4063_v29 = vld [vmem:[#allocation2 + $0xa8] sm:$0xff] }
 0x819   : > { %6149 = vmatmul.mubr.msk.f32.vlgmr.msra.gmra.mrb[40].mxu0 %vm2009_vm7, %v4758_v40 }
 0x81a   : > { %6157 = vmatpush3.msra.mxu0 %v4062_v58  ;;  %6158 = vmatprep.mubr.msk.f32.mxu0 %vm6326_vm0, %v6327_v1 }
 0x81b   : > { %6166 = vmatprep.subr.mxu0 %v6327_v1 }
 0x833   : > { %v4738_v59 = vpop.xlane.xlu0 %4737 }
 0x834   : > { %6302 = vrcp.f32 %v4738_v59 }
 0x83e   : > { %v6303_v18 = vpop.eup %6302 }
 0x83f   : > { %v4760_v55 = vmul.f32 %v6303_v18, %v7806_v62  ;;  %v4741_v49 = vpop.xlane.xlu1 %4740  ;;  %v5824_v62 = vld [vmem:[%s7138_s8 + $0x58] sm:$0xff] }
 0x841   : > { %6159 = vmatmul.mubr.msk.f32.vlgmr.msra.gmra.mrb[42].mxu0 %vm2009_vm7, %v4760_v55 }
 0x842   : > { %6167 = vmatpush3.msra.mxu0 %v4064_v0  ;;  %6168 = vmatprep.mubr.msk.f32.mxu0 %vm6326_vm0, %v6327_v1 }
 0x843   : > { %v4744_v19 = vpop.xlane.xlu0 %4743  ;;  %6190 = vmatprep.subr.msk.mxu0 %vm2847_vm9, %v6315_v14 }
 0x844   : > { %6304 = vrcp.f32 %v4744_v19 }
 0x847   : > { %v3897_v11 = vpop.permute.xlu0 %3896 }
 0x848   : > { %3945 = vst.msk [vmem:[#allocation2 + $0xbe] sm:$0x1] %vm580_vm5, %v3897_v11 }
 0x84e   : > { %v6305_v4 = vpop.eup %6304 }
 0x84f   : > { %v4762_v33 = vmul.f32 %v6305_v4, %v7819_v46 }
 0x850   : > { %v4747_v21 = vpop.xlane.xlu1 %4746 }
 0x851   : > { %6169 = vmatmul.mubr.msk.f32.vlgmr.msra.gmra.mrb[44].mxu0 %vm2009_vm7, %v4762_v33 }
 0x852   : > { %6191 = vmatpush3.msk.msra.mxu0 %vm2847_vm9, %v6315_v14 }
 0x854   : > { %v4735_v23 = vpop.xlane.xlu1 %4734 }
 0x855   : > { %6306 = vrcp.f32 %v4735_v23 }
 0x856   : > { %6308 = vrcp.f32 %v4741_v49 }
 0x857   : > { %6310 = vrcp.f32 %v4747_v21 }
 0x858   : > { %v3993_v24 = vpop.permute.xlu1 %3992 }
 0x859   : > { %4041 = vst.msk [vmem:[#allocation2 + $0xbf] sm:$0x1] %vm580_vm5, %v3993_v24 }
 0x85f   : > { %v6307_v26 = vpop.eup %6306 }
 0x860   : > { %v4759_v28 = vmul.f32 %v6307_v26, %v7831_v9  ;;  %v6309_v52 = vpop.eup %6308  ;;  %v4065_v34 = vld [vmem:[#allocation2 + $0xb8] sm:$0xff] }
 0x861   : > { %v4761_v31 = vmul.f32 %v6309_v52, %v7812_v51  ;;  %v6311_v32 = vpop.eup %6310 }
 0x862   : > { %6154 = vmatmul.mubr.msk.f32.vlgmr.msra.gmra.mrb[32].mxu1 %vm2009_vm7, %v4759_v28  ;;  %v4763_v35 = vmul.f32 %v6311_v32, %v7827_v8 }
 0x863   : > { %6162 = vmatpush3.msra.mxu1 %v4063_v29  ;;  %6163 = vmatprep.mubr.msk.f32.mxu1 %vm6326_vm0, %v6327_v1 }
 0x864   : > { %6171 = vmatprep.subr.mxu1 %v6327_v1 }
 0x866   : > { %6164 = vmatmul.mubr.msk.f32.vlgmr.msra.gmra.mrb[34].mxu1 %vm2009_vm7, %v4761_v31 }
 0x867   : > { %6172 = vmatpush3.msra.mxu1 %v4065_v34  ;;  %6173 = vmatprep.mubr.msk.f32.mxu1 %vm6326_vm0, %v6327_v1  ;;  %v5823_v1 = vld [vmem:[%s7138_s8 + $0x50] sm:$0xff] }
 0x868   : > { %6176 = vmatprep.subr.msk.mxu1 %vm322_vm1, %v6316_v53 }
 0x86a   : > { %6174 = vmatmul.mubr.msk.f32.vlgmr.msra.gmra.mrb[36].mxu1 %vm2009_vm7, %v4763_v35  ;;  %v2972_v12 = vpop.trf.xlu0 }
 0x86b   : > { %6177 = vmatpush3.msk.msra.mxu1 %vm322_vm1, %v6316_v53  ;;  %6178 = vmatprep.mubr.msk.f32.mxu1 %vm2690_vm8, %v5821_v39  ;;  %2989 = vst.msk [vmem:[%s303_s16] sm:$0xff] %vm2988_vm10, %v2972_v12 }
 0x86e   : > { %6179 = vmatmul.mubr.msk.f32.vlgmr.msra.gmra.mrb[38].mxu1 %vm2690_vm8, %v5822_v36 }
 0x86f   : > { %6181 = vmatprep.mubr.msk.f32.mxu1 %vm2690_vm8, %v5823_v1 }
 0x872   : > { %6182 = vmatmul.mubr.msk.f32.gmra.mrb[40].mxu1 %vm2690_vm8, %v5824_v62 }
 0x873   : > { %6184 = vmatprep.mubr.msk.f32.mxu1 %vm2690_vm8, %v5825_v37 }
 0x876   : > { %6185 = vmatmul.mubr.msk.f32.gmra.mrb[42].mxu1 %vm2690_vm8, %v5826_v38 }
 0x877   : > { %6187 = vmatprep.mubr.msk.f32.mxu1 %vm2690_vm8, %v5827_v30 }
 0x87a   : > { %6188 = vmatmul.mubr.msk.f32.gmra.mrb[44].mxu1 %vm2690_vm8, %v5828_v27 }
 0x8c7   : > { %v4833_v5 = vpop.f32.mrb[38].mxu0 }
 0x8c8   : > { %v6140_v3 = vpop.f32.mrb[39].mxu0  ;;  %6192 = vmatprep.mubr.msk.f32.mxu0 %vm1400_vm6, %v4833_v5 }
 0x8e0   : > { %v4906_v6 = vpop.f32.mrb[30].mxu1 }
 0x8e1   : > { %v6145_v51 = vpop.f32.mrb[31].mxu1  ;;  %6193 = vmatmul.mubr.msk.f32.vlgmr.msra.gmra.mrb[46].mxu0 %vm1400_vm6, %v4906_v6 }
 0x8ec   : > { %v4979_v42 = vpop.f32.mrb[40].mxu0 }
 0x8ed   : > { %v6150_v7 = vpop.f32.mrb[41].mxu0  ;;  %6195 = vmatprep.mubr.msk.f32.mxu0 %vm1400_vm6, %v4979_v42 }
 0x914   : > { %v5125_v63 = vpop.f32.mrb[42].mxu0 }
 0x915   : > { %v6160_v43 = vpop.f32.mrb[43].mxu0 }
 0x924   : > { %v5271_v45 = vpop.f32.mrb[44].mxu0 }
 0x925   : > { %v6170_v46 = vpop.f32.mrb[45].mxu0 }
 0x935   : > { %v5052_v47 = vpop.f32.mrb[32].mxu1 }
 0x936   : > { %v6155_v48 = vpop.f32.mrb[33].mxu1  ;;  %6196 = vmatmul.mubr.msk.f32.gmra.mrb[48].mxu0 %vm1400_vm6, %v5052_v47 }
 0x937   : > { %6198 = vmatprep.mubr.msk.f32.mxu0 %vm1400_vm6, %v5125_v63 }
 0x939   : > { %v5198_v50 = vpop.f32.mrb[34].mxu1 }
 0x93a   : > { %v6165_v57 = vpop.f32.mrb[35].mxu1  ;;  %6199 = vmatmul.mubr.msk.f32.gmra.mrb[50].mxu0 %vm1400_vm6, %v5198_v50 }
 0x93b   : > { %6201 = vmatprep.mubr.msk.f32.mxu0 %vm1400_vm6, %v5271_v45 }
 0x93d   : > { %v5344_v41 = vpop.f32.mrb[36].mxu1 }
 0x93e   : > { %v6175_v25 = vpop.f32.mrb[37].mxu1  ;;  %6202 = vmatmul.mubr.msk.f32.gmra.mrb[52].mxu0 %vm1400_vm6, %v5344_v41 }
 0x941   : > { %v6180_v61 = vpop.f32.mrb[38].mxu1 }
 0x942   : > { %v5447_v8 = vpop.f32.mrb[39].mxu1 }
 0x945   : > { %v6183_v60 = vpop.f32.mrb[40].mxu1 }
 0x946   : > { %v5457_v2 = vpop.f32.mrb[41].mxu1 }
 0x949   : > { %v6186_v9 = vpop.f32.mrb[42].mxu1 }
 0x94a   : > { %v5467_v10 = vpop.f32.mrb[43].mxu1 }
 0x94d   : > { %v6189_v54 = vpop.f32.mrb[44].mxu1 }
 0x94e   : > { %v5477_v44 = vpop.f32.mrb[45].mxu1 }
 0x9b4   : > { %v6194_v16 = vpop.f32.mrb[46].mxu0 }
 0x9b5   : > { %v5582_v13 = vadd.f32 %v6194_v16, %v6180_v61  ;;  %v5576_v15 = vpop.f32.mrb[47].mxu0 }
 0x9b6   : > { %v5577_v22 = vadd.f32 %v5576_v15, %v5447_v8 }
 0x9b8   : > { %5615 = vxpose.xlu1.b32.start [1/8] (short) (narrow) %v5577_v22, 8 }
 0x9bc   : > { %5616 = vxpose.xlu1.b32.cont [2/8] (short) (narrow) %v5582_v13, 8 }
 0xa09   : > { %v6197_v17 = vpop.f32.mrb[48].mxu0 }
 0xa0a   : > { %v5592_v20 = vadd.f32 %v6197_v17, %v6183_v60  ;;  %v5586_v56 = vpop.f32.mrb[49].mxu0 }
 0xa0b   : > { %v5587_v40 = vadd.f32 %v5586_v56, %v5457_v2 }
 0xa0d   : > { %v6200_v58 = vpop.f32.mrb[50].mxu0  ;;  %5617 = vxpose.xlu1.b32.cont [3/8] (short) (narrow) %v5587_v40, 8 }
 0xa0e   : > { %v5602_v59 = vadd.f32 %v6200_v58, %v6186_v9  ;;  %v5596_v18 = vpop.f32.mrb[51].mxu0 }
 0xa0f   : > { %v5597_v55 = vadd.f32 %v5596_v18, %v5467_v10 }
 0xa11   : > { %v6203_v0 = vpop.f32.mrb[52].mxu0  ;;  %5618 = vxpose.xlu1.b32.cont [4/8] (short) (narrow) %v5592_v20, 8 }
 0xa12   : > { %v5612_v19 = vadd.f32 %v6203_v0, %v6189_v54  ;;  %v5606_v14 = vpop.f32.mrb[53].mxu0 }
 0xa13   : > { %v5607_v11 = vadd.f32 %v5606_v14, %v5477_v44 }
 0xa15   : > { %5619 = vxpose.xlu1.b32.cont [5/8] (short) (narrow) %v5597_v55, 8 }
 0xa19   : > { %5620 = vxpose.xlu1.b32.cont [6/8] (short) (narrow) %v5602_v59, 8 }
 0xa1d   : > { %5621 = vxpose.xlu1.b32.cont [7/8] (short) (narrow) %v5607_v11, 8 }
 0xa21   : > { %5622 = vxpose.xlu1.b32.end [8/8] (short) (narrow) %v5612_v19, 8 }
 0xa85   : > { %v5631_v49 = vpop.trf.xlu1 }
 0xa86   : > { %5847 = vst.msk [vmem:[%s303_s16 + $0x8] sm:$0xff] %vm2988_vm10, %v5631_v49 }
 0xa87 PF: > { %s16_s21 = sadd.s32 1, %s6323_s21  }
 0xa88   : > { %p13_p4 = scmp.ge.s32.totalorder %s16_s21, 4  }
 0xa8a   :  { %15 = sbr.rel (!%p13_p4) target bundleno = 1 (0x1), region = 86 }

</bundles_post_ra>
